<compile_context>
chip_gen: v6e
topology: v6e:2x2x1
jax: 0.10.0
libtpu: 0.0.40
codegen_flags: <defaults>
</compile_context>

<pallas_src>
import functools

import jax
import jax.numpy as jnp
from jax import lax
from jax.experimental import pallas as pl
from jax.experimental.pallas import tpu as pltpu

_LANES = 128
_FUSE_HEAD_MAX_B = 64            # <= this: fold the FC head into the point kernel
_MAX_ROWS = 4096                 # cap on TB*tile_n (rows of conv2/conv3 matmuls)
_MAX_TILE_N = 1024               # max point-tile size
_CONV3_CHUNK = 256               # conv3 out-channel slab (keeps f32 live set small)
_VMEM_LIMIT = 32 * 1024 * 1024   # safe on v5e/v6e/v7x; working set is ~<20 MiB


def _round_up(v, m):
    return ((v + m - 1) // m) * m


def _relu(v):
    return jnp.maximum(v, 0.0)


# ----------------------------------------------------------------------------
# Per-block point MLP (conv1/2/3 + folded BN + ReLU) -> per-row max pooling.
# Returns the (TB, 1024) f32 max over this block's valid points.
# ----------------------------------------------------------------------------
def _point_block_max(x_ref, w1_ref, b1_ref, w2_ref, b2_ref, w3_ref, b3_ref,
                     *, n_points, num_tiles):
    t = pl.program_id(1)
    tb, c_in, tile_n = x_ref.shape

    # conv1: K = C is tiny -> VPU broadcast multiply-adds (channels-first),
    # keeping the MXU free for conv2/conv3.
    x = x_ref[...].astype(jnp.float32)                    # (TB, C, TN)
    w1 = w1_ref[...]                                      # (64, C) f32 (bf16-rounded)
    h = w1[None, :, 0:1] * x[:, 0:1, :]                   # (TB, 64, TN)
    for c in range(1, c_in):                              # static unroll, C is small
        h = h + w1[None, :, c:c + 1] * x[:, c:c + 1, :]
    h = _relu(h + b1_ref[...][None, :, :])                # b1 is a (64, 1) column

    # bf16 BEFORE the transpose (halves XLU traffic), then one big-M matmul.
    h1 = jnp.transpose(h.astype(jnp.bfloat16), (0, 2, 1))  # (TB, TN, 64)
    h1 = h1.reshape(tb * tile_n, 64)

    h2 = _relu(jnp.dot(h1, w2_ref[...],
                       preferred_element_type=jnp.float32) + b2_ref[...])
    h2 = h2.astype(jnp.bfloat16)                           # (TB*TN, 128)

    needs_mask = (num_tiles * tile_n != n_points)          # static

    def _plain_max(v):                                     # (TB, TN, CH) -> (TB, CH)
        return jnp.max(v, axis=1)

    def _masked_max(v):
        # Padding lives at the end of N; 0 is neutral for post-ReLU values.
        pid = t * tile_n + lax.broadcasted_iota(jnp.int32, (1, tile_n, 1), 1)
        return jnp.max(jnp.where(pid < n_points, v, 0.0), axis=1)

    def _pool(v):
        if not needs_mask:
            return _plain_max(v)
        if num_tiles == 1:
            return _masked_max(v)
        # Mask cost is only paid on the last tile at runtime.
        return lax.cond(t == num_tiles - 1, _masked_max, _plain_max, v)

    # conv3 in 256-lane output-channel slabs: live f32 intermediate stays
    # (TB*TN, 256) regardless of TB (fits v7x's smaller VMEM).
    chunk = _CONV3_CHUNK
    maxes = []
    for ci in range(1024 // chunk):
        w3c = w3_ref[:, ci * chunk:(ci + 1) * chunk]       # (128, 256) bf16
        b3c = b3_ref[:, ci * chunk:(ci + 1) * chunk]       # (1, 256) f32
        h3c = _relu(jnp.dot(h2, w3c,
                            preferred_element_type=jnp.float32) + b3c)
        maxes.append(_pool(h3c.reshape(tb, tile_n, chunk)))
    return jnp.concatenate(maxes, axis=-1)                 # (TB, 1024) f32


def _accumulate(tile_max, acc_ref, num_tiles):
    """Running max across point tiles (scratch skipped when num_tiles == 1)."""
    if num_tiles == 1:
        return tile_max
    t = pl.program_id(1)

    @pl.when(t == 0)
    def _():
        acc_ref[...] = tile_max

    @pl.when(t > 0)
    def _():
        acc_ref[...] = jnp.maximum(acc_ref[...], tile_max)

    return acc_ref[...]


# ----------------------------------------------------------------------------
# Kernel A (small batch): point MLP + max pool with the FC head fused into the
# finalize branch.  grid = (B/TB, num_tiles).
# ----------------------------------------------------------------------------
def _stn_fused_kernel(x_ref, w1_ref, b1_ref, w2_ref, b2_ref, w3_ref, b3_ref,
                      w4_ref, b4_ref, w5_ref, b5_ref, w6_ref, b6_ref,
                      out_ref, *acc, n_points, num_tiles):
    tile_max = _point_block_max(x_ref, w1_ref, b1_ref, w2_ref, b2_ref,
                                w3_ref, b3_ref,
                                n_points=n_points, num_tiles=num_tiles)
    pooled = _accumulate(tile_max, acc[0] if acc else None, num_tiles)

    def _head():
        f = pooled.astype(jnp.bfloat16)                    # (TB, 1024)
        h = _relu(jnp.dot(f, w4_ref[...],
                          preferred_element_type=jnp.float32) + b4_ref[...])
        h = _relu(jnp.dot(h.astype(jnp.bfloat16), w5_ref[...],
                          preferred_element_type=jnp.float32) + b5_ref[...])
        out_ref[0] = (jnp.dot(h.astype(jnp.bfloat16), w6_ref[...],
                              preferred_element_type=jnp.float32) + b6_ref[...])

    if num_tiles == 1:
        _head()
    else:
        pl.when(pl.program_id(1) == num_tiles - 1)(_head)


# ----------------------------------------------------------------------------
# Kernel B (large batch): point MLP + max pool only; pooled feature to HBM.
# ----------------------------------------------------------------------------
def _point_feat_kernel(x_ref, w1_ref, b1_ref, w2_ref, b2_ref, w3_ref, b3_ref,
                       feat_ref, *acc, n_points, num_tiles):
    tile_max = _point_block_max(x_ref, w1_ref, b1_ref, w2_ref, b2_ref,
                                w3_ref, b3_ref,
                                n_points=n_points, num_tiles=num_tiles)
    pooled = _accumulate(tile_max, acc[0] if acc else None, num_tiles)

    def _store():
        feat_ref[0] = pooled

    if num_tiles == 1:
        _store()
    else:
        pl.when(pl.program_id(1) == num_tiles - 1)(_store)


# ----------------------------------------------------------------------------
# Kernel C (large batch): batched FC head.
# ----------------------------------------------------------------------------
def _head_kernel(f_ref, w4_ref, b4_ref, w5_ref, b5_ref, w6_ref, b6_ref, out_ref):
    f = f_ref[...].astype(jnp.bfloat16)                    # (TB, 1024)
    h = _relu(jnp.dot(f, w4_ref[...],
                      preferred_element_type=jnp.float32) + b4_ref[...])
    h = _relu(jnp.dot(h.astype(jnp.bfloat16), w5_ref[...],
                      preferred_element_type=jnp.float32) + b5_ref[...])
    out_ref[...] = (jnp.dot(h.astype(jnp.bfloat16), w6_ref[...],
                            preferred_element_type=jnp.float32) + b6_ref[...])


# ----------------------------------------------------------------------------
# Parameter layout prep: bf16 matmul operands, f32 biases, padding, folds.
# ----------------------------------------------------------------------------
def _prep_params(params):
    (w1, b1, w2, b2, w3, b3, w4, b4, w5, b5, w6, b6) = params
    bf16 = jnp.bfloat16
    # conv1 weight (out, in); rounded through bf16 (mirrors the bf16-operand
    # reference) but kept f32 for the VPU multiply-adds.
    w1t = w1.T.astype(bf16).astype(jnp.float32)            # (64, C)
    b1c = b1.reshape(-1, 1).astype(jnp.float32)            # (64, 1)
    # fc3: lane-pad 9 -> 128 and fold the identity offset into the bias so the
    # output store is lane-dense.
    w6p = jnp.zeros((256, _LANES), jnp.float32).at[:, :9].set(w6).astype(bf16)
    iden = jnp.eye(3, dtype=jnp.float32).reshape(1, 9)
    b6p = jnp.zeros((1, _LANES), jnp.float32).at[:, :9].set(b6 + iden)
    return (w1t, b1c, w2.astype(bf16), b2, w3.astype(bf16), b3,
            w4.astype(bf16), b4, w5.astype(bf16), b5, w6p, b6p)


def _choose_point_tiling(B, N):
    """Pick (TB, tile_n, n_pad) minimizing padded work + grid-step overhead."""
    best = None
    for tile_n in range(_LANES, _MAX_TILE_N + 1, _LANES):
        n_pad = _round_up(N, tile_n)
        num_tiles = n_pad // tile_n
        cap = max(1, min(8, _MAX_ROWS // tile_n, B))
        # Batch block: minimize batch padding, prefer the largest among ties.
        tb = max(range(1, cap + 1), key=lambda t: (-_round_up(B, t), t))
        b_pad = _round_up(B, tb)
        steps = (b_pad // tb) * num_tiles
        # Rough cost in "row equivalents": MXU work + ~0.35us/step overhead.
        cost = b_pad * n_pad + steps * 1200
        if best is None or cost < best[0]:
            best = (cost, tb, tile_n, n_pad)
    return best[1], best[2], best[3]


def stn3d_forward(x_bcn, params):
    """x_bcn: (B, C, N) float32, exactly like the PyTorch Conv1d input."""
    B, C, N = x_bcn.shape
    (w1t, b1c, w2, b2, w3, b3, w4, b4, w5, b5, w6p, b6p) = _prep_params(params)

    tb, tile_n, n_pad = _choose_point_tiling(B, N)
    num_tiles = n_pad // tile_n
    b_pad_tb = _round_up(B, tb)
    num_bblocks = b_pad_tb // tb

    # bf16 cast (+ zero pad for ragged N / B); padded points/rows are masked
    # out of the max or sliced off below.
    x = x_bcn.astype(jnp.bfloat16)
    if (b_pad_tb, n_pad) != (B, N):
        x = jnp.pad(x, ((0, b_pad_tb - B), (0, 0), (0, n_pad - N)))

    conv_params = (w1t, b1c, w2, b2, w3, b3)
    head_params = (w4, b4, w5, b5, w6p, b6p)

    x_spec = pl.BlockSpec((tb, C, tile_n), lambda bb, t: (bb, 0, t))
    full2d = lambda a: pl.BlockSpec(a.shape, lambda bb, t: (0, 0))
    scratch = [] if num_tiles == 1 else [pltpu.VMEM((tb, 1024), jnp.float32)]
    conv_cparams = pltpu.CompilerParams(
        dimension_semantics=("parallel", "arbitrary"),
        vmem_limit_bytes=_VMEM_LIMIT)

    if B <= _FUSE_HEAD_MAX_B:
        # Small batch: single kernel, FC head fused into the finalize branch.
        out = pl.pallas_call(
            functools.partial(_stn_fused_kernel, n_points=N, num_tiles=num_tiles),
            out_shape=jax.ShapeDtypeStruct((num_bblocks, tb, _LANES), jnp.float32),
            grid_spec=pltpu.PrefetchScalarGridSpec(
                num_scalar_prefetch=0,
                grid=(num_bblocks, num_tiles),
                in_specs=[x_spec]
                         + [full2d(a) for a in conv_params + head_params],
                out_specs=pl.BlockSpec((1, tb, _LANES), lambda bb, t: (bb, 0, 0)),
                scratch_shapes=scratch),
            compiler_params=conv_cparams,
        )(x, *conv_params, *head_params)
        out9 = out.reshape(b_pad_tb, _LANES)[:B, :9]
    else:
        # Large batch: pooled features first, then a batched FC head so the
        # head matmuls get a full M dimension on the MXU.
        feat = pl.pallas_call(
            functools.partial(_point_feat_kernel, n_points=N, num_tiles=num_tiles),
            out_shape=jax.ShapeDtypeStruct((num_bblocks, tb, 1024), jnp.float32),
            grid_spec=pltpu.PrefetchScalarGridSpec(
                num_scalar_prefetch=0,
                grid=(num_bblocks, num_tiles),
                in_specs=[x_spec] + [full2d(a) for a in conv_params],
                out_specs=pl.BlockSpec((1, tb, 1024), lambda bb, t: (bb, 0, 0)),
                scratch_shapes=scratch),
            compiler_params=conv_cparams,
        )(x, *conv_params)

        tile_b = min(256, _round_up(B, 8))
        b_pad = _round_up(B, tile_b)
        f = feat.reshape(b_pad_tb, 1024)
        if b_pad != b_pad_tb:
            f = jnp.pad(f[:B], ((0, b_pad - B), (0, 0)))
        out = pl.pallas_call(
            _head_kernel,
            out_shape=jax.ShapeDtypeStruct((b_pad, _LANES), jnp.float32),
            grid_spec=pltpu.PrefetchScalarGridSpec(
                num_scalar_prefetch=0,
                grid=(b_pad // tile_b,),
                in_specs=[pl.BlockSpec((tile_b, 1024), lambda i: (i, 0))]
                         + [pl.BlockSpec(a.shape, lambda i: (0, 0))
                            for a in head_params],
                out_specs=pl.BlockSpec((tile_b, _LANES), lambda i: (i, 0))),
            compiler_params=pltpu.CompilerParams(
                dimension_semantics=("parallel",),
                vmem_limit_bytes=_VMEM_LIMIT),
        )(f, *head_params)
        out9 = out[:B, :9]

    return out9.reshape(-1, 3, 3)


# ----------------------------------------------------------------------------
# Deterministic parameter construction (synthetic; eval-mode BN folded).
# ----------------------------------------------------------------------------
def init_params(key, channel):
    def linear(k, fan_in, fan_out):
        kw, kb = jax.random.split(k)
        bound = 1.0 / jnp.sqrt(fan_in)
        w = jax.random.uniform(kw, (fan_in, fan_out), jnp.float32, -bound, bound)
        b = jax.random.uniform(kb, (fan_out,), jnp.float32, -bound, bound)
        return w, b

    def bn_params(k, c):
        kg, kb = jax.random.split(k)
        gamma = 1.0 + 0.1 * jax.random.normal(kg, (c,), jnp.float32)
        beta = 0.1 * jax.random.normal(kb, (c,), jnp.float32)
        mean = jnp.zeros((c,), jnp.float32)   # running_mean
        var = jnp.ones((c,), jnp.float32)     # running_var
        return gamma, beta, mean, var

    def fold(w, b, gamma, beta, mean, var, eps=1e-5):
        s = gamma / jnp.sqrt(var + eps)
        return w * s[None, :], ((b - mean) * s + beta).reshape(1, -1)

    ks = jax.random.split(key, 11)
    w1, b1 = linear(ks[0], channel, 64)
    w2, b2 = linear(ks[1], 64, 128)
    w3, b3 = linear(ks[2], 128, 1024)
    w4, b4 = linear(ks[3], 1024, 512)
    w5, b5 = linear(ks[4], 512, 256)
    w6, b6 = linear(ks[5], 256, 9)

    w1, b1 = fold(w1, b1, *bn_params(ks[6], 64))
    w2, b2 = fold(w2, b2, *bn_params(ks[7], 128))
    w3, b3 = fold(w3, b3, *bn_params(ks[8], 1024))
    w4, b4 = fold(w4, b4, *bn_params(ks[9], 512))
    w5, b5 = fold(w5, b5, *bn_params(ks[10], 256))
    b6 = b6.reshape(1, -1)  # fc3 has no BN

    return (w1, b1, w2, b2, w3, b3, w4, b4, w5, b5, w6, b6)


def stn3d_reference(x_bcn, params, compute_dtype=jnp.float32):
    """Pure-JAX reference of the PyTorch forward (eval-mode BN).

    compute_dtype=bfloat16 mirrors the kernel's operand precision
    (bf16 operands, f32 accumulation)."""
    (w1, b1, w2, b2, w3, b3, w4, b4, w5, b5, w6, b6) = params
    cd = compute_dtype
    f32 = jnp.float32
    x = jnp.transpose(x_bcn, (0, 2, 1)).astype(cd)
    h = jax.nn.relu(jnp.einsum('bnc,cd->bnd', x, w1.astype(cd),
                               preferred_element_type=f32) + b1)
    h = jax.nn.relu(jnp.einsum('bnc,cd->bnd', h.astype(cd), w2.astype(cd),
                               preferred_element_type=f32) + b2)
    h = jax.nn.relu(jnp.einsum('bnc,cd->bnd', h.astype(cd), w3.astype(cd),
                               preferred_element_type=f32) + b3)
    f = jnp.max(h, axis=1)
    h = jax.nn.relu(jnp.dot(f.astype(cd), w4.astype(cd),
                            preferred_element_type=f32) + b4)
    h = jax.nn.relu(jnp.dot(h.astype(cd), w5.astype(cd),
                            preferred_element_type=f32) + b5)
    out = (jnp.dot(h.astype(cd), w6.astype(cd), preferred_element_type=f32)
           + b6 + jnp.eye(3, dtype=f32).reshape(1, 9))
    return out.reshape(-1, 3, 3)


if __name__ == "__main__":
    key = jax.random.PRNGKey(0)
    kx1, kx2, kx3, kp = jax.random.split(key, 4)

    C = 3
    params = init_params(kp, C)
    fwd = jax.jit(stn3d_forward)

    # Case 1: tiny shapes -> fused-head path, single point tile, masked tail.
    B1, N1 = 2, 16
    x1 = jax.random.normal(kx1, (B1, C, N1), jnp.float32)
    out1 = jax.block_until_ready(fwd(x1, params))
    assert out1.shape == (B1, 3, 3), out1.shape
    ref1_bf = stn3d_reference(x1, params, jnp.bfloat16)
    ref1_f32 = stn3d_reference(x1, params, jnp.float32)
    assert jnp.allclose(out1, ref1_bf, atol=5e-3, rtol=5e-3), (
        f"max abs err vs bf16-mirrored ref: {jnp.max(jnp.abs(out1 - ref1_bf))}")
    assert jnp.allclose(out1, ref1_f32, atol=1e-1, rtol=1e-1), (
        f"max abs err vs f32 ref: {jnp.max(jnp.abs(out1 - ref1_f32))}")

    # Case 2: larger batch, ragged point count -> batch-blocked point kernel
    # (TB>1) + batched-head path.
    B2, N2 = 80, 600
    x2 = jax.random.normal(kx2, (B2, C, N2), jnp.float32)
    out2 = jax.block_until_ready(fwd(x2, params))
    assert out2.shape == (B2, 3, 3), out2.shape
    ref2_bf = stn3d_reference(x2, params, jnp.bfloat16)
    assert jnp.allclose(out2, ref2_bf, atol=5e-3, rtol=5e-3), (
        f"max abs err vs bf16-mirrored ref: {jnp.max(jnp.abs(out2 - ref2_bf))}")

    # Case 3: multi-tile point axis with ragged tail -> exercises the running
    # max accumulator and the last-tile-only mask (lax.cond) path.
    B3, N3 = 4, 1300
    x3 = jax.random.normal(kx3, (B3, C, N3), jnp.float32)
    out3 = jax.block_until_ready(fwd(x3, params))
    assert out3.shape == (B3, 3, 3), out3.shape
    ref3_bf = stn3d_reference(x3, params, jnp.bfloat16)
    assert jnp.allclose(out3, ref3_bf, atol=5e-3, rtol=5e-3), (
        f"max abs err vs bf16-mirrored ref: {jnp.max(jnp.abs(out3 - ref3_bf))}")

    print("KERNEL_OK")
</pallas_src>

<mosaic_0001>
module attributes {stable_mosaic.version = 11 : i64} {
  func.func @_stn_fused_kernel(%arg0: i32, %arg1: i32, %arg2: memref<2x3x128xbf16, #tpu.memory_space<vmem>>, %arg3: memref<64x3xf32, #tpu.memory_space<vmem>>, %arg4: memref<64x1xf32, #tpu.memory_space<vmem>>, %arg5: memref<64x128xbf16, #tpu.memory_space<vmem>>, %arg6: memref<1x128xf32, #tpu.memory_space<vmem>>, %arg7: memref<128x1024xbf16, #tpu.memory_space<vmem>>, %arg8: memref<1x1024xf32, #tpu.memory_space<vmem>>, %arg9: memref<1024x512xbf16, #tpu.memory_space<vmem>>, %arg10: memref<1x512xf32, #tpu.memory_space<vmem>>, %arg11: memref<512x256xbf16, #tpu.memory_space<vmem>>, %arg12: memref<1x256xf32, #tpu.memory_space<vmem>>, %arg13: memref<256x128xbf16, #tpu.memory_space<vmem>>, %arg14: memref<1x128xf32, #tpu.memory_space<vmem>>, %arg15: memref<1x2x128xf32, #tpu.memory_space<vmem>>) attributes {dimension_semantics = [#tpu.dimension_semantics<parallel>, #tpu.dimension_semantics<arbitrary>], iteration_bounds = array<i64: 1, 1>, scalar_prefetch = 0 : i64, scratch_operands = 0 : i64, tpu.core_type = #tpu.core_type<tc>, window_params = [{transform_indices = @transform_0, window_bounds = array<i64: 2, 3, 128>}, {pipeline_mode = #tpu.pipeline_mode<synchronous>, transform_indices = @transform_1, window_bounds = array<i64: 64, 3>}, {pipeline_mode = #tpu.pipeline_mode<synchronous>, transform_indices = @transform_2, window_bounds = array<i64: 64, 1>}, {pipeline_mode = #tpu.pipeline_mode<synchronous>, transform_indices = @transform_3, window_bounds = array<i64: 64, 128>}, {pipeline_mode = #tpu.pipeline_mode<synchronous>, transform_indices = @transform_4, window_bounds = array<i64: 1, 128>}, {pipeline_mode = #tpu.pipeline_mode<synchronous>, transform_indices = @transform_5, window_bounds = array<i64: 128, 1024>}, {pipeline_mode = #tpu.pipeline_mode<synchronous>, transform_indices = @transform_6, window_bounds = array<i64: 1, 1024>}, {pipeline_mode = #tpu.pipeline_mode<synchronous>, transform_indices = @transform_7, window_bounds = array<i64: 1024, 512>}, {pipeline_mode = #tpu.pipeline_mode<synchronous>, transform_indices = @transform_8, window_bounds = array<i64: 1, 512>}, {pipeline_mode = #tpu.pipeline_mode<synchronous>, transform_indices = @transform_9, window_bounds = array<i64: 512, 256>}, {pipeline_mode = #tpu.pipeline_mode<synchronous>, transform_indices = @transform_10, window_bounds = array<i64: 1, 256>}, {pipeline_mode = #tpu.pipeline_mode<synchronous>, transform_indices = @transform_11, window_bounds = array<i64: 256, 128>}, {pipeline_mode = #tpu.pipeline_mode<synchronous>, transform_indices = @transform_12, window_bounds = array<i64: 1, 128>}, {transform_indices = @transform_13, window_bounds = array<i64: 1, 2, 128>}]} {
    %c0 = arith.constant 0 : index
    %c0_0 = arith.constant 0 : index
    %c0_1 = arith.constant 0 : index
    %0 = vector.load %arg2[%c0, %c0_0, %c0_1] : memref<2x3x128xbf16, #tpu.memory_space<vmem>>, vector<2x3x128xbf16>
    %1 = arith.extf %0 : vector<2x3x128xbf16> to vector<2x3x128xf32>
    %c0_2 = arith.constant 0 : index
    %c0_3 = arith.constant 0 : index
    %2 = vector.load %arg3[%c0_2, %c0_3] : memref<64x3xf32, #tpu.memory_space<vmem>>, vector<64x3xf32>
    %3 = vector.extract_strided_slice %2 {offsets = [0, 0], sizes = [64, 1], strides = [1, 1]} : vector<64x3xf32> to vector<64x1xf32>
    %4 = vector.shape_cast %3 : vector<64x1xf32> to vector<1x64x1xf32>
    %5 = vector.extract_strided_slice %1 {offsets = [0, 0, 0], sizes = [2, 1, 128], strides = [1, 1, 1]} : vector<2x3x128xf32> to vector<2x1x128xf32>
    %6 = vector.broadcast %4 : vector<1x64x1xf32> to vector<2x64x128xf32>
    %7 = vector.broadcast %5 : vector<2x1x128xf32> to vector<2x64x128xf32>
    %8 = arith.mulf %6, %7 : vector<2x64x128xf32>
    %9 = vector.extract_strided_slice %2 {offsets = [0, 1], sizes = [64, 1], strides = [1, 1]} : vector<64x3xf32> to vector<64x1xf32>
    %10 = vector.shape_cast %9 : vector<64x1xf32> to vector<1x64x1xf32>
    %11 = vector.extract_strided_slice %1 {offsets = [0, 1, 0], sizes = [2, 1, 128], strides = [1, 1, 1]} : vector<2x3x128xf32> to vector<2x1x128xf32>
    %12 = vector.broadcast %10 : vector<1x64x1xf32> to vector<2x64x128xf32>
    %13 = vector.broadcast %11 : vector<2x1x128xf32> to vector<2x64x128xf32>
    %14 = arith.mulf %12, %13 : vector<2x64x128xf32>
    %15 = arith.addf %8, %14 : vector<2x64x128xf32>
    %16 = vector.extract_strided_slice %2 {offsets = [0, 2], sizes = [64, 1], strides = [1, 1]} : vector<64x3xf32> to vector<64x1xf32>
    %17 = vector.shape_cast %16 : vector<64x1xf32> to vector<1x64x1xf32>
    %18 = vector.extract_strided_slice %1 {offsets = [0, 2, 0], sizes = [2, 1, 128], strides = [1, 1, 1]} : vector<2x3x128xf32> to vector<2x1x128xf32>
    %19 = vector.broadcast %17 : vector<1x64x1xf32> to vector<2x64x128xf32>
    %20 = vector.broadcast %18 : vector<2x1x128xf32> to vector<2x64x128xf32>
    %21 = arith.mulf %19, %20 : vector<2x64x128xf32>
    %22 = arith.addf %15, %21 : vector<2x64x128xf32>
    %c0_4 = arith.constant 0 : index
    %c0_5 = arith.constant 0 : index
    %23 = vector.load %arg4[%c0_4, %c0_5] : memref<64x1xf32, #tpu.memory_space<vmem>>, vector<64x1xf32>
    %24 = vector.shape_cast %23 : vector<64x1xf32> to vector<1x64x1xf32>
    %25 = vector.broadcast %24 : vector<1x64x1xf32> to vector<2x64x128xf32>
    %26 = arith.addf %22, %25 : vector<2x64x128xf32>
    %cst = arith.constant 0.000000e+00 : f32
    %27 = vector.broadcast %cst : f32 to vector<2x64x128xf32>
    %28 = arith.maximumf %26, %27 : vector<2x64x128xf32>
    %29 = arith.truncf %28 : vector<2x64x128xf32> to vector<2x64x128xbf16>
    %30 = tpu.transpose %29, [0, 2, 1] : vector<2x64x128xbf16> -> vector<2x128x64xbf16>
    %31 = vector.shape_cast %30 : vector<2x128x64xbf16> to vector<256x64xbf16>
    %c0_6 = arith.constant 0 : index
    %c0_7 = arith.constant 0 : index
    %32 = vector.load %arg5[%c0_6, %c0_7] : memref<64x128xbf16, #tpu.memory_space<vmem>>, vector<64x128xbf16>
    %cst_8 = arith.constant dense<0.000000e+00> : vector<256x128xf32>
    %33 = tpu.matmul %31, %32, %cst_8 {dimension_numbers = #tpu.dot_dimension_numbers<[1], [0], [0], [1], [0, 0, 1, 1], [], []>} : vector<256x64xbf16>, vector<64x128xbf16>, vector<256x128xf32> -> vector<256x128xf32>
    %c0_9 = arith.constant 0 : index
    %c0_10 = arith.constant 0 : index
    %34 = vector.load %arg6[%c0_9, %c0_10] : memref<1x128xf32, #tpu.memory_space<vmem>>, vector<1x128xf32>
    %35 = vector.broadcast %34 : vector<1x128xf32> to vector<256x128xf32>
    %36 = arith.addf %33, %35 : vector<256x128xf32>
    %cst_11 = arith.constant 0.000000e+00 : f32
    %37 = vector.broadcast %cst_11 : f32 to vector<256x128xf32>
    %38 = arith.maximumf %36, %37 : vector<256x128xf32>
    %39 = arith.truncf %38 : vector<256x128xf32> to vector<256x128xbf16>
    %c0_12 = arith.constant 0 : index
    %c0_13 = arith.constant 0 : index
    %40 = vector.load %arg7[%c0_12, %c0_13] : memref<128x1024xbf16, #tpu.memory_space<vmem>>, vector<128x256xbf16>
    %c0_14 = arith.constant 0 : index
    %c0_15 = arith.constant 0 : index
    %41 = vector.load %arg8[%c0_14, %c0_15] : memref<1x1024xf32, #tpu.memory_space<vmem>>, vector<1x256xf32>
    %cst_16 = arith.constant dense<0.000000e+00> : vector<256x256xf32>
    %42 = tpu.matmul %39, %40, %cst_16 {dimension_numbers = #tpu.dot_dimension_numbers<[1], [0], [0], [1], [0, 0, 1, 1], [], []>} : vector<256x128xbf16>, vector<128x256xbf16>, vector<256x256xf32> -> vector<256x256xf32>
    %43 = vector.broadcast %41 : vector<1x256xf32> to vector<256x256xf32>
    %44 = arith.addf %42, %43 : vector<256x256xf32>
    %cst_17 = arith.constant 0.000000e+00 : f32
    %45 = vector.broadcast %cst_17 : f32 to vector<256x256xf32>
    %46 = arith.maximumf %44, %45 : vector<256x256xf32>
    %47 = vector.shape_cast %46 : vector<256x256xf32> to vector<2x128x256xf32>
    %c128_i32 = arith.constant 128 : i32
    %48 = arith.muli %arg1, %c128_i32 : i32
    %49 = tpu.iota {dimensions = array<i32: 1>} : vector<1x128x1xi32>
    %50 = vector.broadcast %48 : i32 to vector<1x128x1xi32>
    %51 = arith.addi %50, %49 : vector<1x128x1xi32>
    %c16_i32 = arith.constant 16 : i32
    %52 = vector.broadcast %c16_i32 : i32 to vector<1x128x1xi32>
    %53 = arith.cmpi slt, %51, %52 : vector<1x128x1xi32>
    %cst_18 = arith.constant 0.000000e+00 : f32
    %54 = vector.shape_cast %53 : vector<1x128x1xi1> to vector<1x128x1xi1>
    %55 = vector.broadcast %54 : vector<1x128x1xi1> to vector<2x128x256xi1>
    %56 = vector.broadcast %cst_18 : f32 to vector<2x128x256xf32>
    %57 = arith.select %55, %47, %56 : vector<2x128x256xi1>, vector<2x128x256xf32>
    %cst_19 = arith.constant dense<0xFF800000> : vector<2x256xf32>
    %58 = vector.multi_reduction <maximumf>, %57, %cst_19 [1] : vector<2x128x256xf32> to vector<2x256xf32>
    %c0_20 = arith.constant 0 : index
    %c256 = arith.constant 256 : index
    %59 = vector.load %arg7[%c0_20, %c256] : memref<128x1024xbf16, #tpu.memory_space<vmem>>, vector<128x256xbf16>
    %c0_21 = arith.constant 0 : index
    %c256_22 = arith.constant 256 : index
    %60 = vector.load %arg8[%c0_21, %c256_22] : memref<1x1024xf32, #tpu.memory_space<vmem>>, vector<1x256xf32>
    %cst_23 = arith.constant dense<0.000000e+00> : vector<256x256xf32>
    %61 = tpu.matmul %39, %59, %cst_23 {dimension_numbers = #tpu.dot_dimension_numbers<[1], [0], [0], [1], [0, 0, 1, 1], [], []>} : vector<256x128xbf16>, vector<128x256xbf16>, vector<256x256xf32> -> vector<256x256xf32>
    %62 = vector.broadcast %60 : vector<1x256xf32> to vector<256x256xf32>
    %63 = arith.addf %61, %62 : vector<256x256xf32>
    %cst_24 = arith.constant 0.000000e+00 : f32
    %64 = vector.broadcast %cst_24 : f32 to vector<256x256xf32>
    %65 = arith.maximumf %63, %64 : vector<256x256xf32>
    %66 = vector.shape_cast %65 : vector<256x256xf32> to vector<2x128x256xf32>
    %c128_i32_25 = arith.constant 128 : i32
    %67 = arith.muli %arg1, %c128_i32_25 : i32
    %68 = tpu.iota {dimensions = array<i32: 1>} : vector<1x128x1xi32>
    %69 = vector.broadcast %67 : i32 to vector<1x128x1xi32>
    %70 = arith.addi %69, %68 : vector<1x128x1xi32>
    %c16_i32_26 = arith.constant 16 : i32
    %71 = vector.broadcast %c16_i32_26 : i32 to vector<1x128x1xi32>
    %72 = arith.cmpi slt, %70, %71 : vector<1x128x1xi32>
    %cst_27 = arith.constant 0.000000e+00 : f32
    %73 = vector.shape_cast %72 : vector<1x128x1xi1> to vector<1x128x1xi1>
    %74 = vector.broadcast %73 : vector<1x128x1xi1> to vector<2x128x256xi1>
    %75 = vector.broadcast %cst_27 : f32 to vector<2x128x256xf32>
    %76 = arith.select %74, %66, %75 : vector<2x128x256xi1>, vector<2x128x256xf32>
    %cst_28 = arith.constant dense<0xFF800000> : vector<2x256xf32>
    %77 = vector.multi_reduction <maximumf>, %76, %cst_28 [1] : vector<2x128x256xf32> to vector<2x256xf32>
    %c0_29 = arith.constant 0 : index
    %c512 = arith.constant 512 : index
    %78 = vector.load %arg7[%c0_29, %c512] : memref<128x1024xbf16, #tpu.memory_space<vmem>>, vector<128x256xbf16>
    %c0_30 = arith.constant 0 : index
    %c512_31 = arith.constant 512 : index
    %79 = vector.load %arg8[%c0_30, %c512_31] : memref<1x1024xf32, #tpu.memory_space<vmem>>, vector<1x256xf32>
    %cst_32 = arith.constant dense<0.000000e+00> : vector<256x256xf32>
    %80 = tpu.matmul %39, %78, %cst_32 {dimension_numbers = #tpu.dot_dimension_numbers<[1], [0], [0], [1], [0, 0, 1, 1], [], []>} : vector<256x128xbf16>, vector<128x256xbf16>, vector<256x256xf32> -> vector<256x256xf32>
    %81 = vector.broadcast %79 : vector<1x256xf32> to vector<256x256xf32>
    %82 = arith.addf %80, %81 : vector<256x256xf32>
    %cst_33 = arith.constant 0.000000e+00 : f32
    %83 = vector.broadcast %cst_33 : f32 to vector<256x256xf32>
    %84 = arith.maximumf %82, %83 : vector<256x256xf32>
    %85 = vector.shape_cast %84 : vector<256x256xf32> to vector<2x128x256xf32>
    %c128_i32_34 = arith.constant 128 : i32
    %86 = arith.muli %arg1, %c128_i32_34 : i32
    %87 = tpu.iota {dimensions = array<i32: 1>} : vector<1x128x1xi32>
    %88 = vector.broadcast %86 : i32 to vector<1x128x1xi32>
    %89 = arith.addi %88, %87 : vector<1x128x1xi32>
    %c16_i32_35 = arith.constant 16 : i32
    %90 = vector.broadcast %c16_i32_35 : i32 to vector<1x128x1xi32>
    %91 = arith.cmpi slt, %89, %90 : vector<1x128x1xi32>
    %cst_36 = arith.constant 0.000000e+00 : f32
    %92 = vector.shape_cast %91 : vector<1x128x1xi1> to vector<1x128x1xi1>
    %93 = vector.broadcast %92 : vector<1x128x1xi1> to vector<2x128x256xi1>
    %94 = vector.broadcast %cst_36 : f32 to vector<2x128x256xf32>
    %95 = arith.select %93, %85, %94 : vector<2x128x256xi1>, vector<2x128x256xf32>
    %cst_37 = arith.constant dense<0xFF800000> : vector<2x256xf32>
    %96 = vector.multi_reduction <maximumf>, %95, %cst_37 [1] : vector<2x128x256xf32> to vector<2x256xf32>
    %c0_38 = arith.constant 0 : index
    %c768 = arith.constant 768 : index
    %97 = vector.load %arg7[%c0_38, %c768] : memref<128x1024xbf16, #tpu.memory_space<vmem>>, vector<128x256xbf16>
    %c0_39 = arith.constant 0 : index
    %c768_40 = arith.constant 768 : index
    %98 = vector.load %arg8[%c0_39, %c768_40] : memref<1x1024xf32, #tpu.memory_space<vmem>>, vector<1x256xf32>
    %cst_41 = arith.constant dense<0.000000e+00> : vector<256x256xf32>
    %99 = tpu.matmul %39, %97, %cst_41 {dimension_numbers = #tpu.dot_dimension_numbers<[1], [0], [0], [1], [0, 0, 1, 1], [], []>} : vector<256x128xbf16>, vector<128x256xbf16>, vector<256x256xf32> -> vector<256x256xf32>
    %100 = vector.broadcast %98 : vector<1x256xf32> to vector<256x256xf32>
    %101 = arith.addf %99, %100 : vector<256x256xf32>
    %cst_42 = arith.constant 0.000000e+00 : f32
    %102 = vector.broadcast %cst_42 : f32 to vector<256x256xf32>
    %103 = arith.maximumf %101, %102 : vector<256x256xf32>
    %104 = vector.shape_cast %103 : vector<256x256xf32> to vector<2x128x256xf32>
    %c128_i32_43 = arith.constant 128 : i32
    %105 = arith.muli %arg1, %c128_i32_43 : i32
    %106 = tpu.iota {dimensions = array<i32: 1>} : vector<1x128x1xi32>
    %107 = vector.broadcast %105 : i32 to vector<1x128x1xi32>
    %108 = arith.addi %107, %106 : vector<1x128x1xi32>
    %c16_i32_44 = arith.constant 16 : i32
    %109 = vector.broadcast %c16_i32_44 : i32 to vector<1x128x1xi32>
    %110 = arith.cmpi slt, %108, %109 : vector<1x128x1xi32>
    %cst_45 = arith.constant 0.000000e+00 : f32
    %111 = vector.shape_cast %110 : vector<1x128x1xi1> to vector<1x128x1xi1>
    %112 = vector.broadcast %111 : vector<1x128x1xi1> to vector<2x128x256xi1>
    %113 = vector.broadcast %cst_45 : f32 to vector<2x128x256xf32>
    %114 = arith.select %112, %104, %113 : vector<2x128x256xi1>, vector<2x128x256xf32>
    %cst_46 = arith.constant dense<0xFF800000> : vector<2x256xf32>
    %115 = vector.multi_reduction <maximumf>, %114, %cst_46 [1] : vector<2x128x256xf32> to vector<2x256xf32>
    %116 = tpu.concatenate %58, %77, %96, %115 in 1 : vector<2x256xf32>, vector<2x256xf32>, vector<2x256xf32>, vector<2x256xf32> -> vector<2x1024xf32>
    %117 = arith.truncf %116 : vector<2x1024xf32> to vector<2x1024xbf16>
    %c0_47 = arith.constant 0 : index
    %c0_48 = arith.constant 0 : index
    %118 = vector.load %arg9[%c0_47, %c0_48] : memref<1024x512xbf16, #tpu.memory_space<vmem>>, vector<1024x512xbf16>
    %cst_49 = arith.constant dense<0.000000e+00> : vector<2x512xf32>
    %119 = tpu.matmul %117, %118, %cst_49 {dimension_numbers = #tpu.dot_dimension_numbers<[1], [0], [0], [1], [0, 0, 1, 1], [], []>} : vector<2x1024xbf16>, vector<1024x512xbf16>, vector<2x512xf32> -> vector<2x512xf32>
    %c0_50 = arith.constant 0 : index
    %c0_51 = arith.constant 0 : index
    %120 = vector.load %arg10[%c0_50, %c0_51] : memref<1x512xf32, #tpu.memory_space<vmem>>, vector<1x512xf32>
    %121 = vector.broadcast %120 : vector<1x512xf32> to vector<2x512xf32>
    %122 = arith.addf %119, %121 : vector<2x512xf32>
    %cst_52 = arith.constant 0.000000e+00 : f32
    %123 = vector.broadcast %cst_52 : f32 to vector<2x512xf32>
    %124 = arith.maximumf %122, %123 : vector<2x512xf32>
    %125 = arith.truncf %124 : vector<2x512xf32> to vector<2x512xbf16>
    %c0_53 = arith.constant 0 : index
    %c0_54 = arith.constant 0 : index
    %126 = vector.load %arg11[%c0_53, %c0_54] : memref<512x256xbf16, #tpu.memory_space<vmem>>, vector<512x256xbf16>
    %cst_55 = arith.constant dense<0.000000e+00> : vector<2x256xf32>
    %127 = tpu.matmul %125, %126, %cst_55 {dimension_numbers = #tpu.dot_dimension_numbers<[1], [0], [0], [1], [0, 0, 1, 1], [], []>} : vector<2x512xbf16>, vector<512x256xbf16>, vector<2x256xf32> -> vector<2x256xf32>
    %c0_56 = arith.constant 0 : index
    %c0_57 = arith.constant 0 : index
    %128 = vector.load %arg12[%c0_56, %c0_57] : memref<1x256xf32, #tpu.memory_space<vmem>>, vector<1x256xf32>
    %129 = vector.broadcast %128 : vector<1x256xf32> to vector<2x256xf32>
    %130 = arith.addf %127, %129 : vector<2x256xf32>
    %cst_58 = arith.constant 0.000000e+00 : f32
    %131 = vector.broadcast %cst_58 : f32 to vector<2x256xf32>
    %132 = arith.maximumf %130, %131 : vector<2x256xf32>
    %133 = arith.truncf %132 : vector<2x256xf32> to vector<2x256xbf16>
    %c0_59 = arith.constant 0 : index
    %c0_60 = arith.constant 0 : index
    %134 = vector.load %arg13[%c0_59, %c0_60] : memref<256x128xbf16, #tpu.memory_space<vmem>>, vector<256x128xbf16>
    %cst_61 = arith.constant dense<0.000000e+00> : vector<2x128xf32>
    %135 = tpu.matmul %133, %134, %cst_61 {dimension_numbers = #tpu.dot_dimension_numbers<[1], [0], [0], [1], [0, 0, 1, 1], [], []>} : vector<2x256xbf16>, vector<256x128xbf16>, vector<2x128xf32> -> vector<2x128xf32>
    %c0_62 = arith.constant 0 : index
    %c0_63 = arith.constant 0 : index
    %136 = vector.load %arg14[%c0_62, %c0_63] : memref<1x128xf32, #tpu.memory_space<vmem>>, vector<1x128xf32>
    %137 = vector.broadcast %136 : vector<1x128xf32> to vector<2x128xf32>
    %138 = arith.addf %135, %137 : vector<2x128xf32>
    %c0_64 = arith.constant 0 : index
    %c0_65 = arith.constant 0 : index
    %c0_66 = arith.constant 0 : index
    %139 = vector.load %arg15[%c0_64, %c0_65, %c0_66] : memref<1x2x128xf32, #tpu.memory_space<vmem>>, vector<1x2x128xf32>
    %140 = vector.shape_cast %139 : vector<1x2x128xf32> to vector<2x128xf32>
    %141 = vector.shape_cast %138 : vector<2x128xf32> to vector<1x2x128xf32>
    tpu.vector_store %arg15[%c0_64, %c0_65, %c0_66], %141 {strides = array<i32>} : memref<1x2x128xf32, #tpu.memory_space<vmem>>, vector<1x2x128xf32>,
    return
  }
  func.func @transform_0(%arg0: i32, %arg1: i32) -> (i32, i32, i32) {
    %c0_i32 = arith.constant 0 : i32
    %c0_i32_0 = arith.constant 0 : i32
    return %arg0, %c0_i32, %arg1 : i32, i32, i32
  }
  func.func @transform_1(%arg0: i32, %arg1: i32) -> (i32, i32) {
    %c0_i32 = arith.constant 0 : i32
    %c0_i32_0 = arith.constant 0 : i32
    %c0_i32_1 = arith.constant 0 : i32
    return %c0_i32, %c0_i32_0 : i32, i32
  }
  func.func @transform_2(%arg0: i32, %arg1: i32) -> (i32, i32) {
    %c0_i32 = arith.constant 0 : i32
    %c0_i32_0 = arith.constant 0 : i32
    %c0_i32_1 = arith.constant 0 : i32
    return %c0_i32, %c0_i32_0 : i32, i32
  }
  func.func @transform_3(%arg0: i32, %arg1: i32) -> (i32, i32) {
    %c0_i32 = arith.constant 0 : i32
    %c0_i32_0 = arith.constant 0 : i32
    %c0_i32_1 = arith.constant 0 : i32
    return %c0_i32, %c0_i32_0 : i32, i32
  }
  func.func @transform_4(%arg0: i32, %arg1: i32) -> (i32, i32) {
    %c0_i32 = arith.constant 0 : i32
    %c0_i32_0 = arith.constant 0 : i32
    %c0_i32_1 = arith.constant 0 : i32
    return %c0_i32, %c0_i32_0 : i32, i32
  }
  func.func @transform_5(%arg0: i32, %arg1: i32) -> (i32, i32) {
    %c0_i32 = arith.constant 0 : i32
    %c0_i32_0 = arith.constant 0 : i32
    %c0_i32_1 = arith.constant 0 : i32
    return %c0_i32, %c0_i32_0 : i32, i32
  }
  func.func @transform_6(%arg0: i32, %arg1: i32) -> (i32, i32) {
    %c0_i32 = arith.constant 0 : i32
    %c0_i32_0 = arith.constant 0 : i32
    %c0_i32_1 = arith.constant 0 : i32
    return %c0_i32, %c0_i32_0 : i32, i32
  }
  func.func @transform_7(%arg0: i32, %arg1: i32) -> (i32, i32) {
    %c0_i32 = arith.constant 0 : i32
    %c0_i32_0 = arith.constant 0 : i32
    %c0_i32_1 = arith.constant 0 : i32
    return %c0_i32, %c0_i32_0 : i32, i32
  }
  func.func @transform_8(%arg0: i32, %arg1: i32) -> (i32, i32) {
    %c0_i32 = arith.constant 0 : i32
    %c0_i32_0 = arith.constant 0 : i32
    %c0_i32_1 = arith.constant 0 : i32
    return %c0_i32, %c0_i32_0 : i32, i32
  }
  func.func @transform_9(%arg0: i32, %arg1: i32) -> (i32, i32) {
    %c0_i32 = arith.constant 0 : i32
    %c0_i32_0 = arith.constant 0 : i32
    %c0_i32_1 = arith.constant 0 : i32
    return %c0_i32, %c0_i32_0 : i32, i32
  }
  func.func @transform_10(%arg0: i32, %arg1: i32) -> (i32, i32) {
    %c0_i32 = arith.constant 0 : i32
    %c0_i32_0 = arith.constant 0 : i32
    %c0_i32_1 = arith.constant 0 : i32
    return %c0_i32, %c0_i32_0 : i32, i32
  }
  func.func @transform_11(%arg0: i32, %arg1: i32) -> (i32, i32) {
    %c0_i32 = arith.constant 0 : i32
    %c0_i32_0 = arith.constant 0 : i32
    %c0_i32_1 = arith.constant 0 : i32
    return %c0_i32, %c0_i32_0 : i32, i32
  }
  func.func @transform_12(%arg0: i32, %arg1: i32) -> (i32, i32) {
    %c0_i32 = arith.constant 0 : i32
    %c0_i32_0 = arith.constant 0 : i32
    %c0_i32_1 = arith.constant 0 : i32
    return %c0_i32, %c0_i32_0 : i32, i32
  }
  func.func @transform_13(%arg0: i32, %arg1: i32) -> (i32, i32, i32) {
    %c0_i32 = arith.constant 0 : i32
    %c0_i32_0 = arith.constant 0 : i32
    %c0_i32_1 = arith.constant 0 : i32
    return %arg0, %c0_i32, %c0_i32_0 : i32, i32, i32
  }
}

</mosaic_0001>

<bundles_post_ra>
// kernel: stn3d_forward.1
= control target key start
LH: loop header
LB: loop body
LE: loop exit
PB: predicated region body
PF: predicated region fallthrough
CT: control target
= control target key end

     0   :  { %v6437_v0 = vmov 1   ;;  %v6438_v5 = vmov 0   ;;  %v6439_v8 = vmov 2   ;;  %v97_v38 = vlaneseq  ;;  %s8283_s1 = inlined_call_operand.vmem [shape: f32[64,3], index: 1, kind: input, shape index: {}]   ;;  %s8284_s2 = inlined_call_operand.vmem [shape: f32[64,1], index: 2, kind: input, shape index: {}]   ;;  %s8285_s3 = inlined_call_operand.vmem [shape: bf16[64,128], index: 3, kind: input, shape index: {}]   ;;  %s8286_s0 = inlined_call_operand.vmem [shape: bf16[2,3,128], index: 0, kind: input, shape index: {}]   ;;  %s8287_s5 = inlined_call_operand.vmem [shape: bf16[128,1024], index: 5, kind: input, shape index: {}]   ;;  %s8288_s4 = inlined_call_operand.vmem [shape: f32[1,128], index: 4, kind: input, shape index: {}]   ;;  %s8289_s7 = inlined_call_operand.vmem [shape: bf16[1024,512], index: 7, kind: input, shape index: {}]   ;;  %s8290_s6 = inlined_call_operand.vmem [shape: f32[1,1024], index: 6, kind: input, shape index: {}]   ;;  %s8291_s9 = inlined_call_operand.vmem [shape: bf16[512,256], index: 9, kind: input, shape index: {}]   ;;  %s8292_s8 = inlined_call_operand.vmem [shape: f32[1,512], index: 8, kind: input, shape index: {}]   ;;  %s8293_s11 = inlined_call_operand.vmem [shape: bf16[256,128], index: 11, kind: input, shape index: {}]   ;;  %s8294_s10 = inlined_call_operand.vmem [shape: f32[1,256], index: 10, kind: input, shape index: {}]   ;;  %s8295_s12 = inlined_call_operand.vmem [shape: f32[1,128], index: 12, kind: input, shape index: {}]   ;;  %s8296_s13 = inlined_call_operand.vmem [shape: f32[1,2,128], index: 13, kind: output, shape index: {}]  }
   0x1   :  { %5923 = vset.pattern.permute.xlu0 %v6437_v0  ;;  %5921 = vset.pattern.permute.xlu1 %v6437_v0  ;;  %v51_v1 = vld [vmem:[%s8283_s1 + $0x10] sm:$0xff]  ;;  %v49_v2 = vld [vmem:[%s8283_s1] sm:$0xff]  ;;  %v50_v4 = vld [vmem:[%s8283_s1 + $0x8] sm:$0xff]  ;;  %vm424_vm0 = vcmask 523264   ;;  %vm2821_vm1 = vcmask 1041409  }
   0x2   :  { %130 = vperm.xlu0 %5923, %v51_v1   ;;  %122 = vperm.xlu1 %5921, %v49_v2   ;;  %v53_v3 = vld [vmem:[%s8283_s1 + $0x20] sm:$0xff]  ;;  %v55_v6 = vld [vmem:[%s8283_s1 + $0x30] sm:$0xff]  ;;  %v52_v7 = vld [vmem:[%s8283_s1 + $0x18] sm:$0xff]  ;;  %v6594_v40 = vshrl.u32 %v97_v38, 7 }
   0x3   :  { %822 = vmatprep.mubr.bf16.mxu1 %v6438_v5  ;;  %v54_v9 = vld [vmem:[%s8283_s1 + $0x28] sm:$0xff]  ;;  %v267_v10 = vld [vmem:[%s8284_s2 + $0x10] sm:$0xff]  ;;  %v56_v12 = vld [vmem:[%s8283_s1 + $0x38] sm:$0xff] }
   0x4   :  { %v270_v11 = vld [vmem:[%s8284_s2 + $0x28] sm:$0xff]  ;;  %v272_v13 = vld [vmem:[%s8284_s2 + $0x38] sm:$0xff]  ;;  %v265_v14 = vld [vmem:[%s8284_s2] sm:$0xff]  ;;  %v6605_v45 = vsub.s32 1, %v6594_v40  ;;  %v6608_v48 = vsub.s32 0, %v6594_v40  ;;  %v6614_v50 = vsub.s32 2, %v6594_v40 }
   0x5   :  { %v266_v15 = vld [vmem:[%s8284_s2 + $0x8] sm:$0xff]  ;;  %v268_v16 = vld [vmem:[%s8284_s2 + $0x18] sm:$0xff]  ;;  %v269_v17 = vld [vmem:[%s8284_s2 + $0x20] sm:$0xff] }
   0x6   :  { %138 = vperm.xlu0 %5923, %v53_v3   ;;  %126 = vperm.xlu1 %5921, %v50_v4   ;;  %v271_v18 = vld [vmem:[%s8284_s2 + $0x30] sm:$0xff]  ;;  %v5937_v19 = vld [vmem:[%s8285_s3 + $0x18] sm:$0xff]   ;;  %v5939_v21 = vld [vmem:[%s8285_s3 + $0x8] sm:$0xff]  }
   0x7   :  { %v5938_v20 = vld [vmem:[%s8285_s3 + $0x10] sm:$0xff]   ;;  %5878 = vmatprep.subr.bf16.mxu0 %v5937_v19  ;;  %v45_v41 = vld [vmem:[%s8286_s0] sm:$0x3]  ;;  %v46_v42 = vld [vmem:[%s8286_s0 + $0x2] sm:$0x3] }
   0x8   :  { %5879 = vmatpush3.bf16.msra.mxu0 %v5937_v19  ;;  %v47_v46 = vunpack.c.l.bf16 %v45_v41  ;;  %v48_v47 = vunpack.c.l.bf16 %v46_v42  ;;  %v5940_v49 = vld [vmem:[%s8285_s3] sm:$0xff]  }
   0x9   :  { %5880 = vmatprep.subr.bf16.mxu0 %v5938_v20 }
   0xa   :  { %146 = vperm.xlu0 %5923, %v55_v6   ;;  %5922 = vset.pattern.permute.xlu1 %v6438_v5  ;;  %v6617_v52 = vrot.slane %v47_v46, %v6605_v45  ;;  %v6620_v53 = vrot.slane %v48_v47, %v6605_v45  ;;  %v6625_v55 = vrot.slane %v47_v46, %v6608_v48 }
   0xb   :  { %74 = vperm.xlu1 %5922, %v52_v7   ;;  %v6628_v56 = vrot.slane %v48_v47, %v6608_v48  ;;  %v6631_v57 = vrot.slane %v47_v46, %v6614_v50  ;;  %v6634_v58 = vrot.slane %v48_v47, %v6614_v50 }
   0xc   :  { %5881 = vmatpush3.bf16.msra.mxu0 %v5938_v20 }
   0xd   :  { %5882 = vmatprep.subr.bf16.mxu0 %v5939_v21 }
   0xe   :  { %5930 = vset.pattern.permute.xlu0 %v6439_v8 }
   0xf   :  { %198 = vperm.xlu0 %5930, %v50_v4   ;;  %5924 = vset.pattern.permute.xlu1 %v6437_v0 }
  0x10   :  { %134 = vperm.xlu1 %5924, %v52_v7   ;;  %5883 = vmatpush3.bf16.msra.mxu0 %v5939_v21 }
  0x11   :  { %5884 = vmatprep.subr.bf16.mxu0 %v5940_v49 }
  0x13   :  { %206 = vperm.xlu0 %5930, %v52_v7  }
  0x14   :  { %5925 = vset.pattern.permute.xlu1 %v6439_v8  ;;  %5885 = vmatpush3.bf16.msra.mxu0 %v5940_v49 }
  0x15   :  { %194 = vperm.xlu1 %5925, %v49_v2  }
  0x17   :  { %214 = vperm.xlu0 %5930, %v54_v9  }
  0x19   :  { %5926 = vset.pattern.permute.xlu1 %v6438_v5 }
  0x1a   :  { %79 = vperm.xlu1 %5926, %v53_v3  }
  0x1b   :  { %218 = vperm.xlu0 %5930, %v55_v6  }
  0x1e   :  { %84 = vperm.xlu1 %5926, %v54_v9  }
  0x1f   :  { %5934 = vset.pattern.permute.xlu0 %v6438_v5 }
  0x20   :  { %59 = vperm.xlu0 %5934, %v49_v2  }
  0x22   :  { %5927 = vset.pattern.permute.xlu1 %v6437_v0 }
  0x23   :  { %142 = vperm.xlu1 %5927, %v54_v9  }
  0x24   :  { %64 = vperm.xlu0 %5934, %v50_v4  }
  0x27   :  { %5928 = vset.pattern.permute.xlu1 %v6439_v8 }
  0x28   :  { %69 = vperm.xlu0 %5934, %v51_v1   ;;  %202 = vperm.xlu1 %5928, %v51_v1  }
  0x2c   :  { %285 = vperm.xlu0 %5934, %v267_v10   ;;  %5929 = vset.pattern.permute.xlu1 %v6438_v5 }
  0x2d   :  { %89 = vperm.xlu1 %5929, %v55_v6  }
  0x30   :  { %300 = vperm.xlu0 %5934, %v270_v11  }
  0x31   :  { %94 = vperm.xlu1 %5929, %v56_v12  }
  0x34   :  { %310 = vperm.xlu0 %5934, %v272_v13  }
  0x35   :  { %5931 = vset.pattern.permute.xlu1 %v6437_v0 }
  0x36   :  { %150 = vperm.xlu1 %5931, %v56_v12  }
  0x3a   :  { %5932 = vset.pattern.permute.xlu1 %v6439_v8 }
  0x3b   :  { %210 = vperm.xlu1 %5932, %v53_v3  }
  0x3f   :  { %5933 = vset.pattern.permute.xlu1 %v6438_v5 }
  0x40   :  { %275 = vperm.xlu1 %5933, %v265_v14  }
  0x44   :  { %280 = vperm.xlu1 %5933, %v266_v15  }
  0x48   :  { %5935 = vset.pattern.permute.xlu1 %v6439_v8 }
  0x49   :  { %222 = vperm.xlu1 %5935, %v56_v12  }
  0x4d   :  { %5936 = vset.pattern.permute.xlu1 %v6438_v5 }
  0x4e   :  { %290 = vperm.xlu1 %5936, %v268_v16  }
  0x52   :  { %295 = vperm.xlu1 %5936, %v269_v17  }
  0x56   :  { %305 = vperm.xlu1 %5936, %v271_v18  }
  0x7d   :  { %v123_v22 = vpop.permute.xlu1 %122  ;;  %v6574_v23 = vpop.permute.xlu0 %130 }
  0x7e   :  { %v161_v62 = vmul.f32 %v6617_v52, %v123_v22  ;;  %v169_v63 = vmul.f32 %v6620_v53, %v123_v22  ;;  %v163_v0 = vmul.f32 %v6617_v52, %v6574_v23 }
  0x81   :  { %v127_v24 = vpop.permute.xlu1 %126  ;;  %v6576_v25 = vpop.permute.xlu0 %138 }
  0x82   :  { %v162_v2 = vmul.f32 %v6617_v52, %v127_v24  ;;  %v170_v9 = vmul.f32 %v6620_v53, %v127_v24  ;;  %v173_v38 = vmul.f32 %v6620_v53, %v6576_v25 }
  0x85   :  { %v6578_v28 = vpop.permute.xlu0 %146 }
  0x86   :  { %v75_v26 = vpop.permute.xlu1 %74  ;;  %v175_v42 = vmul.f32 %v6620_v53, %v6578_v28 }
  0x87   :  { %v108_v3 = vmul.f32 %v6625_v55, %v75_v26  ;;  %v116_v10 = vmul.f32 %v6628_v56, %v75_v26 }
  0x8a   :  { %v199_v30 = vpop.permute.xlu0 %198 }
  0x8b   :  { %v135_v27 = vpop.permute.xlu1 %134  ;;  %v234_v11 = vmul.f32 %v6631_v57, %v199_v30  ;;  %v242_v12 = vmul.f32 %v6634_v58, %v199_v30  ;;  %v165_v30 = vmul.f32 %v6617_v52, %v6576_v25 }
  0x8c   :  { %v164_v59 = vmul.f32 %v6617_v52, %v135_v27  ;;  %v172_v1 = vmul.f32 %v6620_v53, %v135_v27  ;;  %v171_v27 = vmul.f32 %v6620_v53, %v6574_v23 }
  0x8e   :  { %v207_v32 = vpop.permute.xlu0 %206  ;;  %v180_v13 = vadd.f32 %v164_v59, %v108_v3  ;;  %v188_v17 = vadd.f32 %v172_v1, %v116_v10 }
  0x8f   :  { %v236_v14 = vmul.f32 %v6631_v57, %v207_v32  ;;  %v244_v18 = vmul.f32 %v6634_v58, %v207_v32  ;;  %v167_v32 = vmul.f32 %v6617_v52, %v6578_v28 }
  0x90   :  { %v195_v29 = vpop.permute.xlu1 %194 }
  0x91   :  { %v233_v21 = vmul.f32 %v6631_v57, %v195_v29  ;;  %v241_v22 = vmul.f32 %v6634_v58, %v195_v29  ;;  %v252_v46 = vadd.f32 %v236_v14, %v180_v13 }
  0x92   :  { %v6584_v34 = vpop.permute.xlu0 %214 }
  0x93   :  { %v238_v47 = vmul.f32 %v6631_v57, %v6584_v34 }
  0x95   :  { %v6580_v31 = vpop.permute.xlu1 %79 }
  0x96   :  { %v6590_v37 = vpop.permute.xlu0 %218  ;;  %v117_v3 = vmul.f32 %v6628_v56, %v6580_v31 }
  0x99   :  { %v6582_v33 = vpop.permute.xlu1 %84 }
  0x9b   :  { %v60_v43 = vpop.permute.xlu0 %59 }
  0x9c   :  { %v105_v60 = vmul.f32 %v6625_v55, %v60_v43  ;;  %v113_v61 = vmul.f32 %v6628_v56, %v60_v43 }
  0x9e   :  { %v6586_v35 = vpop.permute.xlu1 %142  ;;  %v177_v15 = vadd.f32 %v161_v62, %v105_v60  ;;  %v185_v16 = vadd.f32 %v169_v63, %v113_v61 }
  0x9f   :  { %v65_v51 = vpop.permute.xlu0 %64  ;;  %v166_v62 = vmul.f32 %v6617_v52, %v6586_v35  ;;  %v174_v63 = vmul.f32 %v6620_v53, %v6586_v35  ;;  %v118_v35 = vmul.f32 %v6628_v56, %v6582_v33 }
  0xa0   :  { %v106_v4 = vmul.f32 %v6625_v55, %v65_v51  ;;  %v114_v6 = vmul.f32 %v6628_v56, %v65_v51  ;;  %v249_v43 = vadd.f32 %v233_v21, %v177_v15  ;;  %v257_v29 = vadd.f32 %v241_v22, %v185_v16 }
  0xa1   :  { %v260_v51 = vadd.f32 %v244_v18, %v188_v17  ;;  %v246_v15 = vmul.f32 %v6634_v58, %v6584_v34  ;;  %v190_v17 = vadd.f32 %v174_v63, %v118_v35 }
  0xa2   :  { %v178_v24 = vadd.f32 %v162_v2, %v106_v4  ;;  %v186_v26 = vadd.f32 %v170_v9, %v114_v6 }
  0xa3   :  { %v6588_v36 = vpop.permute.xlu1 %202  ;;  %v70_v7 = vpop.permute.xlu0 %69 }
  0xa4   :  { %v107_v19 = vmul.f32 %v6625_v55, %v70_v7  ;;  %v115_v20 = vmul.f32 %v6628_v56, %v70_v7  ;;  %v250_v61 = vadd.f32 %v234_v11, %v178_v24  ;;  %v258_v25 = vadd.f32 %v242_v12, %v186_v26 }
  0xa5   :  { %v235_v28 = vmul.f32 %v6631_v57, %v6588_v36  ;;  %v243_v1 = vmul.f32 %v6634_v58, %v6588_v36  ;;  %v110_v7 = vmul.f32 %v6625_v55, %v6582_v33 }
  0xa6   :  { %v179_v23 = vadd.f32 %v163_v0, %v107_v19  ;;  %v187_v49 = vadd.f32 %v171_v27, %v115_v20  ;;  %v109_v0 = vmul.f32 %v6625_v55, %v6580_v31  ;;  %v239_v31 = vmul.f32 %v6631_v57, %v6590_v37 }
  0xa7   :  { %v286_v11 = vpop.permute.xlu0 %285  ;;  %v182_v16 = vadd.f32 %v166_v62, %v110_v7  ;;  %v247_v19 = vmul.f32 %v6634_v58, %v6590_v37  ;;  %v189_v27 = vadd.f32 %v173_v38, %v117_v3 }
  0xa8   :  { %v6592_v39 = vpop.permute.xlu1 %89  ;;  %v251_v9 = vadd.f32 %v235_v28, %v179_v23  ;;  %v259_v10 = vadd.f32 %v243_v1, %v187_v49  ;;  %v181_v18 = vadd.f32 %v165_v30, %v109_v0 }
  0xa9   :  { %v111_v26 = vmul.f32 %v6625_v55, %v6592_v39  ;;  %v119_v34 = vmul.f32 %v6628_v56, %v6592_v39  ;;  %v254_v37 = vadd.f32 %v238_v47, %v182_v16 }
  0xaa   :  { %v315_v22 = vadd.f32 %v286_v11, %v251_v9  ;;  %v323_v24 = vadd.f32 %v286_v11, %v259_v10 }
  0xab   :  { %v301_v49 = vpop.permute.xlu0 %300 }
  0xac   :  { %v6602_v44 = vpop.permute.xlu1 %94  ;;  %v339_v47 = vmax.f32 %v323_v24, 0.0  ;;  %v318_v28 = vadd.f32 %v301_v49, %v254_v37  ;;  %v694_v37 = vld [vmem:[%s8287_s5 + $0x180] sm:$0xff] }
  0xad   :  { %v112_v39 = vmul.f32 %v6625_v55, %v6602_v44 }
  0xaf   :  { %v311_v35 = vpop.permute.xlu0 %310 }
  0xb1   :  { %v6622_v54 = vpop.permute.xlu1 %150 }
  0xb2   :  { %v176_v30 = vmul.f32 %v6620_v53, %v6622_v54 }
  0xb6   :  { %v6648_v8 = vpop.permute.xlu1 %210 }
  0xb7   :  { %v245_v23 = vmul.f32 %v6634_v58, %v6648_v8 }
  0xb9   :  { %v261_v55 = vadd.f32 %v245_v23, %v189_v27  ;;  %v697_v27 = vld [vmem:[%s8287_s5 + $0x1e0] sm:$0xff] }
  0xba   :  { %v692_v23 = vld [vmem:[%s8287_s5 + $0x140] sm:$0xff] }
  0xbb   :  { %v276_v41 = vpop.permute.xlu1 %275 }
  0xbc   :  { %v313_v59 = vadd.f32 %v276_v41, %v249_v43  ;;  %v321_v60 = vadd.f32 %v276_v41, %v257_v29  ;;  %v168_v41 = vmul.f32 %v6617_v52, %v6622_v54  ;;  %v262_v43 = vadd.f32 %v246_v15, %v190_v17 }
  0xbd   :  { %v237_v29 = vmul.f32 %v6631_v57, %v6648_v8  ;;  %v120_v52 = vmul.f32 %v6628_v56, %v6602_v44  ;;  %v331_v54 = vmax.f32 %v315_v22, 0.0  ;;  %v1293_v22 = vld [vmem:[%s8287_s5 + $0x1e8] sm:$0xff] }
  0xbe   :  { %v329_v12 = vmax.f32 %v313_v59, 0.0  ;;  %v337_v36 = vmax.f32 %v321_v60, 0.0  ;;  %v183_v59 = vadd.f32 %v167_v32, %v111_v26  ;;  %v191_v60 = vadd.f32 %v175_v42, %v119_v34  ;;  %v696_v34 = vld [vmem:[%s8287_s5 + $0x1c0] sm:$0xff] }
  0xbf   :  { %v281_v2 = vpop.permute.xlu1 %280  ;;  %v192_v62 = vadd.f32 %v176_v30, %v120_v52  ;;  %v326_v1 = vadd.f32 %v301_v49, %v262_v43  ;;  %v334_v32 = vmax.f32 %v318_v28, 0.0  ;;  %v5449_v30 = vcombine.low %v696_v34, %v697_v27  ;;  %v695_v43 = vld [vmem:[%s8287_s5 + $0x1a0] sm:$0xff]  ;;  %v1291_v28 = vld [vmem:[%s8287_s5 + $0x1a8] sm:$0xff] }
  0xc0   :  { %v314_v4 = vadd.f32 %v281_v2, %v250_v61  ;;  %v322_v6 = vadd.f32 %v281_v2, %v258_v25  ;;  %v184_v25 = vadd.f32 %v168_v41, %v112_v39  ;;  %v253_v2 = vadd.f32 %v237_v29, %v181_v18  ;;  %v693_v49 = vld [vmem:[%s8287_s5 + $0x160] sm:$0xff] }
  0xc1   :  { %v342_v42 = vmax.f32 %v326_v1, 0.0  ;;  %v255_v9 = vadd.f32 %v239_v31, %v183_v59  ;;  %v263_v10 = vadd.f32 %v247_v19, %v191_v60  ;;  %v1292_v19 = vld [vmem:[%s8287_s5 + $0x1c8] sm:$0xff]  ;;  %v5450_v41 = vcombine.high %v696_v34, %v697_v27  ;;  %v688_v59 = vld [vmem:[%s8287_s5 + $0xc0] sm:$0xff] }
  0xc2   :  { %v330_v13 = vmax.f32 %v314_v4, 0.0  ;;  %v338_v14 = vmax.f32 %v322_v6, 0.0  ;;  %v5465_v24 = vcombine.low %v1292_v19, %v1293_v22  ;;  %v5466_v26 = vcombine.high %v1292_v19, %v1293_v22  ;;  %v689_v60 = vld [vmem:[%s8287_s5 + $0xe0] sm:$0xff] }
  0xc3   :  { %v5448_v29 = vcombine.high %v694_v37, %v695_v43  ;;  %790 = vmatprep.subr.bf16.mxu1 %v5450_v41  ;;  %v5447_v39 = vcombine.low %v694_v37, %v695_v43  ;;  %v5446_v52 = vcombine.high %v692_v23, %v693_v49  ;;  %v686_v27 = vld [vmem:[%s8287_s5 + $0x80] sm:$0xff] }
  0xc4   :  { %v223_v33 = vpop.permute.xlu1 %222  ;;  %v349_v20 = vpack.c.bf16 %v338_v14, %v337_v36  ;;  %v345_v21 = vpack.c.bf16 %v330_v13, %v329_v12  ;;  %1386 = vmatprep.subr.bf16.mxu0 %v5466_v26  ;;  %791 = vmatpush1.bf16.msra.mxu1 %v5449_v30  ;;  %v687_v41 = vld [vmem:[%s8287_s5 + $0xa0] sm:$0xff] }
  0xc5   :  { %v240_v38 = vmul.f32 %v6631_v57, %v223_v33  ;;  %v248_v53 = vmul.f32 %v6634_v58, %v223_v33  ;;  %792 = vmatprep.subr.bf16.mxu1 %v5448_v29  ;;  %v5440_v30 = vcombine.high %v686_v27, %v687_v41  ;;  %v5439_v37 = vcombine.low %v686_v27, %v687_v41  ;;  %v684_v43 = vld [vmem:[%s8287_s5 + $0x40] sm:$0xff]  ;;  %v2313_v27 = vld [vmem:[%s8287_s5 + $0x138] sm:$0xff] }
  0xc6   :  { %369 = vxpose.xlu0.c.b16.start [1/4] (short) %v349_v20, 128  ;;  %353 = vxpose.xlu1.c.b16.start [1/4] (short) %v345_v21, 128  ;;  %v685_v29 = vld [vmem:[%s8287_s5 + $0x60] sm:$0xff] }
  0xc7   :  { %v256_v0 = vadd.f32 %v240_v38, %v184_v25  ;;  %v264_v3 = vadd.f32 %v248_v53, %v192_v62  ;;  %v690_v38 = vld [vmem:[%s8287_s5 + $0x100] sm:$0xff]  ;;  %v5442_v25 = vcombine.high %v688_v59, %v689_v60  ;;  %v5441_v62 = vcombine.low %v688_v59, %v689_v60 }
  0xc8   :  { %v691_v53 = vld [vmem:[%s8287_s5 + $0x120] sm:$0xff]  ;;  %793 = vmatpush1.bf16.msra.mxu1 %v5447_v39  ;;  %v1278_v39 = vld [vmem:[%s8287_s5 + $0x8] sm:$0xff] }
  0xc9   :  { %v291_v61 = vpop.permute.xlu1 %290  ;;  %794 = vmatprep.subr.bf16.mxu1 %v5446_v52  ;;  %v1279_v52 = vld [vmem:[%s8287_s5 + $0x28] sm:$0xff] }
  0xca   :  { %v316_v63 = vadd.f32 %v291_v61, %v252_v46  ;;  %v324_v8 = vadd.f32 %v291_v61, %v260_v51  ;;  %v320_v46 = vadd.f32 %v311_v35, %v256_v0  ;;  %v328_v51 = vadd.f32 %v311_v35, %v264_v3  ;;  %v1289_v0 = vld [vmem:[%s8287_s5 + $0x168] sm:$0xff] }
  0xcb   :  { %v5443_v61 = vcombine.low %v690_v38, %v691_v53 }
  0xcc   :  { %v332_v44 = vmax.f32 %v316_v63, 0.0  ;;  %v340_v56 = vmax.f32 %v324_v8, 0.0  ;;  %v336_v18 = vmax.f32 %v320_v46, 0.0  ;;  %v344_v20 = vmax.f32 %v328_v51, 0.0  ;;  %v1290_v8 = vld [vmem:[%s8287_s5 + $0x188] sm:$0xff] }
  0xcd   :  { %v296_v57 = vpop.permute.xlu1 %295  ;;  %v5464_v1 = vcombine.high %v1290_v8, %v1291_v28  ;;  %v5463_v3 = vcombine.low %v1290_v8, %v1291_v28  ;;  %v1282_v46 = vld [vmem:[%s8287_s5 + $0x88] sm:$0xff]  ;;  %v2318_v8 = vld [vmem:[%s8287_s5 + $0x1d8] sm:$0xff] }
  0xce   :  { %v346_v4 = vpack.c.bf16 %v332_v44, %v331_v54  ;;  %v350_v58 = vpack.c.bf16 %v340_v56, %v339_v47  ;;  %v317_v6 = vadd.f32 %v296_v57, %v253_v2  ;;  %v325_v7 = vadd.f32 %v296_v57, %v261_v55  ;;  %v1288_v55 = vld [vmem:[%s8287_s5 + $0x148] sm:$0xff]  ;;  %v2319_v28 = vld [vmem:[%s8287_s5 + $0x1f8] sm:$0xff] }
  0xcf   :  { %v5445_v54 = vcombine.low %v692_v23, %v693_v49  ;;  %v5444_v47 = vcombine.high %v690_v38, %v691_v53  ;;  %v5462_v44 = vcombine.high %v1288_v55, %v1289_v0  ;;  %v1286_v57 = vld [vmem:[%s8287_s5 + $0x108] sm:$0xff]  ;;  %v5438_v23 = vcombine.high %v684_v43, %v685_v29  ;;  %v682_v38 = vld [vmem:[%s8287_s5] sm:$0xff] }
  0xd0   :  { %v333_v11 = vmax.f32 %v317_v6, 0.0  ;;  %v341_v12 = vmax.f32 %v325_v7, 0.0  ;;  %370 = vxpose.xlu0.c.b16.cont [2/4] (short) %v350_v58, 128  ;;  %354 = vxpose.xlu1.c.b16.cont [2/4] (short) %v346_v4, 128  ;;  %v1287_v4 = vld [vmem:[%s8287_s5 + $0x128] sm:$0xff]  ;;  %v5461_v58 = vcombine.low %v1288_v55, %v1289_v0  ;;  %v5437_v49 = vcombine.low %v684_v43, %v685_v29 }
  0xd1   :  { %v306_v36 = vpop.permute.xlu1 %305  ;;  %795 = vmatpush1.bf16.msra.mxu1 %v5445_v54  ;;  %v5460_v6 = vcombine.high %v1286_v57, %v1287_v4  ;;  %v5459_v35 = vcombine.low %v1286_v57, %v1287_v4  ;;  %v1283_v51 = vld [vmem:[%s8287_s5 + $0xa8] sm:$0xff]  ;;  %v5452_v53 = vcombine.high %v1278_v39, %v1279_v52  ;;  %v683_v54 = vld [vmem:[%s8287_s5 + $0x20] sm:$0xff] }
  0xd2   :  { %v347_v13 = vpack.c.bf16 %v334_v32, %v333_v11  ;;  %v351_v14 = vpack.c.bf16 %v342_v42, %v341_v12  ;;  %v319_v15 = vadd.f32 %v306_v36, %v255_v9  ;;  %v327_v16 = vadd.f32 %v306_v36, %v263_v10  ;;  %796 = vmatprep.subr.bf16.mxu1 %v5444_v47  ;;  %v1284_v32 = vld [vmem:[%s8287_s5 + $0xc8] sm:$0xff] }
  0xd3   :  { %v1285_v42 = vld [vmem:[%s8287_s5 + $0xe8] sm:$0xff]  ;;  %v5456_v12 = vcombine.high %v1282_v46, %v1283_v51  ;;  %v5451_v47 = vcombine.low %v1278_v39, %v1279_v52  ;;  %v5436_v59 = vcombine.high %v682_v38, %v683_v54  ;;  %v5435_v60 = vcombine.low %v682_v38, %v683_v54  ;;  %v1797_v52 = vld [vmem:[%s8287_s5 + $0xd0] sm:$0xff]  ;;  %v2311_v54 = vld [vmem:[%s8287_s5 + $0xf8] sm:$0xff] }
  0xd4   :  { %v335_v17 = vmax.f32 %v319_v15, 0.0  ;;  %v343_v33 = vmax.f32 %v327_v16, 0.0  ;;  %371 = vxpose.xlu0.c.b16.cont [3/4] (short) %v351_v14, 128  ;;  %355 = vxpose.xlu1.c.b16.cont [3/4] (short) %v347_v13, 128  ;;  %v5458_v9 = vcombine.high %v1284_v32, %v1285_v42  ;;  %v5457_v11 = vcombine.low %v1284_v32, %v1285_v42  ;;  %v1280_v13 = vld [vmem:[%s8287_s5 + $0x48] sm:$0xff]  ;;  %v1804_v42 = vld [vmem:[%s8287_s5 + $0x1b0] sm:$0xff] }
  0xd5   :  { %797 = vmatpush1.bf16.msra.mxu1 %v5443_v61  ;;  %v1281_v14 = vld [vmem:[%s8287_s5 + $0x68] sm:$0xff]  ;;  %v5455_v16 = vcombine.low %v1282_v46, %v1283_v51  ;;  %v1805_v61 = vld [vmem:[%s8287_s5 + $0x1d0] sm:$0xff] }
  0xd6   :  { %v348_v21 = vpack.c.bf16 %v336_v18, %v335_v17  ;;  %v352_v31 = vpack.c.bf16 %v344_v20, %v343_v33  ;;  %798 = vmatprep.subr.bf16.mxu1 %v5442_v25  ;;  %v5454_v17 = vcombine.high %v1280_v13, %v1281_v14  ;;  %v5453_v33 = vcombine.low %v1280_v13, %v1281_v14  ;;  %v1806_v25 = vld [vmem:[%s8287_s5 + $0x1f0] sm:$0xff] }
  0xd7   :  { %v1802_v14 = vld [vmem:[%s8287_s5 + $0x170] sm:$0xff] }
  0xd8   :  { %372 = vxpose.xlu0.c.b16.end [4/4] (short) %v352_v31, 128  ;;  %356 = vxpose.xlu1.c.b16.end [4/4] (short) %v348_v21, 128  ;;  %v1798_v38 = vld [vmem:[%s8287_s5 + $0xf0] sm:$0xff] }
  0xd9   :  { %799 = vmatpush1.bf16.msra.mxu1 %v5441_v62  ;;  %v5481_v62 = vcombine.low %v1805_v61, %v1806_v25 }
  0xda   :  { %800 = vmatprep.subr.bf16.mxu1 %v5440_v30 }
  0xdd   :  { %801 = vmatpush1.bf16.msra.mxu1 %v5439_v37 }
  0xde   :  { %802 = vmatprep.subr.bf16.mxu1 %v5438_v23 }
  0xe1   :  { %803 = vmatpush1.bf16.msra.mxu1 %v5437_v49 }
  0xe2   :  { %804 = vmatprep.subr.bf16.mxu1 %v5436_v59 }
  0xe5   :  { %805 = vmatpush1.bf16.msra.mxu1 %v5435_v60 }
 0x12e   :  { %v361_v63 = vpop.trf.xlu1  ;;  %v377_v15 = vpop.trf.xlu0 }
 0x12f   :  { %5886 = vmatprep.mubr.msk.bf16.mxu0 %vm424_vm0, %v361_v63  ;;  %v5482_v63 = vcombine.high %v1805_v61, %v1806_v25 }
 0x131   :  { %1899 = vmatprep.subr.bf16.mxu1 %v5482_v63 }
 0x132   :  { %v362_v2 = vpop.trf.xlu1  ;;  %v378_v21 = vpop.trf.xlu0 }
 0x133   :  { %5887 = vmatmul.mubr.msk.bf16.vlgmr.msra.gmra.mxu0 %vm424_vm0, %v362_v2  ;;  %v5498_v2 = vcombine.high %v2318_v8, %v2319_v28 }
 0x134   :  { %1387 = vmatpush1.bf16.msra.mxu0 %v5465_v24 }
 0x135   :  { %1388 = vmatprep.subr.bf16.mxu0 %v5464_v1  ;;  %v5497_v1 = vcombine.low %v2318_v8, %v2319_v28  ;;  %v1795_v8 = vld [vmem:[%s8287_s5 + $0x90] sm:$0xff] }
 0x136   :  { %v363_v56 = vpop.trf.xlu1  ;;  %v379_v31 = vpop.trf.xlu0  ;;  %v1796_v28 = vld [vmem:[%s8287_s5 + $0xb0] sm:$0xff] }
 0x137   :  { %5890 = vmatprep.mubr.msk.bf16.mxu0 %vm424_vm0, %v363_v56 }
 0x138   :  { %1389 = vmatpush1.bf16.msra.mxu0 %v5463_v3  ;;  %v6840_v3 = vld [vmem:[%s8288_s4] ss:$0 sm:$0xff] }
 0x139   :  { %1390 = vmatprep.subr.bf16.mxu0 %v5462_v44 }
 0x13a   :  { %v364_v7 = vpop.trf.xlu1  ;;  %v380_v19 = vpop.trf.xlu0 }
 0x13b   :  { %5891 = vmatmul.mubr.msk.bf16.gmra.mxu0 %vm424_vm0, %v364_v7 }
 0x13c   :  { %1391 = vmatpush1.bf16.msra.mxu0 %v5461_v58 }
 0x13d   :  { %1392 = vmatprep.subr.bf16.mxu0 %v5460_v6  ;;  %v1803_v6 = vld [vmem:[%s8287_s5 + $0x190] sm:$0xff] }
 0x13e   :  { %v365_v10 = vpop.trf.xlu1  ;;  %v381_v22 = vpop.trf.xlu0 }
 0x13f   :  { %5894 = vmatprep.mubr.msk.bf16.mxu0 %vm424_vm0, %v365_v10 }
 0x140   :  { %1393 = vmatpush1.bf16.msra.mxu0 %v5459_v35  ;;  %v2316_v35 = vld [vmem:[%s8287_s5 + $0x198] sm:$0xff] }
 0x141   :  { %1394 = vmatprep.subr.bf16.mxu0 %v5458_v9  ;;  %v2317_v9 = vld [vmem:[%s8287_s5 + $0x1b8] sm:$0xff] }
 0x142   :  { %v366_v36 = vpop.trf.xlu1  ;;  %v382_v24 = vpop.trf.xlu0  ;;  %v5496_v13 = vcombine.high %v2316_v35, %v2317_v9 }
 0x143   :  { %5895 = vmatmul.mubr.msk.bf16.gmra.mxu0 %vm424_vm0, %v366_v36  ;;  %v5480_v36 = vcombine.high %v1803_v6, %v1804_v42 }
 0x144   :  { %1395 = vmatpush1.bf16.msra.mxu0 %v5457_v11  ;;  %v1801_v11 = vld [vmem:[%s8287_s5 + $0x150] sm:$0xff] }
 0x145   :  { %1396 = vmatprep.subr.bf16.mxu0 %v5456_v12  ;;  %v5477_v41 = vcombine.low %v1801_v11, %v1802_v14 }
 0x146   :  { %v367_v18 = vpop.trf.xlu1  ;;  %v383_v26 = vpop.trf.xlu0 }
 0x147   :  { %5898 = vmatprep.mubr.msk.bf16.mxu0 %vm424_vm0, %v367_v18  ;;  %v5479_v18 = vcombine.low %v1803_v6, %v1804_v42  ;;  %v5472_v6 = vcombine.high %v1795_v8, %v1796_v28  ;;  %v2306_v42 = vld [vmem:[%s8287_s5 + $0x58] sm:$0xff] }
 0x148   :  { %1397 = vmatpush1.bf16.msra.mxu0 %v5455_v16  ;;  %v2315_v16 = vld [vmem:[%s8287_s5 + $0x178] sm:$0xff] }
 0x149   :  { %1398 = vmatprep.subr.bf16.mxu0 %v5454_v17 }
 0x14a   :  { %v368_v20 = vpop.trf.xlu1  ;;  %v384_v34 = vpop.trf.xlu0 }
 0x14b   :  { %5899 = vmatmul.mubr.msk.bf16.gmra.mxu0 %vm424_vm0, %v368_v20 }
 0x14c   :  { %5902 = vmatprep.mubr.msk.bf16.mxu0 %vm424_vm0, %v377_v15  ;;  %1399 = vmatpush1.bf16.msra.mxu0 %v5453_v33  ;;  %v2314_v15 = vld [vmem:[%s8287_s5 + $0x158] sm:$0xff]  ;;  %v5495_v33 = vcombine.low %v2316_v35, %v2317_v9 }
 0x14d   :  { %1400 = vmatprep.subr.bf16.mxu0 %v5452_v53  ;;  %v5493_v30 = vcombine.low %v2314_v15, %v2315_v16  ;;  %v2310_v53 = vld [vmem:[%s8287_s5 + $0xd8] sm:$0xff] }
 0x14e   :  { %v5490_v63 = vcombine.high %v2310_v53, %v2311_v54  ;;  %v2307_v35 = vld [vmem:[%s8287_s5 + $0x78] sm:$0xff] }
 0x150   :  { %1401 = vmatpush1.bf16.msra.mxu0 %v5451_v47 }
 0x151   :  { %2412 = vmatprep.subr.bf16.mxu0 %v5498_v2  ;;  %v2309_v2 = vld [vmem:[%s8287_s5 + $0xb8] sm:$0xff] }
 0x153   :  { %5903 = vmatmul.mubr.msk.bf16.gmra.mxu0 %vm424_vm0, %v378_v21  ;;  %v5478_v21 = vcombine.high %v1801_v11, %v1802_v14  ;;  %v1791_v14 = vld [vmem:[%s8287_s5 + $0x10] sm:$0xff] }
 0x154   :  { %5906 = vmatprep.mubr.msk.bf16.mxu0 %vm424_vm0, %v379_v31  ;;  %v5494_v31 = vcombine.high %v2314_v15, %v2315_v16  ;;  %v1792_v15 = vld [vmem:[%s8287_s5 + $0x30] sm:$0xff]  ;;  %v2304_v16 = vld [vmem:[%s8287_s5 + $0x18] sm:$0xff] }
 0x15b   :  { %5907 = vmatmul.mubr.msk.bf16.gmra.mxu0 %vm424_vm0, %v380_v19 }
 0x15c   :  { %5910 = vmatprep.mubr.msk.bf16.mxu0 %vm424_vm0, %v381_v22  ;;  %v1799_v22 = vld [vmem:[%s8287_s5 + $0x110] sm:$0xff] }
 0x163   :  { %5911 = vmatmul.mubr.msk.bf16.gmra.mxu0 %vm424_vm0, %v382_v24 }
 0x164   :  { %5914 = vmatprep.mubr.msk.bf16.mxu0 %vm424_vm0, %v383_v26  ;;  %v1800_v26 = vld [vmem:[%s8287_s5 + $0x130] sm:$0xff] }
 0x165   :  { %v5476_v49 = vcombine.high %v1799_v22, %v1800_v26  ;;  %v5475_v60 = vcombine.low %v1799_v22, %v1800_v26  ;;  %v5468_v22 = vcombine.high %v1791_v14, %v1792_v15 }
 0x16b   :  { %5915 = vmatmul.mubr.msk.bf16.gmra.mxu0 %vm424_vm0, %v384_v34  ;;  %v2312_v34 = vld [vmem:[%s8287_s5 + $0x118] sm:$0xff] }
 0x16c   :  { %1418 = vmatprep.mubr.bf16.mxu0 %v6438_v5  ;;  %v5492_v39 = vcombine.high %v2312_v34, %v2313_v27  ;;  %v5491_v61 = vcombine.low %v2312_v34, %v2313_v27  ;;  %v5467_v27 = vcombine.low %v1791_v14, %v1792_v15 }
 0x1f3   :  { %v5888_v55 = vpop.f32.mrf.mxu0 }
 0x1f4   :  { %v516_v17 = vadd.f32 %v5888_v55, %v6840_v3  ;;  %v5473_v55 = vcombine.low %v1797_v52, %v1798_v38 }
 0x1f5   :  { %v507_v0 = vpop.f32.mrf.mxu0 }
 0x1f6   :  { %v508_v56 = vadd.f32 %v6840_v3, %v507_v0  ;;  %v636_v24 = vmax.f32 %v516_v17, 0.0  ;;  %v5489_v0 = vcombine.low %v2310_v53, %v2311_v54  ;;  %v2305_v17 = vld [vmem:[%s8287_s5 + $0x38] sm:$0xff] }
 0x1f7   :  { %v5889_v44 = vpop.f32.mrf.mxu0 }
 0x1f8   :  { %v634_v7 = vmax.f32 %v508_v56, 0.0  ;;  %v519_v46 = vadd.f32 %v5889_v44, %v6840_v3 }
 0x1f9   :  { %v510_v57 = vpop.f32.mrf.mxu0 }
 0x1fa   :  { %v511_v4 = vadd.f32 %v6840_v3, %v510_v57  ;;  %v637_v20 = vmax.f32 %v519_v46, 0.0  ;;  %v5471_v46 = vcombine.low %v1795_v8, %v1796_v28 }
 0x1fb   :  { %v6844_v58 = vpop.f32.mrf.mxu0 }
 0x1fc   :  { %v635_v32 = vmax.f32 %v511_v4, 0.0  ;;  %v6892_v37 = vpack.c.bf16 %v637_v20, %v636_v24  ;;  %v532_v44 = vadd.f32 %v6844_v58, %v6840_v3  ;;  %v1794_v58 = vld [vmem:[%s8287_s5 + $0x70] sm:$0xff]  ;;  %v5484_v24 = vcombine.high %v2304_v16, %v2305_v17 }
 0x1fd   :  { %v523_v10 = vpop.f32.mrf.mxu0 }
 0x1fe   :  { %v6859_v51 = vpack.c.bf16 %v635_v32, %v634_v7  ;;  %v524_v43 = vadd.f32 %v6840_v3, %v523_v10  ;;  %v1793_v32 = vld [vmem:[%s8287_s5 + $0x50] sm:$0xff]  ;;  %v640_v9 = vmax.f32 %v532_v44, 0.0 }
 0x1ff   :  { %v6864_v12 = vpop.f32.mrf.mxu0 }
 0x200   :  { %823 = vmatmul.mubr.bf16.vlgmr.msra.gmra.mxu1 %v6859_v51  ;;  %1419 = vmatmul.mubr.bf16.vlgmr.msra.gmra.mxu0 %v6859_v51  ;;  %v638_v47 = vmax.f32 %v524_v43, 0.0  ;;  %v535_v56 = vadd.f32 %v6864_v12, %v6840_v3 }
 0x201   :  { %1900 = vmatpush1.bf16.msra.mxu1 %v5481_v62  ;;  %2413 = vmatpush1.bf16.msra.mxu0 %v5497_v1  ;;  %v526_v19 = vpop.f32.mrf.mxu0  ;;  %v5474_v62 = vcombine.high %v1797_v52, %v1798_v38  ;;  %v2308_v1 = vld [vmem:[%s8287_s5 + $0x98] sm:$0xff] }
 0x202   :  { %832 = vmatprep.mubr.bf16.mxu1 %v6438_v5  ;;  %1428 = vmatprep.mubr.bf16.mxu0 %v6438_v5  ;;  %v527_v29 = vadd.f32 %v6840_v3, %v526_v19  ;;  %v5488_v7 = vcombine.high %v2308_v1, %v2309_v2  ;;  %v641_v10 = vmax.f32 %v535_v56, 0.0  ;;  %v5487_v11 = vcombine.low %v2308_v1, %v2309_v2 }
 0x203   :  { %1901 = vmatprep.subr.bf16.mxu1 %v5480_v36  ;;  %2414 = vmatprep.subr.bf16.mxu0 %v5496_v13  ;;  %v6896_v23 = vpop.f32.mrf.mxu0  ;;  %v5470_v36 = vcombine.high %v1793_v32, %v1794_v58  ;;  %v5486_v13 = vcombine.high %v2306_v42, %v2307_v35 }
 0x204   :  { %v639_v59 = vmax.f32 %v527_v29, 0.0  ;;  %v6960_v20 = vpack.c.bf16 %v641_v10, %v640_v9  ;;  %v548_v43 = vadd.f32 %v6896_v23, %v6840_v3 }
 0x205   :  { %1902 = vmatpush1.bf16.msra.mxu1 %v5479_v18  ;;  %2415 = vmatpush1.bf16.msra.mxu0 %v5495_v33  ;;  %v539_v25 = vpop.f32.mrf.mxu0  ;;  %v5469_v18 = vcombine.low %v1793_v32, %v1794_v58  ;;  %v5485_v33 = vcombine.low %v2306_v42, %v2307_v35 }
 0x206   :  { %1903 = vmatprep.subr.bf16.mxu1 %v5478_v21  ;;  %2416 = vmatprep.subr.bf16.mxu0 %v5494_v31  ;;  %v6930_v57 = vpack.c.bf16 %v639_v59, %v638_v47  ;;  %v540_v21 = vadd.f32 %v6840_v3, %v539_v25  ;;  %v644_v52 = vmax.f32 %v548_v43, 0.0 }
 0x207   :  { %v5897_v4 = vpop.f32.mrf.mxu0 }
 0x208   :  { %833 = vmatmul.mubr.bf16.gmra.mxu1 %v6892_v37  ;;  %1429 = vmatmul.mubr.bf16.gmra.mxu0 %v6892_v37  ;;  %v642_v26 = vmax.f32 %v540_v21, 0.0  ;;  %v551_v29 = vadd.f32 %v5897_v4, %v6840_v3 }
 0x209   :  { %842 = vmatprep.mubr.bf16.mxu1 %v6438_v5  ;;  %1438 = vmatprep.mubr.bf16.mxu0 %v6438_v5  ;;  %v542_v12 = vpop.f32.mrf.mxu0 }
 0x20a   :  { %1904 = vmatpush1.bf16.msra.mxu1 %v5477_v41  ;;  %2417 = vmatpush1.bf16.msra.mxu0 %v5493_v30  ;;  %v543_v31 = vadd.f32 %v6840_v3, %v542_v12  ;;  %v5483_v41 = vcombine.low %v2304_v16, %v2305_v17  ;;  %v645_v38 = vmax.f32 %v551_v29, 0.0 }
 0x20b   :  { %1905 = vmatprep.subr.bf16.mxu1 %v5476_v49  ;;  %2418 = vmatprep.subr.bf16.mxu0 %v5492_v39  ;;  %v5900_v19 = vpop.f32.mrf.mxu0 }
 0x20c   :  { %v643_v34 = vmax.f32 %v543_v31, 0.0  ;;  %v6977_v54 = vpack.c.bf16 %v645_v38, %v644_v52 }
 0x20d   :  { %v555_v30 = vpop.f32.mrf.mxu0 }
 0x20e   :  { %1906 = vmatpush1.bf16.msra.mxu1 %v5475_v60  ;;  %2419 = vmatpush1.bf16.msra.mxu0 %v5491_v61  ;;  %v6971_v49 = vpack.c.bf16 %v643_v34, %v642_v26  ;;  %v556_v23 = vadd.f32 %v6840_v3, %v555_v30 }
 0x20f   :  { %1907 = vmatprep.subr.bf16.mxu1 %v5474_v62  ;;  %2420 = vmatprep.subr.bf16.mxu0 %v5490_v63  ;;  %v5901_v39 = vpop.f32.mrf.mxu0  ;;  %v564_v62 = vadd.f32 %v5900_v19, %v6840_v3 }
 0x210   :  { %843 = vmatmul.mubr.bf16.gmra.mxu1 %v6930_v57  ;;  %1439 = vmatmul.mubr.bf16.gmra.mxu0 %v6930_v57  ;;  %v646_v60 = vmax.f32 %v556_v23, 0.0  ;;  %v567_v63 = vadd.f32 %v5901_v39, %v6840_v3 }
 0x211   :  { %852 = vmatprep.mubr.bf16.mxu1 %v6438_v5  ;;  %1448 = vmatprep.mubr.bf16.mxu0 %v6438_v5  ;;  %v558_v53 = vpop.f32.mrf.mxu0  ;;  %v648_v1 = vmax.f32 %v564_v62, 0.0 }
 0x212   :  { %1908 = vmatpush1.bf16.msra.mxu1 %v5473_v55  ;;  %2421 = vmatpush1.bf16.msra.mxu0 %v5489_v0  ;;  %v559_v47 = vadd.f32 %v6840_v3, %v558_v53  ;;  %v649_v2 = vmax.f32 %v567_v63, 0.0 }
 0x213   :  { %1909 = vmatprep.subr.bf16.mxu1 %v5472_v6  ;;  %2422 = vmatprep.subr.bf16.mxu0 %v5488_v7  ;;  %v5904_v59 = vpop.f32.mrf.mxu0 }
 0x214   :  { %v647_v61 = vmax.f32 %v559_v47, 0.0  ;;  %v6993_v0 = vpack.c.bf16 %v649_v2, %v648_v1  ;;  %v580_v58 = vadd.f32 %v5904_v59, %v6840_v3 }
 0x215   :  { %v571_v25 = vpop.f32.mrf.mxu0 }
 0x216   :  { %1910 = vmatpush1.bf16.msra.mxu1 %v5471_v46  ;;  %2423 = vmatpush1.bf16.msra.mxu0 %v5487_v11  ;;  %v6987_v8 = vpack.c.bf16 %v647_v61, %v646_v60  ;;  %v572_v44 = vadd.f32 %v6840_v3, %v571_v25  ;;  %v652_v10 = vmax.f32 %v580_v58, 0.0  ;;  %v5952_v58 = vld [vmem:[%s8289_s7 + $0x2c4] ss:$16 sps:$4 sm:$0xff]  }
 0x217   :  { %1911 = vmatprep.subr.bf16.mxu1 %v5470_v36  ;;  %2424 = vmatprep.subr.bf16.mxu0 %v5486_v13  ;;  %v5905_v28 = vpop.f32.mrf.mxu0 }
 0x218   :  { %853 = vmatmul.mubr.bf16.gmra.mxu1 %v6960_v20  ;;  %1449 = vmatmul.mubr.bf16.gmra.mxu0 %v6960_v20  ;;  %v650_v6 = vmax.f32 %v572_v44, 0.0  ;;  %v583_v42 = vadd.f32 %v5905_v28, %v6840_v3 }
 0x219   :  { %862 = vmatprep.mubr.bf16.mxu1 %v6438_v5  ;;  %1458 = vmatprep.mubr.bf16.mxu0 %v6438_v5  ;;  %v574_v55 = vpop.f32.mrf.mxu0 }
 0x21a   :  { %1912 = vmatpush1.bf16.msra.mxu1 %v5469_v18  ;;  %2425 = vmatpush1.bf16.msra.mxu0 %v5485_v33  ;;  %v575_v56 = vadd.f32 %v6840_v3, %v574_v55  ;;  %v653_v46 = vmax.f32 %v583_v42, 0.0  ;;  %v5947_v42 = vld [vmem:[%s8289_s7 + $0xc0] ss:$16 sps:$4 sm:$0xff]  }
 0x21b   :  { %1913 = vmatprep.subr.bf16.mxu1 %v5468_v22  ;;  %2426 = vmatprep.subr.bf16.mxu0 %v5484_v24  ;;  %v5908_v4 = vpop.f32.mrf.mxu0 }
 0x21c   :  { %v651_v7 = vmax.f32 %v575_v56, 0.0  ;;  %v7009_v12 = vpack.c.bf16 %v653_v46, %v652_v10  ;;  %v596_v18 = vadd.f32 %v5908_v4, %v6840_v3  ;;  %v5946_v4 = vld [vmem:[%s8289_s7 + $0x2e4] ss:$16 sps:$4 sm:$0xff]   ;;  %v5953_v46 = vld [vmem:[%s8289_s7 + $0xa0] ss:$16 sps:$4 sm:$0xff]  }
 0x21d   :  { %v587_v32 = vpop.f32.mrf.mxu0  ;;  %v5955_v10 = vld [vmem:[%s8289_s7 + $0xa4] ss:$16 sps:$4 sm:$0xff]  }
 0x21e   :  { %1914 = vmatpush1.bf16.msra.mxu1 %v5467_v27  ;;  %2427 = vmatpush1.bf16.msra.mxu0 %v5483_v41  ;;  %v7003_v35 = vpack.c.bf16 %v651_v7, %v650_v6  ;;  %v588_v36 = vadd.f32 %v6840_v3, %v587_v32  ;;  %v656_v19 = vmax.f32 %v596_v18, 0.0  ;;  %v5941_v6 = vld [vmem:[%s8289_s7 + $0xe0] ss:$16 sps:$4 sm:$0xff]   ;;  %v5949_v32 = vld [vmem:[%s8289_s7 + $0xc4] ss:$16 sps:$4 sm:$0xff]  }
 0x21f   :  { %v5909_v9 = vpop.f32.mrf.mxu0  ;;  %v5944_v7 = vld [vmem:[%s8289_s7 + $0x2e0] ss:$16 sps:$4 sm:$0xff]   ;;  %4457 = vmatprep.subr.bf16.mxu0 %v5946_v4 }
 0x220   :  { %863 = vmatmul.mubr.bf16.gmra.mxu1 %v6971_v49  ;;  %1459 = vmatmul.mubr.bf16.gmra.mxu0 %v6971_v49  ;;  %v654_v15 = vmax.f32 %v588_v36, 0.0  ;;  %v599_v33 = vadd.f32 %v5909_v9, %v6840_v3  ;;  %v5950_v9 = vld [vmem:[%s8289_s7 + $0x2c0] ss:$16 sps:$4 sm:$0xff]   ;;  %v5961_v36 = vld [vmem:[%s8289_s7 + $0x84] ss:$16 sps:$4 sm:$0xff]  }
 0x221   :  { %872 = vmatprep.mubr.bf16.mxu1 %v6438_v5  ;;  %1468 = vmatprep.mubr.bf16.mxu0 %v6438_v5  ;;  %v590_v11 = vpop.f32.mrf.mxu0  ;;  %v5968_v18 = vld [vmem:[%s8289_s7 + $0x260] ss:$16 sps:$4 sm:$0xff]  }
 0x222   :  { %v591_v13 = vadd.f32 %v6840_v3, %v590_v11  ;;  %v657_v22 = vmax.f32 %v599_v33, 0.0  ;;  %v5956_v11 = vld [vmem:[%s8289_s7 + $0x2a0] ss:$16 sps:$4 sm:$0xff]   ;;  %v5973_v33 = vld [vmem:[%s8289_s7 + $0x44] ss:$16 sps:$4 sm:$0xff]  }
 0x223   :  { %v5912_v14 = vpop.f32.mrf.mxu0  ;;  %v6013_v4 = vld [vmem:[%s8289_s7 + $0x160] ss:$16 sps:$4 sm:$0xff]  }
 0x224   :  { %v655_v16 = vmax.f32 %v591_v13, 0.0  ;;  %v7025_v26 = vpack.c.bf16 %v657_v22, %v656_v19  ;;  %v612_v39 = vadd.f32 %v5912_v14, %v6840_v3  ;;  %v5964_v13 = vld [vmem:[%s8289_s7 + $0x284] ss:$16 sps:$4 sm:$0xff]   ;;  %v5959_v14 = vld [vmem:[%s8289_s7 + $0x80] ss:$16 sps:$4 sm:$0xff]  }
 0x225   :  { %v603_v17 = vpop.f32.mrf.mxu0  ;;  %v5971_v19 = vld [vmem:[%s8289_s7 + $0x40] ss:$16 sps:$4 sm:$0xff]  }
 0x226   :  { %v7019_v21 = vpack.c.bf16 %v655_v16, %v654_v15  ;;  %v604_v34 = vadd.f32 %v6840_v3, %v603_v17  ;;  %v660_v23 = vmax.f32 %v612_v39, 0.0  ;;  %v5962_v15 = vld [vmem:[%s8289_s7 + $0x280] ss:$16 sps:$4 sm:$0xff]   ;;  %v5967_v16 = vld [vmem:[%s8289_s7 + $0x64] ss:$16 sps:$4 sm:$0xff]  }
 0x227   :  { %v5913_v31 = vpop.f32.mrf.mxu0  ;;  %v5965_v17 = vld [vmem:[%s8289_s7 + $0x60] ss:$16 sps:$4 sm:$0xff]   ;;  %v5991_v39 = vld [vmem:[%s8289_s7 + $0x1e4] ss:$16 sps:$4 sm:$0xff]  }
 0x228   :  { %873 = vmatmul.mubr.bf16.gmra.mxu1 %v6977_v54  ;;  %1469 = vmatmul.mubr.bf16.gmra.mxu0 %v6977_v54  ;;  %v658_v30 = vmax.f32 %v604_v34, 0.0  ;;  %v615_v52 = vadd.f32 %v5913_v31, %v6840_v3  ;;  %v5976_v31 = vld [vmem:[%s8289_s7 + $0x244] ss:$16 sps:$4 sm:$0xff]   ;;  %v5974_v22 = vld [vmem:[%s8289_s7 + $0x240] ss:$16 sps:$4 sm:$0xff]  }
 0x229   :  { %882 = vmatprep.mubr.bf16.mxu1 %v6438_v5  ;;  %1478 = vmatprep.mubr.bf16.mxu0 %v6438_v5  ;;  %v606_v24 = vpop.f32.mrf.mxu0  ;;  %v5977_v34 = vld [vmem:[%s8289_s7 + $0x20] ss:$16 sps:$4 sm:$0xff]  }
 0x22a   :  { %v607_v27 = vadd.f32 %v6840_v3, %v606_v24  ;;  %v661_v47 = vmax.f32 %v615_v52, 0.0  ;;  %v5979_v24 = vld [vmem:[%s8289_s7 + $0x24] ss:$16 sps:$4 sm:$0xff]   ;;  %v5989_v52 = vld [vmem:[%s8289_s7 + $0x1e0] ss:$16 sps:$4 sm:$0xff]  }
 0x22b   :  { %v5916_v41 = vpop.f32.mrf.mxu0 }
 0x22c   :  { %v659_v43 = vmax.f32 %v607_v27, 0.0  ;;  %v7041_v60 = vpack.c.bf16 %v661_v47, %v660_v23  ;;  %v628_v28 = vadd.f32 %v5916_v41, %v6840_v3  ;;  %v5980_v27 = vld [vmem:[%s8289_s7 + $0x220] ss:$16 sps:$4 sm:$0xff]   ;;  %v5985_v41 = vld [vmem:[%s8289_s7 + $0x4] ss:$16 sps:$4 sm:$0xff]  }
 0x22d   :  { %v619_v29 = vpop.f32.mrf.mxu0  ;;  %v5997_v23 = vld [vmem:[%s8289_s7 + $0x1c4] ss:$16 sps:$4 sm:$0xff]  }
 0x22e   :  { %v7035_v38 = vpack.c.bf16 %v659_v43, %v658_v30  ;;  %v620_v61 = vadd.f32 %v6840_v3, %v619_v29  ;;  %v664_v55 = vmax.f32 %v628_v28, 0.0  ;;  %v5988_v30 = vld [vmem:[%s8289_s7 + $0x204] ss:$16 sps:$4 sm:$0xff]   ;;  %v5983_v43 = vld [vmem:[%s8289_s7] ss:$16 sps:$4 sm:$0xff]  }
 0x22f   :  { %v5917_v53 = vpop.f32.mrf.mxu0  ;;  %v5986_v29 = vld [vmem:[%s8289_s7 + $0x200] ss:$16 sps:$4 sm:$0xff]   ;;  %v6000_v47 = vld [vmem:[%s8289_s7 + $0x3c4] ss:$16 sps:$4 sm:$0xff]  }
 0x230   :  { %883 = vmatmul.mubr.bf16.gmra.mxu1 %v6987_v8  ;;  %1479 = vmatmul.mubr.bf16.gmra.mxu0 %v6987_v8  ;;  %v662_v62 = vmax.f32 %v620_v61, 0.0  ;;  %v631_v1 = vadd.f32 %v5917_v53, %v6840_v3  ;;  %v5992_v53 = vld [vmem:[%s8289_s7 + $0x3e0] ss:$16 sps:$4 sm:$0xff]   ;;  %v6009_v28 = vld [vmem:[%s8289_s7 + $0x184] ss:$16 sps:$4 sm:$0xff]  }
 0x231   :  { %892 = vmatprep.mubr.bf16.mxu1 %v6438_v5  ;;  %1488 = vmatprep.mubr.bf16.mxu0 %v6438_v5  ;;  %v622_v59 = vpop.f32.mrf.mxu0  ;;  %v5998_v61 = vld [vmem:[%s8289_s7 + $0x3c0] ss:$16 sps:$4 sm:$0xff]  }
 0x232   :  { %v623_v25 = vadd.f32 %v6840_v3, %v622_v59  ;;  %v665_v44 = vmax.f32 %v631_v1, 0.0  ;;  %v5943_v3 = vld [vmem:[%s8289_s7 + $0xe4] ss:$16 sps:$4 sm:$0xff]   ;;  %v5995_v59 = vld [vmem:[%s8289_s7 + $0x1c0] ss:$16 sps:$4 sm:$0xff]  }
 0x233   :  { %4416 = vmatprep.subr.bf16.mxu1 %v5943_v3  ;;  %v6012_v1 = vld [vmem:[%s8289_s7 + $0x384] ss:$16 sps:$4 sm:$0xff]  }
 0x234   :  { %v663_v63 = vmax.f32 %v623_v25, 0.0  ;;  %v7057_v56 = vpack.c.bf16 %v665_v44, %v664_v55  ;;  %v6003_v25 = vld [vmem:[%s8289_s7 + $0x1a4] ss:$16 sps:$4 sm:$0xff]   ;;  %v6007_v55 = vld [vmem:[%s8289_s7 + $0x180] ss:$16 sps:$4 sm:$0xff]  }
 0x235   :  { %v6010_v44 = vld [vmem:[%s8289_s7 + $0x380] ss:$16 sps:$4 sm:$0xff]   ;;  %v6015_v3 = vld [vmem:[%s8289_s7 + $0x164] ss:$16 sps:$4 sm:$0xff]  }
 0x236   :  { %v7051_v2 = vpack.c.bf16 %v663_v63, %v662_v62  ;;  %v6001_v62 = vld [vmem:[%s8289_s7 + $0x1a0] ss:$16 sps:$4 sm:$0xff]  }
 0x237   :  { %v6004_v63 = vld [vmem:[%s8289_s7 + $0x3a0] ss:$16 sps:$4 sm:$0xff]  }
 0x238   :  { %893 = vmatmul.mubr.bf16.gmra.mxu1 %v6993_v0  ;;  %1489 = vmatmul.mubr.bf16.gmra.mxu0 %v6993_v0 }
 0x239   :  { %902 = vmatprep.mubr.bf16.mxu1 %v6438_v5  ;;  %1498 = vmatprep.mubr.bf16.mxu0 %v6438_v5 }
 0x240   :  { %903 = vmatmul.mubr.bf16.gmra.mxu1 %v7003_v35  ;;  %1499 = vmatmul.mubr.bf16.gmra.mxu0 %v7003_v35 }
 0x241   :  { %912 = vmatprep.mubr.bf16.mxu1 %v6438_v5  ;;  %1508 = vmatprep.mubr.bf16.mxu0 %v6438_v5 }
 0x248   :  { %913 = vmatmul.mubr.bf16.gmra.mxu1 %v7009_v12  ;;  %1509 = vmatmul.mubr.bf16.gmra.mxu0 %v7009_v12 }
 0x249   :  { %922 = vmatprep.mubr.bf16.mxu1 %v6438_v5  ;;  %1518 = vmatprep.mubr.bf16.mxu0 %v6438_v5 }
 0x250   :  { %923 = vmatmul.mubr.bf16.gmra.mxu1 %v7019_v21  ;;  %1519 = vmatmul.mubr.bf16.gmra.mxu0 %v7019_v21 }
 0x251   :  { %932 = vmatprep.mubr.bf16.mxu1 %v6438_v5  ;;  %1528 = vmatprep.mubr.bf16.mxu0 %v6438_v5 }
 0x258   :  { %933 = vmatmul.mubr.bf16.gmra.mxu1 %v7025_v26  ;;  %1529 = vmatmul.mubr.bf16.gmra.mxu0 %v7025_v26 }
 0x259   :  { %942 = vmatprep.mubr.bf16.mxu1 %v6438_v5  ;;  %1538 = vmatprep.mubr.bf16.mxu0 %v6438_v5 }
 0x260   :  { %943 = vmatmul.mubr.bf16.gmra.mxu1 %v7035_v38  ;;  %1539 = vmatmul.mubr.bf16.gmra.mxu0 %v7035_v38 }
 0x261   :  { %952 = vmatprep.mubr.bf16.mxu1 %v6438_v5  ;;  %1548 = vmatprep.mubr.bf16.mxu0 %v6438_v5 }
 0x268   :  { %953 = vmatmul.mubr.bf16.gmra.mxu1 %v7041_v60  ;;  %1549 = vmatmul.mubr.bf16.gmra.mxu0 %v7041_v60 }
 0x269   :  { %962 = vmatprep.mubr.bf16.mxu1 %v6438_v5  ;;  %1558 = vmatprep.mubr.bf16.mxu0 %v6438_v5 }
 0x270   :  { %963 = vmatmul.mubr.bf16.gmra.mxu1 %v7051_v2  ;;  %1559 = vmatmul.mubr.bf16.gmra.mxu0 %v7051_v2 }
 0x271   :  { %972 = vmatprep.mubr.bf16.mxu1 %v6438_v5  ;;  %1568 = vmatprep.mubr.bf16.mxu0 %v6438_v5 }
 0x278   :  { %973 = vmatmul.mubr.bf16.gmra.mxu1 %v7057_v56  ;;  %1569 = vmatmul.mubr.bf16.gmra.mxu0 %v7057_v56 }
 0x279   :  { %1931 = vmatprep.mubr.bf16.mxu1 %v6438_v5  ;;  %2444 = vmatprep.mubr.bf16.mxu0 %v6438_v5 }
 0x280   :  { %1932 = vmatmul.mubr.bf16.vlgmr.msra.gmra.mxu1 %v6859_v51  ;;  %2445 = vmatmul.mubr.bf16.vlgmr.msra.gmra.mxu0 %v6859_v51  ;;  %v5958_v51 = vld [vmem:[%s8289_s7 + $0x2a4] ss:$16 sps:$4 sm:$0xff]  }
 0x281   :  { %1941 = vmatprep.mubr.bf16.mxu1 %v6438_v5  ;;  %2454 = vmatprep.mubr.bf16.mxu0 %v6438_v5 }
 0x282   :  { %4417 = vmatpush1.bf16.msra.mxu1 %v5941_v6  ;;  %4458 = vmatpush1.bf16.msra.mxu0 %v5944_v7  ;;  %v6016_v6 = vld [vmem:[%s8289_s7 + $0x360] ss:$16 sps:$4 sm:$0xff]   ;;  %v6021_v7 = vld [vmem:[%s8289_s7 + $0x144] ss:$16 sps:$4 sm:$0xff]  }
 0x283   :  { %4418 = vmatprep.subr.bf16.mxu1 %v5949_v32  ;;  %4459 = vmatprep.subr.bf16.mxu0 %v5952_v58  ;;  %v6024_v32 = vld [vmem:[%s8289_s7 + $0x344] ss:$16 sps:$4 sm:$0xff]   ;;  %v6019_v58 = vld [vmem:[%s8289_s7 + $0x140] ss:$16 sps:$4 sm:$0xff]  }
 0x286   :  { %4419 = vmatpush1.bf16.msra.mxu1 %v5947_v42  ;;  %4460 = vmatpush1.bf16.msra.mxu0 %v5950_v9  ;;  %v6022_v42 = vld [vmem:[%s8289_s7 + $0x340] ss:$16 sps:$4 sm:$0xff]   ;;  %v6027_v9 = vld [vmem:[%s8289_s7 + $0x124] ss:$16 sps:$4 sm:$0xff]  }
 0x287   :  { %4420 = vmatprep.subr.bf16.mxu1 %v5955_v10  ;;  %4461 = vmatprep.subr.bf16.mxu0 %v5958_v51  ;;  %v6025_v10 = vld [vmem:[%s8289_s7 + $0x120] ss:$16 sps:$4 sm:$0xff]  }
 0x288   :  { %1942 = vmatmul.mubr.bf16.gmra.mxu1 %v6892_v37  ;;  %2455 = vmatmul.mubr.bf16.gmra.mxu0 %v6892_v37  ;;  %v5970_v37 = vld [vmem:[%s8289_s7 + $0x264] ss:$16 sps:$4 sm:$0xff]   ;;  %v6028_v51 = vld [vmem:[%s8289_s7 + $0x320] ss:$16 sps:$4 sm:$0xff]  }
 0x289   :  { %1951 = vmatprep.mubr.bf16.mxu1 %v6438_v5  ;;  %2464 = vmatprep.mubr.bf16.mxu0 %v6438_v5 }
 0x28a   :  { %4421 = vmatpush1.bf16.msra.mxu1 %v5953_v46  ;;  %4462 = vmatpush1.bf16.msra.mxu0 %v5956_v11  ;;  %v6033_v46 = vld [vmem:[%s8289_s7 + $0x104] ss:$16 sps:$4 sm:$0xff]  }
 0x28b   :  { %4422 = vmatprep.subr.bf16.mxu1 %v5961_v36  ;;  %4463 = vmatprep.subr.bf16.mxu0 %v5964_v13  ;;  %v6036_v11 = vld [vmem:[%s8289_s7 + $0x304] ss:$16 sps:$4 sm:$0xff]   ;;  %v6031_v36 = vld [vmem:[%s8289_s7 + $0x100] ss:$16 sps:$4 sm:$0xff]  }
 0x28c   :  { %v6034_v13 = vld [vmem:[%s8289_s7 + $0x300] ss:$16 sps:$4 sm:$0xff]  }
 0x28e   :  { %4423 = vmatpush1.bf16.msra.mxu1 %v5959_v14  ;;  %4464 = vmatpush1.bf16.msra.mxu0 %v5962_v15  ;;  %v698_v14 = vld [vmem:[%s8290_s6] sm:$0x3] }
 0x28f   :  { %4424 = vmatprep.subr.bf16.mxu1 %v5967_v16  ;;  %4465 = vmatprep.subr.bf16.mxu0 %v5970_v37  ;;  %v7294_v15 = vrot.slane %v698_v14, %v6608_v48 }
 0x290   :  { %1952 = vmatmul.mubr.bf16.gmra.mxu1 %v6930_v57  ;;  %2465 = vmatmul.mubr.bf16.gmra.mxu0 %v6930_v57  ;;  %v5982_v57 = vld [vmem:[%s8289_s7 + $0x224] ss:$16 sps:$4 sm:$0xff]  }
 0x291   :  { %1961 = vmatprep.mubr.bf16.mxu1 %v6438_v5  ;;  %2474 = vmatprep.mubr.bf16.mxu0 %v6438_v5 }
 0x292   :  { %4425 = vmatpush1.bf16.msra.mxu1 %v5965_v17  ;;  %4466 = vmatpush1.bf16.msra.mxu0 %v5968_v18  ;;  %v7302_v18 = vrot.slane %v698_v14, %v6605_v45 }
 0x293   :  { %4426 = vmatprep.subr.bf16.mxu1 %v5973_v33  ;;  %4467 = vmatprep.subr.bf16.mxu0 %v5976_v31 }
 0x296   :  { %4427 = vmatpush1.bf16.msra.mxu1 %v5971_v19  ;;  %4468 = vmatpush1.bf16.msra.mxu0 %v5974_v22 }
 0x297   :  { %4428 = vmatprep.subr.bf16.mxu1 %v5979_v24  ;;  %4469 = vmatprep.subr.bf16.mxu0 %v5982_v57 }
 0x298   :  { %1962 = vmatmul.mubr.bf16.gmra.mxu1 %v6960_v20  ;;  %2475 = vmatmul.mubr.bf16.gmra.mxu0 %v6960_v20  ;;  %v5994_v20 = vld [vmem:[%s8289_s7 + $0x3e4] ss:$16 sps:$4 sm:$0xff]  }
 0x299   :  { %1971 = vmatprep.mubr.bf16.mxu1 %v6438_v5  ;;  %2484 = vmatprep.mubr.bf16.mxu0 %v6438_v5 }
 0x29a   :  { %4429 = vmatpush1.bf16.msra.mxu1 %v5977_v34  ;;  %4470 = vmatpush1.bf16.msra.mxu0 %v5980_v27 }
 0x29b   :  { %4430 = vmatprep.subr.bf16.mxu1 %v5985_v41  ;;  %4471 = vmatprep.subr.bf16.mxu0 %v5988_v30 }
 0x29e   :  { %4431 = vmatpush1.bf16.msra.mxu1 %v5983_v43  ;;  %4472 = vmatpush1.bf16.msra.mxu0 %v5986_v29 }
 0x29f   :  { %4432 = vmatprep.subr.bf16.mxu1 %v5991_v39  ;;  %4473 = vmatprep.subr.bf16.mxu0 %v5994_v20 }
 0x2a0   :  { %1972 = vmatmul.mubr.bf16.gmra.mxu1 %v6971_v49  ;;  %2485 = vmatmul.mubr.bf16.gmra.mxu0 %v6971_v49  ;;  %v6006_v49 = vld [vmem:[%s8289_s7 + $0x3a4] ss:$16 sps:$4 sm:$0xff]  }
 0x2a1   :  { %1981 = vmatprep.mubr.bf16.mxu1 %v6438_v5  ;;  %2494 = vmatprep.mubr.bf16.mxu0 %v6438_v5 }
 0x2a2   :  { %4433 = vmatpush2.bf16.msra.mxu1 %v5989_v52  ;;  %4474 = vmatpush2.bf16.msra.mxu0 %v5992_v53 }
 0x2a3   :  { %4434 = vmatprep.subr.bf16.mxu1 %v5997_v23  ;;  %4475 = vmatprep.subr.bf16.mxu0 %v6000_v47 }
 0x2a6   :  { %4435 = vmatpush2.bf16.msra.mxu1 %v5995_v59  ;;  %4476 = vmatpush2.bf16.msra.mxu0 %v5998_v61 }
 0x2a7   :  { %4436 = vmatprep.subr.bf16.mxu1 %v6003_v25  ;;  %4477 = vmatprep.subr.bf16.mxu0 %v6006_v49 }
 0x2a8   :  { %1982 = vmatmul.mubr.bf16.gmra.mxu1 %v6977_v54  ;;  %2495 = vmatmul.mubr.bf16.gmra.mxu0 %v6977_v54  ;;  %v6018_v54 = vld [vmem:[%s8289_s7 + $0x364] ss:$16 sps:$4 sm:$0xff]  }
 0x2a9   :  { %1991 = vmatprep.mubr.bf16.mxu1 %v6438_v5  ;;  %2504 = vmatprep.mubr.bf16.mxu0 %v6438_v5 }
 0x2aa   :  { %4437 = vmatpush2.bf16.msra.mxu1 %v6001_v62  ;;  %4478 = vmatpush2.bf16.msra.mxu0 %v6004_v63 }
 0x2ab   :  { %4438 = vmatprep.subr.bf16.mxu1 %v6009_v28  ;;  %4479 = vmatprep.subr.bf16.mxu0 %v6012_v1 }
 0x2ae   :  { %4439 = vmatpush2.bf16.msra.mxu1 %v6007_v55  ;;  %4480 = vmatpush2.bf16.msra.mxu0 %v6010_v44 }
 0x2af   :  { %4440 = vmatprep.subr.bf16.mxu1 %v6015_v3  ;;  %4481 = vmatprep.subr.bf16.mxu0 %v6018_v54 }
 0x2b0   :  { %1992 = vmatmul.mubr.bf16.gmra.mxu1 %v6987_v8  ;;  %2505 = vmatmul.mubr.bf16.gmra.mxu0 %v6987_v8  ;;  %v6030_v8 = vld [vmem:[%s8289_s7 + $0x324] ss:$16 sps:$4 sm:$0xff]  }
 0x2b1   :  { %2001 = vmatprep.mubr.bf16.mxu1 %v6438_v5  ;;  %2514 = vmatprep.mubr.bf16.mxu0 %v6438_v5 }
 0x2b2   :  { %4441 = vmatpush2.bf16.msra.mxu1 %v6013_v4  ;;  %4482 = vmatpush2.bf16.msra.mxu0 %v6016_v6 }
 0x2b3   :  { %4442 = vmatprep.subr.bf16.mxu1 %v6021_v7  ;;  %4483 = vmatprep.subr.bf16.mxu0 %v6024_v32 }
 0x2b6   :  { %4443 = vmatpush2.bf16.msra.mxu1 %v6019_v58  ;;  %4484 = vmatpush2.bf16.msra.mxu0 %v6022_v42 }
 0x2b7   :  { %4444 = vmatprep.subr.bf16.mxu1 %v6027_v9  ;;  %4485 = vmatprep.subr.bf16.mxu0 %v6030_v8 }
 0x2b8   :  { %2002 = vmatmul.mubr.bf16.gmra.mxu1 %v6993_v0  ;;  %2515 = vmatmul.mubr.bf16.gmra.mxu0 %v6993_v0  ;;  %v1294_v0 = vld [vmem:[%s8290_s6 + $0x2] sm:$0x3] }
 0x2b9   :  { %2011 = vmatprep.mubr.bf16.mxu1 %v6438_v5  ;;  %2524 = vmatprep.mubr.bf16.mxu0 %v6438_v5  ;;  %v7297_v16 = vrot.slane %v1294_v0, %v6608_v48  ;;  %v7305_v33 = vrot.slane %v1294_v0, %v6605_v45 }
 0x2ba   :  { %4445 = vmatpush2.bf16.msra.mxu1 %v6025_v10  ;;  %4486 = vmatpush2.bf16.msra.mxu0 %v6028_v51 }
 0x2bb   :  { %4446 = vmatprep.subr.bf16.mxu1 %v6033_v46  ;;  %4487 = vmatprep.subr.bf16.mxu0 %v6036_v11 }
 0x2be   :  { %4447 = vmatpush2.bf16.msra.mxu1 %v6031_v36  ;;  %4488 = vmatpush2.bf16.msra.mxu0 %v6034_v13 }
 0x2c0   :  { %v824_v37 = vpop.f32.mrf.mxu1  ;;  %v1420_v17 = vpop.f32.mrf.mxu0  ;;  %2012 = vmatmul.mubr.bf16.gmra.mxu1 %v7003_v35  ;;  %2525 = vmatmul.mubr.bf16.gmra.mxu0 %v7003_v35 }
 0x2c1   :  { %2021 = vmatprep.mubr.bf16.mxu1 %v6438_v5  ;;  %2534 = vmatprep.mubr.bf16.mxu0 %v6438_v5  ;;  %v825_v31 = vadd.f32 %v824_v37, %v7294_v15  ;;  %v1421_v19 = vadd.f32 %v1420_v17, %v7297_v16 }
 0x2c2   :  { %v826_v22 = vpop.f32.mrf.mxu1  ;;  %v1422_v24 = vpop.f32.mrf.mxu0 }
 0x2c3   :  { %v827_v57 = vadd.f32 %v826_v22, %v7302_v18  ;;  %v1423_v35 = vadd.f32 %v1422_v24, %v7305_v33  ;;  %v983_v43 = vmax.f32 %v825_v31, 0.0  ;;  %v1579_v29 = vmax.f32 %v1421_v19, 0.0 }
 0x2c4   :  { %v828_v34 = vpop.f32.mrf.mxu1  ;;  %v1424_v27 = vpop.f32.mrf.mxu0 }
 0x2c5   :  { %v829_v41 = vadd.f32 %v828_v34, %v7294_v15  ;;  %v1425_v30 = vadd.f32 %v1424_v27, %v7297_v16  ;;  %v984_v59 = vmax.f32 %v827_v57, 0.0  ;;  %v1580_v61 = vmax.f32 %v1423_v35, 0.0 }
 0x2c6   :  { %v830_v39 = vpop.f32.mrf.mxu1  ;;  %v1426_v20 = vpop.f32.mrf.mxu0 }
 0x2c7   :  { %v985_v52 = vmax.f32 %v829_v41, 0.0  ;;  %v1581_v53 = vmax.f32 %v1425_v30, 0.0  ;;  %v831_v23 = vadd.f32 %v830_v39, %v7302_v18  ;;  %v1427_v47 = vadd.f32 %v1426_v20, %v7305_v33 }
 0x2c8   :  { %v834_v25 = vpop.f32.mrf.mxu1  ;;  %v1430_v49 = vpop.f32.mrf.mxu0  ;;  %2022 = vmatmul.mubr.bf16.gmra.mxu1 %v7009_v12  ;;  %2535 = vmatmul.mubr.bf16.gmra.mxu0 %v7009_v12 }
 0x2c9   :  { %v1194_v62 = vmax.f32 %v983_v43, %v985_v52  ;;  %v1707_v63 = vmax.f32 %v1579_v29, %v1581_v53  ;;  %v986_v28 = vmax.f32 %v831_v23, 0.0  ;;  %v1582_v1 = vmax.f32 %v1427_v47, 0.0  ;;  %2031 = vmatprep.mubr.bf16.mxu1 %v6438_v5  ;;  %2544 = vmatprep.mubr.bf16.mxu0 %v6438_v5 }
 0x2ca   :  { %v836_v55 = vpop.f32.mrf.mxu1  ;;  %v1432_v44 = vpop.f32.mrf.mxu0 }
 0x2cb   :  { %v1215_v3 = vmax.f32 %v984_v59, %v986_v28  ;;  %v1728_v54 = vmax.f32 %v1580_v61, %v1582_v1  ;;  %v1195_v35 = vmax.f32 %v1194_v62, 0.0  ;;  %v1708_v34 = vmax.f32 %v1707_v63, 0.0 }
 0x2cc   :  { %v838_v4 = vpop.f32.mrf.mxu1  ;;  %v1434_v6 = vpop.f32.mrf.mxu0 }
 0x2cd   :  { %v1216_v27 = vmax.f32 %v1215_v3, 0.0  ;;  %v1729_v41 = vmax.f32 %v1728_v54, 0.0  ;;  %v1709_v20 = vmax.f32 %v1708_v34, 0.0 }
 0x2ce   :  { %v840_v7 = vpop.f32.mrf.mxu1  ;;  %v1436_v32 = vpop.f32.mrf.mxu0 }
 0x2cf   :  { %v1217_v52 = vmax.f32 %v1216_v27, 0.0  ;;  %v1730_v53 = vmax.f32 %v1729_v41, 0.0  ;;  %v1710_v49 = vmax.f32 %v1709_v20, 0.0 }
 0x2d0   :  { %v844_v58 = vpop.f32.mrf.mxu1  ;;  %v1440_v42 = vpop.f32.mrf.mxu0  ;;  %2032 = vmatmul.mubr.bf16.gmra.mxu1 %v7019_v21  ;;  %2545 = vmatmul.mubr.bf16.gmra.mxu0 %v7019_v21 }
 0x2d1   :  { %2041 = vmatprep.mubr.bf16.mxu1 %v6438_v5  ;;  %2554 = vmatprep.mubr.bf16.mxu0 %v6438_v5  ;;  %v1218_v62 = vmax.f32 %v1217_v52, 0.0  ;;  %v1731_v63 = vmax.f32 %v1730_v53, 0.0  ;;  %v1711_v3 = vmax.f32 %v1710_v49, 0.0 }
 0x2d2   :  { %v846_v12 = vpop.f32.mrf.mxu1  ;;  %v1442_v9 = vpop.f32.mrf.mxu0 }
 0x2d3   :  { %v1219_v54 = vmax.f32 %v1218_v62, 0.0  ;;  %v1732_v4 = vmax.f32 %v1731_v63, 0.0  ;;  %v1712_v12 = vmax.f32 %v1711_v3, 0.0 }
 0x2d4   :  { %v848_v8 = vpop.f32.mrf.mxu1  ;;  %v1444_v10 = vpop.f32.mrf.mxu0 }
 0x2d5   :  { %v1220_v9 = vmax.f32 %v1219_v54, 0.0  ;;  %v1733_v8 = vmax.f32 %v1732_v4, 0.0 }
 0x2d6   :  { %v850_v51 = vpop.f32.mrf.mxu1  ;;  %v1446_v46 = vpop.f32.mrf.mxu0 }
 0x2d8   :  { %v854_v11 = vpop.f32.mrf.mxu1  ;;  %v1450_v36 = vpop.f32.mrf.mxu0  ;;  %2042 = vmatmul.mubr.bf16.gmra.mxu1 %v7025_v26  ;;  %2555 = vmatmul.mubr.bf16.gmra.mxu0 %v7025_v26 }
 0x2d9   :  { %2051 = vmatprep.mubr.bf16.mxu1 %v6438_v5  ;;  %2564 = vmatprep.mubr.bf16.mxu0 %v6438_v5 }
 0x2da   :  { %v856_v21 = vpop.f32.mrf.mxu1  ;;  %v1452_v13 = vpop.f32.mrf.mxu0 }
 0x2db   :  { %v1713_v21 = vmax.f32 %v1712_v12, 0.0  ;;  %v1221_v13 = vmax.f32 %v1220_v9, 0.0 }
 0x2dc   :  { %v858_v14 = vpop.f32.mrf.mxu1  ;;  %v1454_v0 = vpop.f32.mrf.mxu0 }
 0x2dd   :  { %v1734_v14 = vmax.f32 %v1733_v8, 0.0 }
 0x2de   :  { %v860_v37 = vpop.f32.mrf.mxu1  ;;  %v1456_v17 = vpop.f32.mrf.mxu0 }
 0x2e0   :  { %v864_v31 = vpop.f32.mrf.mxu1  ;;  %v1460_v19 = vpop.f32.mrf.mxu0  ;;  %2052 = vmatmul.mubr.bf16.gmra.mxu1 %v7035_v38  ;;  %2565 = vmatmul.mubr.bf16.gmra.mxu0 %v7035_v38  ;;  %v1196_v38 = vmax.f32 %v1195_v35, 0.0 }
 0x2e1   :  { %2061 = vmatprep.mubr.bf16.mxu1 %v6438_v5  ;;  %2574 = vmatprep.mubr.bf16.mxu0 %v6438_v5 }
 0x2e2   :  { %v866_v26 = vpop.f32.mrf.mxu1  ;;  %v1462_v22 = vpop.f32.mrf.mxu0  ;;  %v1197_v25 = vmax.f32 %v1196_v38, 0.0 }
 0x2e3   :  { %v1714_v26 = vmax.f32 %v1713_v21, 0.0  ;;  %v1222_v22 = vmax.f32 %v1221_v13, 0.0 }
 0x2e4   :  { %v868_v24 = vpop.f32.mrf.mxu1  ;;  %v1464_v57 = vpop.f32.mrf.mxu0  ;;  %v1198_v44 = vmax.f32 %v1197_v25, 0.0 }
 0x2e5   :  { %v1735_v24 = vmax.f32 %v1734_v14, 0.0 }
 0x2e6   :  { %v870_v30 = vpop.f32.mrf.mxu1  ;;  %v1466_v43 = vpop.f32.mrf.mxu0  ;;  %v1199_v42 = vmax.f32 %v1198_v44, 0.0 }
 0x2e7   :  { %v1223_v30 = vmax.f32 %v1222_v22, 0.0  ;;  %v1736_v43 = vmax.f32 %v1735_v24, 0.0 }
 0x2e8   :  { %v874_v29 = vpop.f32.mrf.mxu1  ;;  %v1470_v39 = vpop.f32.mrf.mxu0  ;;  %2062 = vmatmul.mubr.bf16.gmra.mxu1 %v7041_v60  ;;  %2575 = vmatmul.mubr.bf16.gmra.mxu0 %v7041_v60  ;;  %v1200_v36 = vmax.f32 %v1199_v42, 0.0 }
 0x2e9   :  { %2071 = vmatprep.mubr.bf16.mxu1 %v6438_v5  ;;  %2584 = vmatprep.mubr.bf16.mxu0 %v6438_v5  ;;  %v1224_v62 = vmax.f32 %v1223_v30, 0.0  ;;  %v1737_v63 = vmax.f32 %v1736_v43, 0.0 }
 0x2ea   :  { %v876_v23 = vpop.f32.mrf.mxu1  ;;  %v1472_v47 = vpop.f32.mrf.mxu0  ;;  %v1201_v19 = vmax.f32 %v1200_v36, 0.0 }
 0x2ec   :  { %v878_v59 = vpop.f32.mrf.mxu1  ;;  %v1474_v61 = vpop.f32.mrf.mxu0  ;;  %v1202_v41 = vmax.f32 %v1201_v19, 0.0 }
 0x2ee   :  { %v880_v28 = vpop.f32.mrf.mxu1  ;;  %v1476_v1 = vpop.f32.mrf.mxu0  ;;  %v1203_v59 = vmax.f32 %v1202_v41, 0.0 }
 0x2f0   :  { %v884_v55 = vpop.f32.mrf.mxu1  ;;  %v1480_v60 = vpop.f32.mrf.mxu0  ;;  %2072 = vmatmul.mubr.bf16.gmra.mxu1 %v7051_v2  ;;  %2585 = vmatmul.mubr.bf16.gmra.mxu0 %v7051_v2  ;;  %v6039_v2 = vld [vmem:[%s8289_s7 + $0x4e4] ss:$16 sps:$4 sm:$0xff]   ;;  %v1204_v9 = vmax.f32 %v1203_v59, 0.0 }
 0x2f1   :  { %2081 = vmatprep.mubr.bf16.mxu1 %v6438_v5  ;;  %2594 = vmatprep.mubr.bf16.mxu0 %v6438_v5  ;;  %v6042_v5 = vld [vmem:[%s8289_s7 + $0x6e4] ss:$16 sps:$4 sm:$0xff]  }
 0x2f2   :  { %v886_v6 = vpop.f32.mrf.mxu1  ;;  %v1482_v7 = vpop.f32.mrf.mxu0  ;;  %4498 = vmatprep.subr.bf16.mxu1 %v6039_v2  ;;  %4539 = vmatprep.subr.bf16.mxu0 %v6042_v5 }
 0x2f4   :  { %v888_v32 = vpop.f32.mrf.mxu1  ;;  %v1484_v58 = vpop.f32.mrf.mxu0 }
 0x2f6   :  { %v890_v10 = vpop.f32.mrf.mxu1  ;;  %v1486_v51 = vpop.f32.mrf.mxu0 }
 0x2f7   :  { %v1225_v10 = vmax.f32 %v1224_v62, 0.0  ;;  %v1738_v51 = vmax.f32 %v1737_v63, 0.0 }
 0x2f8   :  { %v894_v46 = vpop.f32.mrf.mxu1  ;;  %v1490_v11 = vpop.f32.mrf.mxu0  ;;  %2082 = vmatmul.mubr.bf16.gmra.mxu1 %v7057_v56  ;;  %2595 = vmatmul.mubr.bf16.gmra.mxu0 %v7057_v56  ;;  %v1715_v56 = vmax.f32 %v1714_v26, 0.0 }
 0x2f9   :  { %v1226_v19 = vmax.f32 %v1225_v10, 0.0  ;;  %v1739_v26 = vmax.f32 %v1738_v51, 0.0 }
 0x2fa   :  { %v896_v0 = vpop.f32.mrf.mxu1  ;;  %v1492_v37 = vpop.f32.mrf.mxu0  ;;  %v1716_v61 = vmax.f32 %v1715_v56, 0.0 }
 0x2fc   :  { %v898_v17 = vpop.f32.mrf.mxu1  ;;  %v1494_v31 = vpop.f32.mrf.mxu0  ;;  %v1717_v8 = vmax.f32 %v1716_v61, 0.0 }
 0x2fd   :  { %v1205_v17 = vmax.f32 %v1204_v9, 0.0 }
 0x2fe   :  { %v900_v57 = vpop.f32.mrf.mxu1  ;;  %v1496_v35 = vpop.f32.mrf.mxu0  ;;  %v1718_v31 = vmax.f32 %v1717_v8, 0.0 }
 0x300   :  { %v904_v34 = vpop.f32.mrf.mxu1  ;;  %v1500_v27 = vpop.f32.mrf.mxu0 }
 0x301   :  { %v905_v29 = vadd.f32 %v904_v34, %v7294_v15  ;;  %v1501_v39 = vadd.f32 %v1500_v27, %v7297_v16 }
 0x302   :  { %v906_v38 = vpop.f32.mrf.mxu1  ;;  %v1502_v20 = vpop.f32.mrf.mxu0 }
 0x303   :  { %v907_v52 = vadd.f32 %v906_v38, %v7302_v18  ;;  %v1503_v53 = vadd.f32 %v1502_v20, %v7305_v33  ;;  %v1015_v28 = vmax.f32 %v905_v29, 0.0  ;;  %v1611_v1 = vmax.f32 %v1501_v39, 0.0 }
 0x304   :  { %v908_v23 = vpop.f32.mrf.mxu1  ;;  %v1504_v47 = vpop.f32.mrf.mxu0  ;;  %v1206_v38 = vmax.f32 %v1205_v17, 0.0  ;;  %v1719_v20 = vmax.f32 %v1718_v31, 0.0 }
 0x305   :  { %v909_v25 = vadd.f32 %v908_v23, %v7294_v15  ;;  %v1505_v49 = vadd.f32 %v1504_v47, %v7297_v16  ;;  %v1016_v6 = vmax.f32 %v907_v52, 0.0  ;;  %v1612_v7 = vmax.f32 %v1503_v53, 0.0 }
 0x306   :  { %v910_v55 = vpop.f32.mrf.mxu1  ;;  %v1506_v60 = vpop.f32.mrf.mxu0  ;;  %v1227_v52 = vmax.f32 %v1226_v19, 0.0  ;;  %v1740_v53 = vmax.f32 %v1739_v26, 0.0 }
 0x307   :  { %v1017_v44 = vmax.f32 %v909_v25, 0.0  ;;  %v1613_v3 = vmax.f32 %v1505_v49, 0.0  ;;  %v911_v54 = vadd.f32 %v910_v55, %v7302_v18  ;;  %v1507_v4 = vadd.f32 %v1506_v60, %v7305_v33 }
 0x308   :  { %v914_v32 = vpop.f32.mrf.mxu1  ;;  %v1510_v58 = vpop.f32.mrf.mxu0 }
 0x309   :  { %v1236_v42 = vmax.f32 %v1015_v28, %v1017_v44  ;;  %v1749_v15 = vmax.f32 %v1611_v1, %v1613_v3  ;;  %v1018_v12 = vmax.f32 %v911_v54, 0.0  ;;  %v1614_v16 = vmax.f32 %v1507_v4, 0.0 }
 0x30a   :  { %v916_v2 = vpop.f32.mrf.mxu1  ;;  %v1512_v5 = vpop.f32.mrf.mxu0  ;;  %v1207_v44 = vmax.f32 %v1206_v38, 0.0  ;;  %v1720_v3 = vmax.f32 %v1719_v20, 0.0  ;;  %v1228_v54 = vmax.f32 %v1227_v52, 0.0  ;;  %v1741_v4 = vmax.f32 %v1740_v53, 0.0 }
 0x30b   :  { %v1237_v46 = vmax.f32 %v1236_v42, 0.0  ;;  %v1750_v11 = vmax.f32 %v1749_v15, 0.0  ;;  %v1257_v36 = vmax.f32 %v1016_v6, %v1018_v12  ;;  %v1770_v18 = vmax.f32 %v1612_v7, %v1614_v16 }
 0x30c   :  { %v918_v21 = vpop.f32.mrf.mxu1  ;;  %v1514_v33 = vpop.f32.mrf.mxu0  ;;  %v1208_v2 = vmax.f32 %v1207_v44, 0.0  ;;  %v1721_v5 = vmax.f32 %v1720_v3, 0.0 }
 0x30d   :  { %v1238_v13 = vmax.f32 %v1237_v46, 0.0  ;;  %v1751_v14 = vmax.f32 %v1750_v11, 0.0  ;;  %v1258_v0 = vmax.f32 %v1257_v36, 0.0  ;;  %v1771_v37 = vmax.f32 %v1770_v18, 0.0 }
 0x30e   :  { %v920_v22 = vpop.f32.mrf.mxu1  ;;  %v1516_v24 = vpop.f32.mrf.mxu0  ;;  %v1229_v46 = vmax.f32 %v1228_v54, 0.0  ;;  %v1742_v11 = vmax.f32 %v1741_v4, 0.0 }
 0x30f   :  { %v1239_v57 = vmax.f32 %v1238_v13, 0.0  ;;  %v1752_v35 = vmax.f32 %v1751_v14, 0.0  ;;  %v1259_v34 = vmax.f32 %v1258_v0, 0.0  ;;  %v1772_v27 = vmax.f32 %v1771_v37, 0.0 }
 0x310   :  { %v924_v41 = vpop.f32.mrf.mxu1  ;;  %v1520_v56 = vpop.f32.mrf.mxu0  ;;  %v1209_v22 = vrot.slane %v1208_v2, 4  ;;  %v1722_v24 = vrot.slane %v1721_v5, 4 }
 0x311   :  { %v1240_v30 = vmax.f32 %v1239_v57, 0.0  ;;  %v1753_v43 = vmax.f32 %v1752_v35, 0.0  ;;  %v1260_v29 = vmax.f32 %v1259_v34, 0.0  ;;  %v1773_v39 = vmax.f32 %v1772_v27, 0.0 }
 0x312   :  { %v926_v23 = vpop.f32.mrf.mxu1  ;;  %v1522_v47 = vpop.f32.mrf.mxu0  ;;  %v1230_v57 = vrot.slane %v1229_v46, 4  ;;  %v1743_v35 = vrot.slane %v1742_v11, 4 }
 0x313   :  { %v1241_v59 = vmax.f32 %v1240_v30, 0.0  ;;  %v1754_v61 = vmax.f32 %v1753_v43, 0.0  ;;  %v1261_v25 = vmax.f32 %v1260_v29, 0.0  ;;  %v1774_v49 = vmax.f32 %v1773_v39, 0.0 }
 0x314   :  { %v928_v62 = vpop.f32.mrf.mxu1  ;;  %v1524_v63 = vpop.f32.mrf.mxu0  ;;  %v1210_v23 = vmax.f32 %v1208_v2, %v1209_v22  ;;  %v1723_v47 = vmax.f32 %v1721_v5, %v1722_v24 }
 0x315   :  { %v1242_v28 = vmax.f32 %v1241_v59, 0.0  ;;  %v1755_v1 = vmax.f32 %v1754_v61, 0.0  ;;  %v1262_v55 = vmax.f32 %v1261_v25, 0.0  ;;  %v1775_v60 = vmax.f32 %v1774_v49, 0.0 }
 0x316   :  { %v930_v6 = vpop.f32.mrf.mxu1  ;;  %v1526_v7 = vpop.f32.mrf.mxu0  ;;  %v1231_v25 = vmax.f32 %v1229_v46, %v1230_v57  ;;  %v1744_v49 = vmax.f32 %v1742_v11, %v1743_v35 }
 0x317   :  { %v1243_v32 = vmax.f32 %v1242_v28, 0.0  ;;  %v1756_v58 = vmax.f32 %v1755_v1, 0.0  ;;  %v1263_v42 = vmax.f32 %v1262_v55, 0.0  ;;  %v1776_v15 = vmax.f32 %v1775_v60, 0.0 }
 0x318   :  { %v934_v12 = vpop.f32.mrf.mxu1  ;;  %v1530_v16 = vpop.f32.mrf.mxu0  ;;  %v1211_v6 = vrot.slane %v1210_v23, 2  ;;  %v1724_v7 = vrot.slane %v1723_v47, 2 }
 0x319   :  { %v1244_v9 = vmax.f32 %v1243_v32, 0.0  ;;  %v1757_v8 = vmax.f32 %v1756_v58, 0.0  ;;  %v1264_v10 = vmax.f32 %v1263_v42, 0.0  ;;  %v1777_v51 = vmax.f32 %v1776_v15, 0.0 }
 0x31a   :  { %v936_v36 = vpop.f32.mrf.mxu1  ;;  %v1532_v18 = vpop.f32.mrf.mxu0  ;;  %v1232_v42 = vrot.slane %v1231_v25, 2  ;;  %v1745_v15 = vrot.slane %v1744_v49, 2 }
 0x31b   :  { %v1245_v21 = vmax.f32 %v1244_v9, 0.0  ;;  %v1758_v33 = vmax.f32 %v1757_v8, 0.0  ;;  %v1265_v13 = vmax.f32 %v1264_v10, 0.0  ;;  %v1778_v14 = vmax.f32 %v1777_v51, 0.0 }
 0x31c   :  { %v938_v0 = vpop.f32.mrf.mxu1  ;;  %v1534_v37 = vpop.f32.mrf.mxu0  ;;  %v1212_v36 = vmax.f32 %v1210_v23, %v1211_v6  ;;  %v1725_v18 = vmax.f32 %v1723_v47, %v1724_v7 }
 0x31d   :  { %v1246_v17 = vmax.f32 %v1245_v21, 0.0  ;;  %v1759_v31 = vmax.f32 %v1758_v33, 0.0  ;;  %v1266_v19 = vmax.f32 %v1265_v13, 0.0  ;;  %v1779_v26 = vmax.f32 %v1778_v14, 0.0 }
 0x31e   :  { %v940_v34 = vpop.f32.mrf.mxu1  ;;  %v1536_v27 = vpop.f32.mrf.mxu0  ;;  %v1233_v13 = vmax.f32 %v1231_v25, %v1232_v42  ;;  %v1746_v14 = vmax.f32 %v1744_v49, %v1745_v15 }
 0x31f   :  { %v1247_v41 = vmax.f32 %v1246_v17, 0.0  ;;  %v1760_v56 = vmax.f32 %v1759_v31, 0.0  ;;  %v1267_v30 = vmax.f32 %v1266_v19, 0.0  ;;  %v1780_v43 = vmax.f32 %v1779_v26, 0.0 }
 0x320   :  { %v944_v29 = vpop.f32.mrf.mxu1  ;;  %v1540_v39 = vpop.f32.mrf.mxu0  ;;  %v1213_v34 = vrot.slane %v1212_v36, 1  ;;  %v1726_v27 = vrot.slane %v1725_v18, 1 }
 0x321   :  { %v1248_v38 = vmax.f32 %v1247_v41, 0.0  ;;  %v1761_v20 = vmax.f32 %v1760_v56, 0.0  ;;  %v1268_v52 = vmax.f32 %v1267_v30, 0.0  ;;  %v1781_v53 = vmax.f32 %v1780_v43, 0.0 }
 0x322   :  { %v946_v59 = vpop.f32.mrf.mxu1  ;;  %v1542_v61 = vpop.f32.mrf.mxu0  ;;  %v1234_v30 = vrot.slane %v1233_v13, 1  ;;  %v1747_v43 = vrot.slane %v1746_v14, 1  ;;  %v1214_v25 = vmax.f32 %v1212_v36, %v1213_v34  ;;  %v1727_v49 = vmax.f32 %v1725_v18, %v1726_v27  ;;  %v1807_v36 = vld [vmem:[%s8290_s6 + $0x4] sm:$0x3]  ;;  %v6043_v18 = vld [vmem:[%s8289_s7 + $0x4c0] ss:$16 sps:$4 sm:$0xff]  }
 0x323   :  { %v1249_v62 = vmax.f32 %v1248_v38, 0.0  ;;  %v1762_v63 = vmax.f32 %v1761_v20, 0.0  ;;  %v1269_v28 = vmax.f32 %v1268_v52, 0.0  ;;  %v1782_v1 = vmax.f32 %v1781_v53, 0.0 }
 0x324   :  { %v948_v55 = vpop.f32.mrf.mxu1  ;;  %v1544_v60 = vpop.f32.mrf.mxu0 }
 0x325   :  { %v1250_v44 = vmax.f32 %v1249_v62, 0.0  ;;  %v1763_v3 = vmax.f32 %v1762_v63, 0.0  ;;  %v1270_v54 = vmax.f32 %v1269_v28, 0.0  ;;  %v1783_v4 = vmax.f32 %v1782_v1, 0.0 }
 0x326   :  { %v950_v32 = vpop.f32.mrf.mxu1  ;;  %v1546_v58 = vpop.f32.mrf.mxu0  ;;  %v1235_v28 = vmax.f32 %v1233_v13, %v1234_v30  ;;  %v1748_v55 = vmax.f32 %v1746_v14, %v1747_v43  ;;  %v6051_v13 = vld [vmem:[%s8289_s7 + $0x4a4] ss:$16 sps:$4 sm:$0xff]  }
 0x327   :  { %v1251_v12 = vrot.slane %v1250_v44, 4  ;;  %v1764_v16 = vrot.slane %v1763_v3, 4  ;;  %v1271_v9 = vmax.f32 %v1270_v54, 0.0  ;;  %v1784_v8 = vmax.f32 %v1783_v4, 0.0  ;;  %v6054_v14 = vld [vmem:[%s8289_s7 + $0x6a4] ss:$16 sps:$4 sm:$0xff]  }
 0x328   :  { %v954_v10 = vpop.f32.mrf.mxu1  ;;  %v1550_v51 = vpop.f32.mrf.mxu0 }
 0x329   :  { %v1252_v2 = vmax.f32 %v1250_v44, %v1251_v12  ;;  %v1765_v5 = vmax.f32 %v1763_v3, %v1764_v16  ;;  %v1272_v46 = vrot.slane %v1271_v9, 4  ;;  %v1785_v11 = vrot.slane %v1784_v8, 4  ;;  %v6037_v12 = vld [vmem:[%s8289_s7 + $0x4e0] ss:$16 sps:$4 sm:$0xff]   ;;  %v6045_v10 = vld [vmem:[%s8289_s7 + $0x4c4] ss:$16 sps:$4 sm:$0xff]  }
 0x32a   :  { %v956_v21 = vpop.f32.mrf.mxu1  ;;  %v1552_v33 = vpop.f32.mrf.mxu0  ;;  %v6040_v16 = vld [vmem:[%s8289_s7 + $0x6e0] ss:$16 sps:$4 sm:$0xff]   ;;  %v6048_v51 = vld [vmem:[%s8289_s7 + $0x6c4] ss:$16 sps:$4 sm:$0xff]  }
 0x32b   :  { %v1253_v0 = vrot.slane %v1252_v2, 2  ;;  %v1766_v37 = vrot.slane %v1765_v5, 2  ;;  %v1273_v17 = vmax.f32 %v1271_v9, %v1272_v46  ;;  %v1786_v31 = vmax.f32 %v1784_v8, %v1785_v11  ;;  %v6046_v21 = vld [vmem:[%s8289_s7 + $0x6c0] ss:$16 sps:$4 sm:$0xff]   ;;  %v2320_v33 = vld [vmem:[%s8290_s6 + $0x6] sm:$0x3] }
 0x32c   :  { %v958_v19 = vpop.f32.mrf.mxu1  ;;  %v1554_v26 = vpop.f32.mrf.mxu0 }
 0x32d   :  { %v1254_v22 = vmax.f32 %v1252_v2, %v1253_v0  ;;  %v1767_v24 = vmax.f32 %v1765_v5, %v1766_v37  ;;  %v1274_v57 = vrot.slane %v1273_v17, 2  ;;  %v1787_v35 = vrot.slane %v1786_v31, 2 }
 0x32e   :  { %v960_v41 = vpop.f32.mrf.mxu1  ;;  %v1556_v56 = vpop.f32.mrf.mxu0  ;;  %v7404_v19 = vrot.slane %v1807_v36, %v6608_v48  ;;  %v7407_v26 = vrot.slane %v2320_v33, %v6608_v48 }
 0x32f   :  { %v1255_v29 = vrot.slane %v1254_v22, 1  ;;  %v1768_v39 = vrot.slane %v1767_v24, 1  ;;  %v1275_v38 = vmax.f32 %v1273_v17, %v1274_v57  ;;  %v1788_v20 = vmax.f32 %v1786_v31, %v1787_v35  ;;  %v6057_v57 = vld [vmem:[%s8289_s7 + $0x484] ss:$16 sps:$4 sm:$0xff]  }
 0x330   :  { %v964_v52 = vpop.f32.mrf.mxu1  ;;  %v1560_v53 = vpop.f32.mrf.mxu0  ;;  %v6060_v35 = vld [vmem:[%s8289_s7 + $0x684] ss:$16 sps:$4 sm:$0xff]   ;;  %v7422_v41 = vrot.slane %v1807_v36, %v6605_v45  ;;  %v7425_v56 = vrot.slane %v2320_v33, %v6605_v45  ;;  %v6067_v36 = vld [vmem:[%s8289_s7 + $0x440] ss:$16 sps:$4 sm:$0xff]  }
 0x331   :  { %v1256_v23 = vmax.f32 %v1254_v22, %v1255_v29  ;;  %v1769_v47 = vmax.f32 %v1767_v24, %v1768_v39  ;;  %v1276_v59 = vrot.slane %v1275_v38, 1  ;;  %v1789_v61 = vrot.slane %v1788_v20, 1  ;;  %v6049_v22 = vld [vmem:[%s8289_s7 + $0x4a0] ss:$16 sps:$4 sm:$0xff]   ;;  %v6063_v52 = vld [vmem:[%s8289_s7 + $0x464] ss:$16 sps:$4 sm:$0xff]  }
 0x332   :  { %v966_v62 = vpop.f32.mrf.mxu1  ;;  %v1562_v63 = vpop.f32.mrf.mxu0  ;;  %v6052_v24 = vld [vmem:[%s8289_s7 + $0x6a0] ss:$16 sps:$4 sm:$0xff]   ;;  %v6066_v53 = vld [vmem:[%s8289_s7 + $0x664] ss:$16 sps:$4 sm:$0xff]  }
 0x333   :  { %v1277_v1 = vmax.f32 %v1275_v38, %v1276_v59  ;;  %v1790_v60 = vmax.f32 %v1788_v20, %v1789_v61  ;;  %v2822_v54 = vsel %vm2821_vm1, %v1256_v23, %v1214_v25  ;;  %v2830_v4 = vsel %vm2821_vm1, %v1769_v47, %v1727_v49  ;;  %v6055_v38 = vld [vmem:[%s8289_s7 + $0x480] ss:$16 sps:$4 sm:$0xff]  }
 0x334   :  { %v968_v44 = vpop.f32.mrf.mxu1  ;;  %v1564_v3 = vpop.f32.mrf.mxu0  ;;  %v7371_v9 = vpack.c.bf16 %v2822_v54, %v2822_v54  ;;  %v7373_v8 = vpack.c.bf16 %v2830_v4, %v2830_v4  ;;  %v6058_v20 = vld [vmem:[%s8289_s7 + $0x680] ss:$16 sps:$4 sm:$0xff]  }
 0x335   :  { %v2823_v6 = vsel %vm2821_vm1, %v1277_v1, %v1235_v28  ;;  %v2831_v7 = vsel %vm2821_vm1, %v1790_v60, %v1748_v55  ;;  %v6061_v55 = vld [vmem:[%s8289_s7 + $0x460] ss:$16 sps:$4 sm:$0xff]  }
 0x336   :  { %v970_v32 = vpop.f32.mrf.mxu1  ;;  %v1566_v58 = vpop.f32.mrf.mxu0  ;;  %v7361_v42 = vpack.c.bf16 %v2823_v6, %v2823_v6  ;;  %v7363_v15 = vpack.c.bf16 %v2831_v7, %v2831_v7  ;;  %v6064_v60 = vld [vmem:[%s8289_s7 + $0x660] ss:$16 sps:$4 sm:$0xff]   ;;  %v6069_v6 = vld [vmem:[%s8289_s7 + $0x444] ss:$16 sps:$4 sm:$0xff]  }
 0x337   :  { %v6072_v7 = vld [vmem:[%s8289_s7 + $0x644] ss:$16 sps:$4 sm:$0xff]  }
 0x338   :  { %v974_v2 = vpop.f32.mrf.mxu1  ;;  %v1570_v5 = vpop.f32.mrf.mxu0  ;;  %4448 = vmatprep.mubr.bf16.mxu1 %v7361_v42  ;;  %4489 = vmatprep.mubr.bf16.mxu0 %v7363_v15 }
 0x339   :  { %4449 = vmatmul.mubr.bf16.vlgmr.msra.gmra.mxu1 %v7371_v9  ;;  %4490 = vmatmul.mubr.bf16.vlgmr.msra.gmra.mxu0 %v7373_v8 }
 0x33a   :  { %v976_v46 = vpop.f32.mrf.mxu1  ;;  %v1572_v11 = vpop.f32.mrf.mxu0  ;;  %4499 = vmatpush1.bf16.msra.mxu1 %v6037_v12  ;;  %4540 = vmatpush1.bf16.msra.mxu0 %v6040_v16 }
 0x33b   :  { %4500 = vmatprep.subr.bf16.mxu1 %v6045_v10  ;;  %4541 = vmatprep.subr.bf16.mxu0 %v6048_v51 }
 0x33c   :  { %v978_v0 = vpop.f32.mrf.mxu1  ;;  %v1574_v37 = vpop.f32.mrf.mxu0 }
 0x33e   :  { %v980_v17 = vpop.f32.mrf.mxu1  ;;  %v1576_v31 = vpop.f32.mrf.mxu0  ;;  %4501 = vmatpush1.bf16.msra.mxu1 %v6043_v18  ;;  %4542 = vmatpush1.bf16.msra.mxu0 %v6046_v21  ;;  %v6070_v18 = vld [vmem:[%s8289_s7 + $0x640] ss:$16 sps:$4 sm:$0xff]  }
 0x33f   :  { %4502 = vmatprep.subr.bf16.mxu1 %v6051_v13  ;;  %4543 = vmatprep.subr.bf16.mxu0 %v6054_v14  ;;  %v6075_v13 = vld [vmem:[%s8289_s7 + $0x424] ss:$16 sps:$4 sm:$0xff]  }
 0x340   :  { %v1933_v34 = vpop.f32.mrf.mxu1  ;;  %v2446_v27 = vpop.f32.mrf.mxu0  ;;  %v6078_v14 = vld [vmem:[%s8289_s7 + $0x624] ss:$16 sps:$4 sm:$0xff]  }
 0x341   :  { %v1934_v30 = vadd.f32 %v1933_v34, %v7404_v19  ;;  %v2447_v43 = vadd.f32 %v2446_v27, %v7407_v26 }
 0x342   :  { %v1935_v29 = vpop.f32.mrf.mxu1  ;;  %v2448_v39 = vpop.f32.mrf.mxu0  ;;  %4503 = vmatpush1.bf16.msra.mxu1 %v6049_v22  ;;  %4544 = vmatpush1.bf16.msra.mxu0 %v6052_v24  ;;  %v6073_v22 = vld [vmem:[%s8289_s7 + $0x420] ss:$16 sps:$4 sm:$0xff]  }
 0x343   :  { %4504 = vmatprep.subr.bf16.mxu1 %v6057_v57  ;;  %4545 = vmatprep.subr.bf16.mxu0 %v6060_v35  ;;  %v1936_v23 = vadd.f32 %v1935_v29, %v7422_v41  ;;  %v2449_v47 = vadd.f32 %v2448_v39, %v7425_v56  ;;  %v2092_v62 = vmax.f32 %v1934_v30, 0.0  ;;  %v2605_v63 = vmax.f32 %v2447_v43, 0.0  ;;  %v6076_v24 = vld [vmem:[%s8289_s7 + $0x620] ss:$16 sps:$4 sm:$0xff]   ;;  %v6081_v57 = vld [vmem:[%s8289_s7 + $0x404] ss:$16 sps:$4 sm:$0xff]  }
 0x344   :  { %v1937_v59 = vpop.f32.mrf.mxu1  ;;  %v2450_v61 = vpop.f32.mrf.mxu0  ;;  %v6084_v35 = vld [vmem:[%s8289_s7 + $0x604] ss:$16 sps:$4 sm:$0xff]   ;;  %v6079_v29 = vld [vmem:[%s8289_s7 + $0x400] ss:$16 sps:$4 sm:$0xff]  }
 0x345   :  { %v1938_v25 = vadd.f32 %v1937_v59, %v7404_v19  ;;  %v2451_v49 = vadd.f32 %v2450_v61, %v7407_v26  ;;  %v2093_v32 = vmax.f32 %v1936_v23, 0.0  ;;  %v2606_v58 = vmax.f32 %v2449_v47, 0.0  ;;  %v6082_v39 = vld [vmem:[%s8289_s7 + $0x600] ss:$16 sps:$4 sm:$0xff]  }
 0x346   :  { %v1939_v28 = vpop.f32.mrf.mxu1  ;;  %v2452_v1 = vpop.f32.mrf.mxu0  ;;  %4505 = vmatpush1.bf16.msra.mxu1 %v6055_v38  ;;  %4546 = vmatpush1.bf16.msra.mxu0 %v6058_v20  ;;  %v6087_v38 = vld [vmem:[%s8289_s7 + $0x5e4] ss:$16 sps:$4 sm:$0xff]   ;;  %v6085_v59 = vld [vmem:[%s8289_s7 + $0x5e0] ss:$16 sps:$4 sm:$0xff]  }
 0x347   :  { %v2094_v44 = vmax.f32 %v1938_v25, 0.0  ;;  %v2607_v3 = vmax.f32 %v2451_v49, 0.0  ;;  %v1940_v54 = vadd.f32 %v1939_v28, %v7422_v41  ;;  %v2453_v4 = vadd.f32 %v2452_v1, %v7425_v56  ;;  %4506 = vmatprep.subr.bf16.mxu1 %v6063_v52  ;;  %4547 = vmatprep.subr.bf16.mxu0 %v6066_v53  ;;  %v6090_v20 = vld [vmem:[%s8289_s7 + $0x7e4] ss:$16 sps:$4 sm:$0xff]   ;;  %v6088_v61 = vld [vmem:[%s8289_s7 + $0x7e0] ss:$16 sps:$4 sm:$0xff]  }
 0x348   :  { %v1943_v12 = vpop.f32.mrf.mxu1  ;;  %v2456_v16 = vpop.f32.mrf.mxu0  ;;  %v6093_v25 = vld [vmem:[%s8289_s7 + $0x5c4] ss:$16 sps:$4 sm:$0xff]  }
 0x349   :  { %v7459_v10 = vmax.f32 %v2092_v62, %v2094_v44  ;;  %v7461_v51 = vmax.f32 %v2605_v63, %v2607_v3  ;;  %v2095_v2 = vmax.f32 %v1940_v54, 0.0  ;;  %v2608_v5 = vmax.f32 %v2453_v4, 0.0  ;;  %v6096_v49 = vld [vmem:[%s8289_s7 + $0x7c4] ss:$16 sps:$4 sm:$0xff]  }
 0x34a   :  { %v1945_v46 = vpop.f32.mrf.mxu1  ;;  %v2458_v11 = vpop.f32.mrf.mxu0  ;;  %4507 = vmatpush1.bf16.msra.mxu1 %v6061_v55  ;;  %4548 = vmatpush1.bf16.msra.mxu0 %v6064_v60  ;;  %v6091_v55 = vld [vmem:[%s8289_s7 + $0x5c0] ss:$16 sps:$4 sm:$0xff]   ;;  %v6099_v44 = vld [vmem:[%s8289_s7 + $0x5a4] ss:$16 sps:$4 sm:$0xff]  }
 0x34b   :  { %v7469_v21 = vmax.f32 %v2093_v32, %v2095_v2  ;;  %v7471_v33 = vmax.f32 %v2606_v58, %v2608_v5  ;;  %4508 = vmatprep.subr.bf16.mxu1 %v6069_v6  ;;  %4549 = vmatprep.subr.bf16.mxu0 %v6072_v7  ;;  %v6094_v60 = vld [vmem:[%s8289_s7 + $0x7c0] ss:$16 sps:$4 sm:$0xff]   ;;  %v6102_v3 = vld [vmem:[%s8289_s7 + $0x7a4] ss:$16 sps:$4 sm:$0xff]  }
 0x34c   :  { %v1947_v0 = vpop.f32.mrf.mxu1  ;;  %v2460_v37 = vpop.f32.mrf.mxu0  ;;  %v6097_v32 = vld [vmem:[%s8289_s7 + $0x5a0] ss:$16 sps:$4 sm:$0xff]   ;;  %v6105_v12 = vld [vmem:[%s8289_s7 + $0x584] ss:$16 sps:$4 sm:$0xff]  }
 0x34d   :  { %v6100_v58 = vld [vmem:[%s8289_s7 + $0x7a0] ss:$16 sps:$4 sm:$0xff]   ;;  %v6108_v16 = vld [vmem:[%s8289_s7 + $0x784] ss:$16 sps:$4 sm:$0xff]  }
 0x34e   :  { %v1949_v17 = vpop.f32.mrf.mxu1  ;;  %v2462_v31 = vpop.f32.mrf.mxu0  ;;  %4509 = vmatpush1.bf16.msra.mxu1 %v6067_v36  ;;  %4550 = vmatpush1.bf16.msra.mxu0 %v6070_v18  ;;  %v6103_v36 = vld [vmem:[%s8289_s7 + $0x580] ss:$16 sps:$4 sm:$0xff]  }
 0x34f   :  { %4510 = vmatprep.subr.bf16.mxu1 %v6075_v13  ;;  %4551 = vmatprep.subr.bf16.mxu0 %v6078_v14  ;;  %v6106_v18 = vld [vmem:[%s8289_s7 + $0x780] ss:$16 sps:$4 sm:$0xff]   ;;  %v6111_v13 = vld [vmem:[%s8289_s7 + $0x564] ss:$16 sps:$4 sm:$0xff]   ;;  %v2221_v17 = vmax.f32 %v7459_v10, 0.0  ;;  %v2734_v31 = vmax.f32 %v7461_v51, 0.0 }
 0x350   :  { %v1953_v34 = vpop.f32.mrf.mxu1  ;;  %v2466_v27 = vpop.f32.mrf.mxu0  ;;  %v6114_v14 = vld [vmem:[%s8289_s7 + $0x764] ss:$16 sps:$4 sm:$0xff]  }
 0x351   :  { %v6109_v34 = vld [vmem:[%s8289_s7 + $0x560] ss:$16 sps:$4 sm:$0xff]   ;;  %v6117_v10 = vld [vmem:[%s8289_s7 + $0x544] ss:$16 sps:$4 sm:$0xff]  }
 0x352   :  { %v1955_v30 = vpop.f32.mrf.mxu1  ;;  %v2468_v43 = vpop.f32.mrf.mxu0  ;;  %4511 = vmatpush1.bf16.msra.mxu1 %v6073_v22  ;;  %4552 = vmatpush1.bf16.msra.mxu0 %v6076_v24  ;;  %v2242_v22 = vmax.f32 %v7469_v21, 0.0  ;;  %v2755_v24 = vmax.f32 %v7471_v33, 0.0  ;;  %v6112_v27 = vld [vmem:[%s8289_s7 + $0x760] ss:$16 sps:$4 sm:$0xff]   ;;  %v6120_v51 = vld [vmem:[%s8289_s7 + $0x744] ss:$16 sps:$4 sm:$0xff]  }
 0x353   :  { %4512 = vmatprep.subr.bf16.mxu1 %v6081_v57  ;;  %4553 = vmatprep.subr.bf16.mxu0 %v6084_v35  ;;  %v2222_v30 = vmax.f32 %v2221_v17, 0.0  ;;  %v2735_v43 = vmax.f32 %v2734_v31, 0.0 }
 0x354   :  { %v1957_v52 = vpop.f32.mrf.mxu1  ;;  %v2470_v53 = vpop.f32.mrf.mxu0 }
 0x355   :  { %v6115_v52 = vld [vmem:[%s8289_s7 + $0x540] ss:$16 sps:$4 sm:$0xff]  }
 0x356   :  { %v1959_v23 = vpop.f32.mrf.mxu1  ;;  %v2472_v47 = vpop.f32.mrf.mxu0  ;;  %4513 = vmatpush1.bf16.msra.mxu1 %v6079_v29  ;;  %4554 = vmatpush1.bf16.msra.mxu0 %v6082_v39  ;;  %v2243_v29 = vmax.f32 %v2242_v22, 0.0  ;;  %v2756_v39 = vmax.f32 %v2755_v24, 0.0  ;;  %v6118_v53 = vld [vmem:[%s8289_s7 + $0x740] ss:$16 sps:$4 sm:$0xff]  }
 0x357   :  { %4514 = vmatprep.subr.bf16.mxu1 %v6087_v38  ;;  %4555 = vmatprep.subr.bf16.mxu0 %v6090_v20  ;;  %v6123_v23 = vld [vmem:[%s8289_s7 + $0x524] ss:$16 sps:$4 sm:$0xff]  }
 0x358   :  { %v1963_v62 = vpop.f32.mrf.mxu1  ;;  %v2476_v63 = vpop.f32.mrf.mxu0  ;;  %v6126_v47 = vld [vmem:[%s8289_s7 + $0x724] ss:$16 sps:$4 sm:$0xff]  }
 0x359   :  { %v2244_v62 = vmax.f32 %v2243_v29, 0.0  ;;  %v2757_v63 = vmax.f32 %v2756_v39, 0.0 }
 0x35a   :  { %v1965_v28 = vpop.f32.mrf.mxu1  ;;  %v2478_v1 = vpop.f32.mrf.mxu0  ;;  %4515 = vmatpush2.bf16.msra.mxu1 %v6085_v59  ;;  %4556 = vmatpush2.bf16.msra.mxu0 %v6088_v61 }
 0x35b   :  { %4516 = vmatprep.subr.bf16.mxu1 %v6093_v25  ;;  %4557 = vmatprep.subr.bf16.mxu0 %v6096_v49  ;;  %v2223_v25 = vmax.f32 %v2222_v30, 0.0  ;;  %v2736_v49 = vmax.f32 %v2735_v43, 0.0 }
 0x35c   :  { %v1967_v54 = vpop.f32.mrf.mxu1  ;;  %v2480_v4 = vpop.f32.mrf.mxu0 }
 0x35e   :  { %v1969_v6 = vpop.f32.mrf.mxu1  ;;  %v2482_v7 = vpop.f32.mrf.mxu0  ;;  %4517 = vmatpush2.bf16.msra.mxu1 %v6091_v55  ;;  %4558 = vmatpush2.bf16.msra.mxu0 %v6094_v60  ;;  %v6121_v55 = vld [vmem:[%s8289_s7 + $0x520] ss:$16 sps:$4 sm:$0xff]  }
 0x35f   :  { %4518 = vmatprep.subr.bf16.mxu1 %v6099_v44  ;;  %4559 = vmatprep.subr.bf16.mxu0 %v6102_v3  ;;  %v6124_v60 = vld [vmem:[%s8289_s7 + $0x720] ss:$16 sps:$4 sm:$0xff]   ;;  %v6129_v44 = vld [vmem:[%s8289_s7 + $0x504] ss:$16 sps:$4 sm:$0xff]   ;;  %v2224_v6 = vmax.f32 %v2223_v25, 0.0  ;;  %v2737_v7 = vmax.f32 %v2736_v49, 0.0 }
 0x360   :  { %v1973_v2 = vpop.f32.mrf.mxu1  ;;  %v2486_v5 = vpop.f32.mrf.mxu0  ;;  %v6132_v3 = vld [vmem:[%s8289_s7 + $0x704] ss:$16 sps:$4 sm:$0xff]  }
 0x361   :  { %v6127_v2 = vld [vmem:[%s8289_s7 + $0x500] ss:$16 sps:$4 sm:$0xff]  }
 0x362   :  { %v1975_v46 = vpop.f32.mrf.mxu1  ;;  %v2488_v11 = vpop.f32.mrf.mxu0  ;;  %4519 = vmatpush2.bf16.msra.mxu1 %v6097_v32  ;;  %4560 = vmatpush2.bf16.msra.mxu0 %v6100_v58  ;;  %v2245_v32 = vmax.f32 %v2244_v62, 0.0  ;;  %v2758_v58 = vmax.f32 %v2757_v63, 0.0  ;;  %v6130_v5 = vld [vmem:[%s8289_s7 + $0x700] ss:$16 sps:$4 sm:$0xff]  }
 0x363   :  { %4520 = vmatprep.subr.bf16.mxu1 %v6105_v12  ;;  %4561 = vmatprep.subr.bf16.mxu0 %v6108_v16  ;;  %v6135_v46 = vld [vmem:[%s8289_s7 + $0xec] ss:$16 sps:$4 sm:$0xff]  }
 0x364   :  { %v1977_v0 = vpop.f32.mrf.mxu1  ;;  %v2490_v37 = vpop.f32.mrf.mxu0  ;;  %v6138_v11 = vld [vmem:[%s8289_s7 + $0x2ec] ss:$16 sps:$4 sm:$0xff]  }
 0x365   :  { %v2246_v0 = vmax.f32 %v2245_v32, 0.0  ;;  %v2759_v37 = vmax.f32 %v2758_v58, 0.0 }
 0x366   :  { %v1979_v57 = vpop.f32.mrf.mxu1  ;;  %v2492_v35 = vpop.f32.mrf.mxu0  ;;  %4521 = vmatpush2.bf16.msra.mxu1 %v6103_v36  ;;  %4562 = vmatpush2.bf16.msra.mxu0 %v6106_v18 }
 0x367   :  { %4522 = vmatprep.subr.bf16.mxu1 %v6111_v13  ;;  %4563 = vmatprep.subr.bf16.mxu0 %v6114_v14  ;;  %v2225_v13 = vmax.f32 %v2224_v6, 0.0  ;;  %v2738_v14 = vmax.f32 %v2737_v7, 0.0 }
 0x368   :  { %v1983_v21 = vpop.f32.mrf.mxu1  ;;  %v2496_v33 = vpop.f32.mrf.mxu0 }
 0x369   :  { %v2226_v57 = vmax.f32 %v2225_v13, 0.0  ;;  %v2739_v35 = vmax.f32 %v2738_v14, 0.0 }
 0x36a   :  { %v1985_v38 = vpop.f32.mrf.mxu1  ;;  %v2498_v20 = vpop.f32.mrf.mxu0  ;;  %4523 = vmatpush2.bf16.msra.mxu1 %v6109_v34  ;;  %4564 = vmatpush2.bf16.msra.mxu0 %v6112_v27  ;;  %v2247_v34 = vmax.f32 %v2246_v0, 0.0  ;;  %v2760_v27 = vmax.f32 %v2759_v37, 0.0 }
 0x36b   :  { %4524 = vmatprep.subr.bf16.mxu1 %v6117_v10  ;;  %4565 = vmatprep.subr.bf16.mxu0 %v6120_v51  ;;  %v2227_v30 = vmax.f32 %v2226_v57, 0.0  ;;  %v2740_v43 = vmax.f32 %v2739_v35, 0.0 }
 0x36c   :  { %v1987_v59 = vpop.f32.mrf.mxu1  ;;  %v2500_v61 = vpop.f32.mrf.mxu0  ;;  %v2248_v29 = vmax.f32 %v2247_v34, 0.0  ;;  %v2761_v39 = vmax.f32 %v2760_v27, 0.0 }
 0x36e   :  { %v1989_v28 = vpop.f32.mrf.mxu1  ;;  %v2502_v1 = vpop.f32.mrf.mxu0  ;;  %4525 = vmatpush2.bf16.msra.mxu1 %v6115_v52  ;;  %4566 = vmatpush2.bf16.msra.mxu0 %v6118_v53  ;;  %v2249_v59 = vmax.f32 %v2248_v29, 0.0  ;;  %v2762_v61 = vmax.f32 %v2761_v39, 0.0 }
 0x36f   :  { %4526 = vmatprep.subr.bf16.mxu1 %v6123_v23  ;;  %4567 = vmatprep.subr.bf16.mxu0 %v6126_v47  ;;  %v2228_v23 = vmax.f32 %v2227_v30, 0.0  ;;  %v2741_v47 = vmax.f32 %v2740_v43, 0.0 }
 0x370   :  { %v1993_v54 = vpop.f32.mrf.mxu1  ;;  %v2506_v4 = vpop.f32.mrf.mxu0  ;;  %v2250_v6 = vmax.f32 %v2249_v59, 0.0  ;;  %v2763_v7 = vmax.f32 %v2762_v61, 0.0 }
 0x372   :  { %v1995_v12 = vpop.f32.mrf.mxu1  ;;  %v2508_v16 = vpop.f32.mrf.mxu0  ;;  %4527 = vmatpush2.bf16.msra.mxu1 %v6121_v55  ;;  %4568 = vmatpush2.bf16.msra.mxu0 %v6124_v60 }
 0x373   :  { %4528 = vmatprep.subr.bf16.mxu1 %v6129_v44  ;;  %4569 = vmatprep.subr.bf16.mxu0 %v6132_v3  ;;  %v2229_v44 = vmax.f32 %v2228_v23, 0.0  ;;  %v2742_v3 = vmax.f32 %v2741_v47, 0.0 }
 0x374   :  { %v1997_v36 = vpop.f32.mrf.mxu1  ;;  %v2510_v18 = vpop.f32.mrf.mxu0 }
 0x376   :  { %v1999_v17 = vpop.f32.mrf.mxu1  ;;  %v2512_v31 = vpop.f32.mrf.mxu0  ;;  %4529 = vmatpush2.bf16.msra.mxu1 %v6127_v2  ;;  %4570 = vmatpush2.bf16.msra.mxu0 %v6130_v5 }
 0x377   :  { %4580 = vmatprep.subr.bf16.mxu1 %v6135_v46  ;;  %4621 = vmatprep.subr.bf16.mxu0 %v6138_v11  ;;  %v2230_v17 = vmax.f32 %v2229_v44, 0.0  ;;  %v2743_v31 = vmax.f32 %v2742_v3, 0.0 }
 0x378   :  { %v2003_v22 = vpop.f32.mrf.mxu1  ;;  %v2516_v24 = vpop.f32.mrf.mxu0 }
 0x379   :  { %v2251_v22 = vmax.f32 %v2250_v6, 0.0  ;;  %v2764_v24 = vmax.f32 %v2763_v7, 0.0  ;;  %v2231_v29 = vmax.f32 %v2230_v17, 0.0  ;;  %v2744_v39 = vmax.f32 %v2743_v31, 0.0 }
 0x37a   :  { %v2005_v10 = vpop.f32.mrf.mxu1  ;;  %v2518_v51 = vpop.f32.mrf.mxu0 }
 0x37c   :  { %v2007_v21 = vpop.f32.mrf.mxu1  ;;  %v2520_v33 = vpop.f32.mrf.mxu0 }
 0x37e   :  { %v2009_v38 = vpop.f32.mrf.mxu1  ;;  %v2522_v20 = vpop.f32.mrf.mxu0 }
 0x37f   :  { %v2252_v38 = vmax.f32 %v2251_v22, 0.0  ;;  %v2765_v20 = vmax.f32 %v2764_v24, 0.0 }
 0x380   :  { %v2013_v52 = vpop.f32.mrf.mxu1  ;;  %v2526_v53 = vpop.f32.mrf.mxu0 }
 0x381   :  { %v2014_v25 = vadd.f32 %v2013_v52, %v7404_v19  ;;  %v2527_v49 = vadd.f32 %v2526_v53, %v7407_v26  ;;  %v2253_v44 = vmax.f32 %v2252_v38, 0.0  ;;  %v2766_v3 = vmax.f32 %v2765_v20, 0.0 }
 0x382   :  { %v2015_v62 = vpop.f32.mrf.mxu1  ;;  %v2528_v63 = vpop.f32.mrf.mxu0 }
 0x383   :  { %v2016_v28 = vadd.f32 %v2015_v62, %v7422_v41  ;;  %v2529_v1 = vadd.f32 %v2528_v63, %v7425_v56  ;;  %v2124_v32 = vmax.f32 %v2014_v25, 0.0  ;;  %v2637_v58 = vmax.f32 %v2527_v49, 0.0 }
 0x384   :  { %v2017_v55 = vpop.f32.mrf.mxu1  ;;  %v2530_v60 = vpop.f32.mrf.mxu0 }
 0x385   :  { %v2018_v54 = vadd.f32 %v2017_v55, %v7404_v19  ;;  %v2531_v4 = vadd.f32 %v2530_v60, %v7407_v26  ;;  %v2125_v36 = vmax.f32 %v2016_v28, 0.0  ;;  %v2638_v18 = vmax.f32 %v2529_v1, 0.0 }
 0x386   :  { %v2019_v12 = vpop.f32.mrf.mxu1  ;;  %v2532_v16 = vpop.f32.mrf.mxu0  ;;  %v2232_v55 = vmax.f32 %v2231_v29, 0.0  ;;  %v2745_v60 = vmax.f32 %v2744_v39, 0.0 }
 0x387   :  { %v2126_v2 = vmax.f32 %v2018_v54, 0.0  ;;  %v2639_v5 = vmax.f32 %v2531_v4, 0.0  ;;  %v2020_v46 = vadd.f32 %v2019_v12, %v7422_v41  ;;  %v2533_v11 = vadd.f32 %v2532_v16, %v7425_v56 }
 0x388   :  { %v2023_v13 = vpop.f32.mrf.mxu1  ;;  %v2536_v14 = vpop.f32.mrf.mxu0 }
 0x389   :  { %v2262_v0 = vmax.f32 %v2124_v32, %v2126_v2  ;;  %v2775_v19 = vmax.f32 %v2637_v58, %v2639_v5  ;;  %v2127_v37 = vmax.f32 %v2020_v46, 0.0  ;;  %v2640_v26 = vmax.f32 %v2533_v11, 0.0 }
 0x38a   :  { %v2025_v57 = vpop.f32.mrf.mxu1  ;;  %v2538_v35 = vpop.f32.mrf.mxu0  ;;  %v2254_v13 = vmax.f32 %v2253_v44, 0.0  ;;  %v2767_v14 = vmax.f32 %v2766_v3, 0.0 }
 0x38b   :  { %v2263_v34 = vmax.f32 %v2262_v0, 0.0  ;;  %v2776_v27 = vmax.f32 %v2775_v19, 0.0  ;;  %v2283_v10 = vmax.f32 %v2125_v36, %v2127_v37  ;;  %v2796_v41 = vmax.f32 %v2638_v18, %v2640_v26 }
 0x38c   :  { %v2027_v51 = vpop.f32.mrf.mxu1  ;;  %v2540_v56 = vpop.f32.mrf.mxu0  ;;  %v2233_v36 = vmax.f32 %v2232_v55, 0.0  ;;  %v2746_v18 = vmax.f32 %v2745_v60, 0.0 }
 0x38d   :  { %v2264_v21 = vmax.f32 %v2263_v34, 0.0  ;;  %v2777_v33 = vmax.f32 %v2776_v27, 0.0  ;;  %v2284_v30 = vmax.f32 %v2283_v10, 0.0  ;;  %v2797_v43 = vmax.f32 %v2796_v41, 0.0 }
 0x38e   :  { %v2029_v52 = vpop.f32.mrf.mxu1  ;;  %v2542_v53 = vpop.f32.mrf.mxu0  ;;  %v2234_v10 = vmax.f32 %v2233_v36, 0.0  ;;  %v2747_v41 = vmax.f32 %v2746_v18, 0.0  ;;  %v2255_v51 = vmax.f32 %v2254_v13, 0.0  ;;  %v2768_v56 = vmax.f32 %v2767_v14, 0.0 }
 0x38f   :  { %v2265_v23 = vmax.f32 %v2264_v21, 0.0  ;;  %v2778_v47 = vmax.f32 %v2777_v33, 0.0  ;;  %v2285_v59 = vmax.f32 %v2284_v30, 0.0  ;;  %v2798_v61 = vmax.f32 %v2797_v43, 0.0 }
 0x390   :  { %v2033_v25 = vpop.f32.mrf.mxu1  ;;  %v2546_v49 = vpop.f32.mrf.mxu0 }
 0x391   :  { %v2266_v62 = vmax.f32 %v2265_v23, 0.0  ;;  %v2779_v63 = vmax.f32 %v2778_v47, 0.0  ;;  %v2286_v28 = vmax.f32 %v2285_v59, 0.0  ;;  %v2799_v1 = vmax.f32 %v2798_v61, 0.0 }
 0x392   :  { %v2035_v54 = vpop.f32.mrf.mxu1  ;;  %v2548_v4 = vpop.f32.mrf.mxu0  ;;  %v2235_v59 = vrot.slane %v2234_v10, 4  ;;  %v2748_v61 = vrot.slane %v2747_v41, 4  ;;  %v2256_v25 = vrot.slane %v2255_v51, 4  ;;  %v2769_v49 = vrot.slane %v2768_v56, 4 }
 0x393   :  { %v2267_v6 = vmax.f32 %v2266_v62, 0.0  ;;  %v2780_v7 = vmax.f32 %v2779_v63, 0.0  ;;  %v2287_v32 = vmax.f32 %v2286_v28, 0.0  ;;  %v2800_v58 = vmax.f32 %v2799_v1, 0.0 }
 0x394   :  { %v2037_v12 = vpop.f32.mrf.mxu1  ;;  %v2550_v16 = vpop.f32.mrf.mxu0 }
 0x395   :  { %v2268_v2 = vmax.f32 %v2267_v6, 0.0  ;;  %v2781_v5 = vmax.f32 %v2780_v7, 0.0  ;;  %v2288_v46 = vmax.f32 %v2287_v32, 0.0  ;;  %v2801_v11 = vmax.f32 %v2800_v58, 0.0 }
 0x396   :  { %v2039_v0 = vpop.f32.mrf.mxu1  ;;  %v2552_v19 = vpop.f32.mrf.mxu0  ;;  %v2236_v32 = vmax.f32 %v2234_v10, %v2235_v59  ;;  %v2749_v58 = vmax.f32 %v2747_v41, %v2748_v61  ;;  %v2257_v12 = vmax.f32 %v2255_v51, %v2256_v25  ;;  %v2770_v16 = vmax.f32 %v2768_v56, %v2769_v49 }
 0x397   :  { %v2269_v37 = vmax.f32 %v2268_v2, 0.0  ;;  %v2782_v26 = vmax.f32 %v2781_v5, 0.0  ;;  %v2289_v17 = vmax.f32 %v2288_v46, 0.0  ;;  %v2802_v31 = vmax.f32 %v2801_v11, 0.0 }
 0x398   :  { %v2043_v22 = vpop.f32.mrf.mxu1  ;;  %v2556_v24 = vpop.f32.mrf.mxu0 }
 0x399   :  { %v2270_v57 = vmax.f32 %v2269_v37, 0.0  ;;  %v2783_v35 = vmax.f32 %v2782_v26, 0.0  ;;  %v2290_v34 = vmax.f32 %v2289_v17, 0.0  ;;  %v2803_v27 = vmax.f32 %v2802_v31, 0.0 }
 0x39a   :  { %v2045_v21 = vpop.f32.mrf.mxu1  ;;  %v2558_v33 = vpop.f32.mrf.mxu0  ;;  %v2237_v17 = vrot.slane %v2236_v32, 2  ;;  %v2750_v31 = vrot.slane %v2749_v58, 2 }
 0x39b   :  { %v2271_v30 = vmax.f32 %v2270_v57, 0.0  ;;  %v2784_v43 = vmax.f32 %v2783_v35, 0.0  ;;  %v2291_v29 = vmax.f32 %v2290_v34, 0.0  ;;  %v2804_v39 = vmax.f32 %v2803_v27, 0.0 }
 0x39c   :  { %v2047_v38 = vpop.f32.mrf.mxu1  ;;  %v2560_v20 = vpop.f32.mrf.mxu0  ;;  %v2258_v57 = vrot.slane %v2257_v12, 2  ;;  %v2771_v35 = vrot.slane %v2770_v16, 2 }
 0x39d   :  { %v2272_v52 = vmax.f32 %v2271_v30, 0.0  ;;  %v2785_v53 = vmax.f32 %v2784_v43, 0.0  ;;  %v2292_v23 = vmax.f32 %v2291_v29, 0.0  ;;  %v2805_v47 = vmax.f32 %v2804_v39, 0.0 }
 0x39e   :  { %v2049_v62 = vpop.f32.mrf.mxu1  ;;  %v2562_v63 = vpop.f32.mrf.mxu0  ;;  %v2238_v29 = vmax.f32 %v2236_v32, %v2237_v17  ;;  %v2751_v39 = vmax.f32 %v2749_v58, %v2750_v31 }
 0x39f   :  { %v2273_v28 = vmax.f32 %v2272_v52, 0.0  ;;  %v2786_v1 = vmax.f32 %v2785_v53, 0.0  ;;  %v2293_v55 = vmax.f32 %v2292_v23, 0.0  ;;  %v2806_v60 = vmax.f32 %v2805_v47, 0.0 }
 0x3a0   :  { %v2053_v44 = vpop.f32.mrf.mxu1  ;;  %v2566_v3 = vpop.f32.mrf.mxu0  ;;  %v2259_v52 = vmax.f32 %v2257_v12, %v2258_v57  ;;  %v2772_v53 = vmax.f32 %v2770_v16, %v2771_v35 }
 0x3a1   :  { %v2274_v54 = vmax.f32 %v2273_v28, 0.0  ;;  %v2787_v4 = vmax.f32 %v2786_v1, 0.0  ;;  %v2294_v6 = vmax.f32 %v2293_v55, 0.0  ;;  %v2807_v7 = vmax.f32 %v2806_v60, 0.0 }
 0x3a2   :  { %v2055_v2 = vpop.f32.mrf.mxu1  ;;  %v2568_v5 = vpop.f32.mrf.mxu0  ;;  %v2239_v55 = vrot.slane %v2238_v29, 1  ;;  %v2752_v60 = vrot.slane %v2751_v39, 1 }
 0x3a3   :  { %v2275_v46 = vmax.f32 %v2274_v54, 0.0  ;;  %v2788_v11 = vmax.f32 %v2787_v4, 0.0  ;;  %v2295_v36 = vmax.f32 %v2294_v6, 0.0  ;;  %v2808_v18 = vmax.f32 %v2807_v7, 0.0 }
 0x3a4   :  { %v2057_v13 = vpop.f32.mrf.mxu1  ;;  %v2570_v14 = vpop.f32.mrf.mxu0  ;;  %v2260_v54 = vrot.slane %v2259_v52, 1  ;;  %v2773_v4 = vrot.slane %v2772_v53, 1 }
 0x3a5   :  { %v2276_v0 = vmax.f32 %v2275_v46, 0.0  ;;  %v2789_v19 = vmax.f32 %v2788_v11, 0.0  ;;  %v2296_v37 = vmax.f32 %v2295_v36, 0.0  ;;  %v2809_v26 = vmax.f32 %v2808_v18, 0.0 }
 0x3a6   :  { %v2059_v22 = vpop.f32.mrf.mxu1  ;;  %v2572_v24 = vpop.f32.mrf.mxu0  ;;  %v2240_v36 = vmax.f32 %v2238_v29, %v2239_v55  ;;  %v2753_v18 = vmax.f32 %v2751_v39, %v2752_v60  ;;  %v6141_v29 = vld [vmem:[%s8289_s7 + $0xcc] ss:$16 sps:$4 sm:$0xff]  }
 0x3a7   :  { %v2277_v34 = vrot.slane %v2276_v0, 4  ;;  %v2790_v27 = vrot.slane %v2789_v19, 4  ;;  %v2297_v10 = vmax.f32 %v2296_v37, 0.0  ;;  %v2810_v41 = vmax.f32 %v2809_v26, 0.0  ;;  %v6144_v39 = vld [vmem:[%s8289_s7 + $0x2cc] ss:$16 sps:$4 sm:$0xff]  }
 0x3a8   :  { %v2063_v51 = vpop.f32.mrf.mxu1  ;;  %v2576_v56 = vpop.f32.mrf.mxu0  ;;  %v2774_v37 = vmax.f32 %v2772_v53, %v2773_v4  ;;  %v6142_v53 = vld [vmem:[%s8289_s7 + $0x2c8] ss:$16 sps:$4 sm:$0xff]   ;;  %v6159_v55 = vld [vmem:[%s8289_s7 + $0x6c] ss:$16 sps:$4 sm:$0xff]  }
 0x3a9   :  { %v2278_v21 = vmax.f32 %v2276_v0, %v2277_v34  ;;  %v2791_v33 = vmax.f32 %v2789_v19, %v2790_v27  ;;  %v2298_v30 = vrot.slane %v2297_v10, 4  ;;  %v2811_v43 = vrot.slane %v2810_v41, 4  ;;  %v6133_v51 = vld [vmem:[%s8289_s7 + $0xe8] ss:$16 sps:$4 sm:$0xff]   ;;  %v6162_v60 = vld [vmem:[%s8289_s7 + $0x26c] ss:$16 sps:$4 sm:$0xff]  }
 0x3aa   :  { %v2065_v38 = vpop.f32.mrf.mxu1  ;;  %v2578_v20 = vpop.f32.mrf.mxu0  ;;  %v2261_v0 = vmax.f32 %v2259_v52, %v2260_v54  ;;  %v6136_v56 = vld [vmem:[%s8289_s7 + $0x2e8] ss:$16 sps:$4 sm:$0xff]   ;;  %v6165_v54 = vld [vmem:[%s8289_s7 + $0x4c] ss:$16 sps:$4 sm:$0xff]  }
 0x3ab   :  { %v2279_v23 = vrot.slane %v2278_v21, 2  ;;  %v2792_v47 = vrot.slane %v2791_v33, 2  ;;  %v2299_v59 = vmax.f32 %v2297_v10, %v2298_v30  ;;  %v2812_v61 = vmax.f32 %v2810_v41, %v2811_v43  ;;  %v6139_v52 = vld [vmem:[%s8289_s7 + $0xc8] ss:$16 sps:$4 sm:$0xff]   ;;  %v6168_v4 = vld [vmem:[%s8289_s7 + $0x24c] ss:$16 sps:$4 sm:$0xff]  }
 0x3ac   :  { %v2067_v25 = vpop.f32.mrf.mxu1  ;;  %v2580_v49 = vpop.f32.mrf.mxu0 }
 0x3ad   :  { %v2280_v62 = vmax.f32 %v2278_v21, %v2279_v23  ;;  %v2793_v63 = vmax.f32 %v2791_v33, %v2792_v47  ;;  %v2300_v28 = vrot.slane %v2299_v59, 2  ;;  %v2813_v1 = vrot.slane %v2812_v61, 2  ;;  %v6147_v23 = vld [vmem:[%s8289_s7 + $0xac] ss:$16 sps:$4 sm:$0xff]   ;;  %v6145_v25 = vld [vmem:[%s8289_s7 + $0xa8] ss:$16 sps:$4 sm:$0xff]  }
 0x3ae   :  { %v2069_v44 = vpop.f32.mrf.mxu1  ;;  %v2582_v3 = vpop.f32.mrf.mxu0  ;;  %v6150_v47 = vld [vmem:[%s8289_s7 + $0x2ac] ss:$16 sps:$4 sm:$0xff]   ;;  %v6148_v49 = vld [vmem:[%s8289_s7 + $0x2a8] ss:$16 sps:$4 sm:$0xff]  }
 0x3af   :  { %v2281_v6 = vrot.slane %v2280_v62, 1  ;;  %v2794_v7 = vrot.slane %v2793_v63, 1  ;;  %v2301_v32 = vmax.f32 %v2299_v59, %v2300_v28  ;;  %v2814_v58 = vmax.f32 %v2812_v61, %v2813_v1  ;;  %v6151_v28 = vld [vmem:[%s8289_s7 + $0x88] ss:$16 sps:$4 sm:$0xff]  }
 0x3b0   :  { %v2073_v12 = vpop.f32.mrf.mxu1  ;;  %v2586_v16 = vpop.f32.mrf.mxu0  ;;  %v6154_v1 = vld [vmem:[%s8289_s7 + $0x288] ss:$16 sps:$4 sm:$0xff]  }
 0x3b1   :  { %v2282_v2 = vmax.f32 %v2280_v62, %v2281_v6  ;;  %v2795_v5 = vmax.f32 %v2793_v63, %v2794_v7  ;;  %v2302_v46 = vrot.slane %v2301_v32, 1  ;;  %v2815_v11 = vrot.slane %v2814_v58, 1  ;;  %v6153_v62 = vld [vmem:[%s8289_s7 + $0x8c] ss:$16 sps:$4 sm:$0xff]   ;;  %v6157_v44 = vld [vmem:[%s8289_s7 + $0x68] ss:$16 sps:$4 sm:$0xff]  }
 0x3b2   :  { %v2075_v13 = vpop.f32.mrf.mxu1  ;;  %v2588_v14 = vpop.f32.mrf.mxu0  ;;  %v6156_v63 = vld [vmem:[%s8289_s7 + $0x28c] ss:$16 sps:$4 sm:$0xff]   ;;  %v6160_v3 = vld [vmem:[%s8289_s7 + $0x268] ss:$16 sps:$4 sm:$0xff]  }
 0x3b3   :  { %v2303_v19 = vmax.f32 %v2301_v32, %v2302_v46  ;;  %v2816_v26 = vmax.f32 %v2814_v58, %v2815_v11  ;;  %v2838_v22 = vsel %vm2821_vm1, %v2282_v2, %v2240_v36  ;;  %v2846_v24 = vsel %vm2821_vm1, %v2795_v5, %v2753_v18  ;;  %v6163_v6 = vld [vmem:[%s8289_s7 + $0x48] ss:$16 sps:$4 sm:$0xff]   ;;  %v6171_v32 = vld [vmem:[%s8289_s7 + $0x2c] ss:$16 sps:$4 sm:$0xff]  }
 0x3b4   :  { %v2077_v17 = vpop.f32.mrf.mxu1  ;;  %v2590_v31 = vpop.f32.mrf.mxu0  ;;  %v7625_v21 = vpack.c.bf16 %v2838_v22, %v2838_v22  ;;  %v7627_v33 = vpack.c.bf16 %v2846_v24, %v2846_v24  ;;  %v6166_v7 = vld [vmem:[%s8289_s7 + $0x248] ss:$16 sps:$4 sm:$0xff]   ;;  %v6174_v58 = vld [vmem:[%s8289_s7 + $0x22c] ss:$16 sps:$4 sm:$0xff]  }
 0x3b5   :  { %v2839_v57 = vsel %vm2821_vm1, %v2303_v19, %v2261_v0  ;;  %v2847_v35 = vsel %vm2821_vm1, %v2816_v26, %v2774_v37  ;;  %v6169_v12 = vld [vmem:[%s8289_s7 + $0x28] ss:$16 sps:$4 sm:$0xff]   ;;  %v6177_v2 = vld [vmem:[%s8289_s7 + $0xc] ss:$16 sps:$4 sm:$0xff]  }
 0x3b6   :  { %v2079_v34 = vpop.f32.mrf.mxu1  ;;  %v2592_v27 = vpop.f32.mrf.mxu0  ;;  %v7615_v10 = vpack.c.bf16 %v2839_v57, %v2839_v57  ;;  %v7617_v41 = vpack.c.bf16 %v2847_v35, %v2847_v35  ;;  %v6172_v16 = vld [vmem:[%s8289_s7 + $0x228] ss:$16 sps:$4 sm:$0xff]   ;;  %v6180_v5 = vld [vmem:[%s8289_s7 + $0x20c] ss:$16 sps:$4 sm:$0xff]  }
 0x3b7   :  { %v6175_v46 = vld [vmem:[%s8289_s7 + $0x8] ss:$16 sps:$4 sm:$0xff]   ;;  %v6183_v36 = vld [vmem:[%s8289_s7 + $0x1ec] ss:$16 sps:$4 sm:$0xff]  }
 0x3b8   :  { %v2083_v30 = vpop.f32.mrf.mxu1  ;;  %v2596_v43 = vpop.f32.mrf.mxu0  ;;  %4530 = vmatprep.mubr.bf16.mxu1 %v7615_v10  ;;  %4571 = vmatprep.mubr.bf16.mxu0 %v7617_v41  ;;  %v6178_v11 = vld [vmem:[%s8289_s7 + $0x208] ss:$16 sps:$4 sm:$0xff]   ;;  %v6186_v18 = vld [vmem:[%s8289_s7 + $0x3ec] ss:$16 sps:$4 sm:$0xff]  }
 0x3b9   :  { %4531 = vmatmul.mubr.bf16.vlgmr.msra.gmra.mxu1 %v7625_v21  ;;  %4572 = vmatmul.mubr.bf16.vlgmr.msra.gmra.mxu0 %v7627_v33  ;;  %v6181_v13 = vld [vmem:[%s8289_s7 + $0x1e8] ss:$16 sps:$4 sm:$0xff]   ;;  %v6189_v0 = vld [vmem:[%s8289_s7 + $0x1cc] ss:$16 sps:$4 sm:$0xff]  }
 0x3ba   :  { %4581 = vmatpush1.bf16.msra.mxu1 %v6133_v51  ;;  %4622 = vmatpush1.bf16.msra.mxu0 %v6136_v56  ;;  %v2085_v38 = vpop.f32.mrf.mxu1  ;;  %v2598_v20 = vpop.f32.mrf.mxu0  ;;  %v6184_v14 = vld [vmem:[%s8289_s7 + $0x3e8] ss:$16 sps:$4 sm:$0xff]   ;;  %v6192_v19 = vld [vmem:[%s8289_s7 + $0x3cc] ss:$16 sps:$4 sm:$0xff]  }
 0x3bb   :  { %4612 = vmatprep.mubr.bf16.mxu1 %v7361_v42  ;;  %4653 = vmatprep.mubr.bf16.mxu0 %v7363_v15  ;;  %v6187_v37 = vld [vmem:[%s8289_s7 + $0x1c8] ss:$16 sps:$4 sm:$0xff]   ;;  %v6195_v17 = vld [vmem:[%s8289_s7 + $0x1ac] ss:$16 sps:$4 sm:$0xff]  }
 0x3bc   :  { %v2087_v59 = vpop.f32.mrf.mxu1  ;;  %v2600_v61 = vpop.f32.mrf.mxu0  ;;  %4582 = vmatprep.subr.bf16.mxu1 %v6141_v29  ;;  %4623 = vmatprep.subr.bf16.mxu0 %v6144_v39  ;;  %v6190_v26 = vld [vmem:[%s8289_s7 + $0x3c8] ss:$16 sps:$4 sm:$0xff]   ;;  %v6198_v31 = vld [vmem:[%s8289_s7 + $0x3ac] ss:$16 sps:$4 sm:$0xff]  }
 0x3bd   :  { %v6193_v22 = vld [vmem:[%s8289_s7 + $0x1a8] ss:$16 sps:$4 sm:$0xff]   ;;  %v6201_v57 = vld [vmem:[%s8289_s7 + $0x18c] ss:$16 sps:$4 sm:$0xff]  }
 0x3be   :  { %4583 = vmatpush1.bf16.msra.mxu1 %v6139_v52  ;;  %4624 = vmatpush1.bf16.msra.mxu0 %v6142_v53  ;;  %v2089_v42 = vpop.f32.mrf.mxu1  ;;  %v2602_v15 = vpop.f32.mrf.mxu0  ;;  %v6196_v24 = vld [vmem:[%s8289_s7 + $0x3a8] ss:$16 sps:$4 sm:$0xff]   ;;  %v6204_v35 = vld [vmem:[%s8289_s7 + $0x38c] ss:$16 sps:$4 sm:$0xff]  }
 0x3bf   :  { %4584 = vmatprep.subr.bf16.mxu1 %v6147_v23  ;;  %4625 = vmatprep.subr.bf16.mxu0 %v6150_v47  ;;  %v6199_v34 = vld [vmem:[%s8289_s7 + $0x188] ss:$16 sps:$4 sm:$0xff]   ;;  %v6207_v51 = vld [vmem:[%s8289_s7 + $0x16c] ss:$16 sps:$4 sm:$0xff]  }
 0x3c0   :  { %v6202_v27 = vld [vmem:[%s8289_s7 + $0x388] ss:$16 sps:$4 sm:$0xff]   ;;  %v6210_v56 = vld [vmem:[%s8289_s7 + $0x36c] ss:$16 sps:$4 sm:$0xff]  }
 0x3c1   :  { %v6205_v30 = vld [vmem:[%s8289_s7 + $0x168] ss:$16 sps:$4 sm:$0xff]   ;;  %v6213_v29 = vld [vmem:[%s8289_s7 + $0x14c] ss:$16 sps:$4 sm:$0xff]  }
 0x3c2   :  { %4585 = vmatpush1.bf16.msra.mxu1 %v6145_v25  ;;  %4626 = vmatpush1.bf16.msra.mxu0 %v6148_v49  ;;  %v6208_v43 = vld [vmem:[%s8289_s7 + $0x368] ss:$16 sps:$4 sm:$0xff]   ;;  %v6216_v39 = vld [vmem:[%s8289_s7 + $0x34c] ss:$16 sps:$4 sm:$0xff]  }
 0x3c3   :  { %4586 = vmatprep.subr.bf16.mxu1 %v6153_v62  ;;  %4627 = vmatprep.subr.bf16.mxu0 %v6156_v63  ;;  %v6211_v38 = vld [vmem:[%s8289_s7 + $0x148] ss:$16 sps:$4 sm:$0xff]   ;;  %v6219_v52 = vld [vmem:[%s8289_s7 + $0x12c] ss:$16 sps:$4 sm:$0xff]   ;;  %v7824_v62 = vld [vmem:[%s8292_s8] sm:$0xf] }
 0x3c4   :  { %v6214_v20 = vld [vmem:[%s8289_s7 + $0x348] ss:$16 sps:$4 sm:$0xff]   ;;  %v6222_v53 = vld [vmem:[%s8289_s7 + $0x32c] ss:$16 sps:$4 sm:$0xff]  }
 0x3c5   :  { %v6217_v23 = vld [vmem:[%s8289_s7 + $0x128] ss:$16 sps:$4 sm:$0xff]   ;;  %v6225_v59 = vld [vmem:[%s8289_s7 + $0x10c] ss:$16 sps:$4 sm:$0xff]  }
 0x3c6   :  { %4587 = vmatpush1.bf16.msra.mxu1 %v6151_v28  ;;  %4628 = vmatpush1.bf16.msra.mxu0 %v6154_v1  ;;  %v6220_v47 = vld [vmem:[%s8289_s7 + $0x328] ss:$16 sps:$4 sm:$0xff]   ;;  %v6228_v61 = vld [vmem:[%s8289_s7 + $0x30c] ss:$16 sps:$4 sm:$0xff]   ;;  %v3119_v28 = vrot.slane %v7824_v62, %v6608_v48 }
 0x3c7   :  { %4588 = vmatprep.subr.bf16.mxu1 %v6159_v55  ;;  %4629 = vmatprep.subr.bf16.mxu0 %v6162_v60  ;;  %v6223_v25 = vld [vmem:[%s8289_s7 + $0x108] ss:$16 sps:$4 sm:$0xff]   ;;  %v6231_v42 = vld [vmem:[%s8289_s7 + $0x4ec] ss:$16 sps:$4 sm:$0xff]   ;;  %v3123_v55 = vrot.slane %v7824_v62, %v6605_v45 }
 0x3c8   :  { %v6226_v49 = vld [vmem:[%s8289_s7 + $0x308] ss:$16 sps:$4 sm:$0xff]   ;;  %v6234_v15 = vld [vmem:[%s8289_s7 + $0x6ec] ss:$16 sps:$4 sm:$0xff]  }
 0x3c9   :  { %v6229_v63 = vld [vmem:[%s8289_s7 + $0x4e8] ss:$16 sps:$4 sm:$0xff]   ;;  %v6237_v60 = vld [vmem:[%s8289_s7 + $0x4cc] ss:$16 sps:$4 sm:$0xff]  }
 0x3ca   :  { %4589 = vmatpush1.bf16.msra.mxu1 %v6157_v44  ;;  %4630 = vmatpush1.bf16.msra.mxu0 %v6160_v3  ;;  %v6232_v1 = vld [vmem:[%s8289_s7 + $0x6e8] ss:$16 sps:$4 sm:$0xff]   ;;  %v6240_v44 = vld [vmem:[%s8289_s7 + $0x6cc] ss:$16 sps:$4 sm:$0xff]  }
 0x3cb   :  { %4590 = vmatprep.subr.bf16.mxu1 %v6165_v54  ;;  %4631 = vmatprep.subr.bf16.mxu0 %v6168_v4 }
 0x3ce   :  { %4591 = vmatpush1.bf16.msra.mxu1 %v6163_v6  ;;  %4632 = vmatpush1.bf16.msra.mxu0 %v6166_v7  ;;  %v6235_v6 = vld [vmem:[%s8289_s7 + $0x4c8] ss:$16 sps:$4 sm:$0xff]  }
 0x3cf   :  { %4592 = vmatprep.subr.bf16.mxu1 %v6171_v32  ;;  %4633 = vmatprep.subr.bf16.mxu0 %v6174_v58 }
 0x3d2   :  { %4593 = vmatpush1.bf16.msra.mxu1 %v6169_v12  ;;  %4634 = vmatpush1.bf16.msra.mxu0 %v6172_v16  ;;  %v6246_v12 = vld [vmem:[%s8289_s7 + $0x6ac] ss:$16 sps:$4 sm:$0xff]  }
 0x3d3   :  { %4594 = vmatprep.subr.bf16.mxu1 %v6177_v2  ;;  %4635 = vmatprep.subr.bf16.mxu0 %v6180_v5  ;;  %v6241_v5 = vld [vmem:[%s8289_s7 + $0x4a8] ss:$16 sps:$4 sm:$0xff]  }
 0x3d6   :  { %4595 = vmatpush1.bf16.msra.mxu1 %v6175_v46  ;;  %4636 = vmatpush1.bf16.msra.mxu0 %v6178_v11 }
 0x3d7   :  { %4596 = vmatprep.subr.bf16.mxu1 %v6183_v36  ;;  %4637 = vmatprep.subr.bf16.mxu0 %v6186_v18  ;;  %v6244_v36 = vld [vmem:[%s8289_s7 + $0x6a8] ss:$16 sps:$4 sm:$0xff]   ;;  %v6249_v18 = vld [vmem:[%s8289_s7 + $0x48c] ss:$16 sps:$4 sm:$0xff]  }
 0x3da   :  { %4597 = vmatpush2.bf16.msra.mxu1 %v6181_v13  ;;  %4638 = vmatpush2.bf16.msra.mxu0 %v6184_v14  ;;  %v6252_v13 = vld [vmem:[%s8289_s7 + $0x68c] ss:$16 sps:$4 sm:$0xff]   ;;  %v6247_v14 = vld [vmem:[%s8289_s7 + $0x488] ss:$16 sps:$4 sm:$0xff]  }
 0x3db   :  { %4598 = vmatprep.subr.bf16.mxu1 %v6189_v0  ;;  %4639 = vmatprep.subr.bf16.mxu0 %v6192_v19  ;;  %v6250_v0 = vld [vmem:[%s8289_s7 + $0x688] ss:$16 sps:$4 sm:$0xff]   ;;  %v6255_v19 = vld [vmem:[%s8289_s7 + $0x46c] ss:$16 sps:$4 sm:$0xff]  }
 0x3de   :  { %4599 = vmatpush2.bf16.msra.mxu1 %v6187_v37  ;;  %4640 = vmatpush2.bf16.msra.mxu0 %v6190_v26  ;;  %v6258_v37 = vld [vmem:[%s8289_s7 + $0x66c] ss:$16 sps:$4 sm:$0xff]   ;;  %v6253_v26 = vld [vmem:[%s8289_s7 + $0x468] ss:$16 sps:$4 sm:$0xff]  }
 0x3df   :  { %4600 = vmatprep.subr.bf16.mxu1 %v6195_v17  ;;  %4641 = vmatprep.subr.bf16.mxu0 %v6198_v31  ;;  %v6256_v17 = vld [vmem:[%s8289_s7 + $0x668] ss:$16 sps:$4 sm:$0xff]   ;;  %v6261_v31 = vld [vmem:[%s8289_s7 + $0x44c] ss:$16 sps:$4 sm:$0xff]  }
 0x3e2   :  { %4601 = vmatpush2.bf16.msra.mxu1 %v6193_v22  ;;  %4642 = vmatpush2.bf16.msra.mxu0 %v6196_v24  ;;  %v6264_v22 = vld [vmem:[%s8289_s7 + $0x64c] ss:$16 sps:$4 sm:$0xff]   ;;  %v6259_v24 = vld [vmem:[%s8289_s7 + $0x448] ss:$16 sps:$4 sm:$0xff]  }
 0x3e3   :  { %4602 = vmatprep.subr.bf16.mxu1 %v6201_v57  ;;  %4643 = vmatprep.subr.bf16.mxu0 %v6204_v35  ;;  %v6262_v57 = vld [vmem:[%s8289_s7 + $0x648] ss:$16 sps:$4 sm:$0xff]   ;;  %v6267_v35 = vld [vmem:[%s8289_s7 + $0x42c] ss:$16 sps:$4 sm:$0xff]  }
 0x3e6   :  { %4603 = vmatpush2.bf16.msra.mxu1 %v6199_v34  ;;  %4644 = vmatpush2.bf16.msra.mxu0 %v6202_v27  ;;  %v6270_v34 = vld [vmem:[%s8289_s7 + $0x62c] ss:$16 sps:$4 sm:$0xff]   ;;  %v6265_v27 = vld [vmem:[%s8289_s7 + $0x428] ss:$16 sps:$4 sm:$0xff]  }
 0x3e7   :  { %4604 = vmatprep.subr.bf16.mxu1 %v6207_v51  ;;  %4645 = vmatprep.subr.bf16.mxu0 %v6210_v56  ;;  %v6268_v51 = vld [vmem:[%s8289_s7 + $0x628] ss:$16 sps:$4 sm:$0xff]   ;;  %v6273_v56 = vld [vmem:[%s8289_s7 + $0x40c] ss:$16 sps:$4 sm:$0xff]  }
 0x3ea   :  { %4605 = vmatpush2.bf16.msra.mxu1 %v6205_v30  ;;  %4646 = vmatpush2.bf16.msra.mxu0 %v6208_v43  ;;  %v6276_v30 = vld [vmem:[%s8289_s7 + $0x60c] ss:$16 sps:$4 sm:$0xff]   ;;  %v6271_v43 = vld [vmem:[%s8289_s7 + $0x408] ss:$16 sps:$4 sm:$0xff]  }
 0x3eb   :  { %4606 = vmatprep.subr.bf16.mxu1 %v6213_v29  ;;  %4647 = vmatprep.subr.bf16.mxu0 %v6216_v39  ;;  %v6274_v29 = vld [vmem:[%s8289_s7 + $0x608] ss:$16 sps:$4 sm:$0xff]   ;;  %v6279_v39 = vld [vmem:[%s8289_s7 + $0x5ec] ss:$16 sps:$4 sm:$0xff]  }
 0x3ee   :  { %4607 = vmatpush2.bf16.msra.mxu1 %v6211_v38  ;;  %4648 = vmatpush2.bf16.msra.mxu0 %v6214_v20  ;;  %v6282_v38 = vld [vmem:[%s8289_s7 + $0x7ec] ss:$16 sps:$4 sm:$0xff]   ;;  %v6277_v20 = vld [vmem:[%s8289_s7 + $0x5e8] ss:$16 sps:$4 sm:$0xff]  }
 0x3ef   :  { %4608 = vmatprep.subr.bf16.mxu1 %v6219_v52  ;;  %4649 = vmatprep.subr.bf16.mxu0 %v6222_v53  ;;  %v6280_v52 = vld [vmem:[%s8289_s7 + $0x7e8] ss:$16 sps:$4 sm:$0xff]   ;;  %v6285_v53 = vld [vmem:[%s8289_s7 + $0x5cc] ss:$16 sps:$4 sm:$0xff]  }
 0x3f2   :  { %4609 = vmatpush2.bf16.msra.mxu1 %v6217_v23  ;;  %4650 = vmatpush2.bf16.msra.mxu0 %v6220_v47  ;;  %v6288_v23 = vld [vmem:[%s8289_s7 + $0x7cc] ss:$16 sps:$4 sm:$0xff]   ;;  %v6283_v47 = vld [vmem:[%s8289_s7 + $0x5c8] ss:$16 sps:$4 sm:$0xff]  }
 0x3f3   :  { %4610 = vmatprep.subr.bf16.mxu1 %v6225_v59  ;;  %4651 = vmatprep.subr.bf16.mxu0 %v6228_v61  ;;  %v6286_v59 = vld [vmem:[%s8289_s7 + $0x7c8] ss:$16 sps:$4 sm:$0xff]   ;;  %v6291_v61 = vld [vmem:[%s8289_s7 + $0x5ac] ss:$16 sps:$4 sm:$0xff]  }
 0x3f6   :  { %4611 = vmatpush2.bf16.msra.mxu1 %v6223_v25  ;;  %4652 = vmatpush2.bf16.msra.mxu0 %v6226_v49  ;;  %v6294_v25 = vld [vmem:[%s8289_s7 + $0x7ac] ss:$16 sps:$4 sm:$0xff]   ;;  %v6289_v49 = vld [vmem:[%s8289_s7 + $0x5a8] ss:$16 sps:$4 sm:$0xff]  }
 0x3f7   :  { %4662 = vmatprep.subr.bf16.mxu1 %v6231_v42  ;;  %4703 = vmatprep.subr.bf16.mxu0 %v6234_v15  ;;  %v6292_v42 = vld [vmem:[%s8289_s7 + $0x7a8] ss:$16 sps:$4 sm:$0xff]   ;;  %v6297_v15 = vld [vmem:[%s8289_s7 + $0x58c] ss:$16 sps:$4 sm:$0xff]  }
 0x3f9   :  { %4613 = vmatmul.mubr.bf16.vlgmr.msra.gmra.mxu1 %v7371_v9  ;;  %4654 = vmatmul.mubr.bf16.vlgmr.msra.gmra.mxu0 %v7373_v8  ;;  %v4450_v3 = vpop.f32.mrf.mxu1  ;;  %v4491_v54 = vpop.f32.mrf.mxu0  ;;  %v6238_v9 = vld [vmem:[%s8289_s7 + $0x6c8] ss:$16 sps:$4 sm:$0xff]   ;;  %v6243_v8 = vld [vmem:[%s8289_s7 + $0x4ac] ss:$16 sps:$4 sm:$0xff]  }
 0x3fa   :  { %v4451_v4 = vadd.f32 %v4450_v3, %v3119_v28  ;;  %4663 = vmatpush1.bf16.msra.mxu1 %v6229_v63  ;;  %4694 = vmatprep.mubr.bf16.mxu1 %v7615_v10  ;;  %v6300_v63 = vld [vmem:[%s8289_s7 + $0x78c] ss:$16 sps:$4 sm:$0xff]   ;;  %v6295_v28 = vld [vmem:[%s8289_s7 + $0x588] ss:$16 sps:$4 sm:$0xff]  }
 0x3fb   :  { %4704 = vmatpush1.bf16.msra.mxu0 %v6232_v1  ;;  %4735 = vmatprep.mubr.bf16.mxu0 %v7617_v41  ;;  %v4452_v7 = vpop.f32.mrf.mxu1  ;;  %v4493_v32 = vpop.f32.mrf.mxu0  ;;  %v6298_v1 = vld [vmem:[%s8289_s7 + $0x788] ss:$16 sps:$4 sm:$0xff]  }
 0x3fc   :  { %v7855_v58 = vadd.f32 %v4491_v54, %v4451_v4  ;;  %v4453_v10 = vadd.f32 %v4452_v7, %v3123_v55  ;;  %4664 = vmatprep.subr.bf16.mxu1 %v6237_v60  ;;  %4705 = vmatprep.subr.bf16.mxu0 %v6240_v44  ;;  %v6303_v55 = vld [vmem:[%s8289_s7 + $0x56c] ss:$16 sps:$4 sm:$0xff]   ;;  %v6301_v44 = vld [vmem:[%s8289_s7 + $0x568] ss:$16 sps:$4 sm:$0xff]  }
 0x3fd   :  { %v4454_v41 = vpop.f32.mrf.mxu1  ;;  %v4495_v16 = vpop.f32.mrf.mxu0  ;;  %v6306_v60 = vld [vmem:[%s8289_s7 + $0x76c] ss:$16 sps:$4 sm:$0xff]   ;;  %v6304_v3 = vld [vmem:[%s8289_s7 + $0x768] ss:$16 sps:$4 sm:$0xff]  }
 0x3fe   :  { %v7860_v2 = vadd.f32 %v4493_v32, %v4453_v10  ;;  %4665 = vmatpush1.bf16.msra.mxu1 %v6235_v6  ;;  %v6309_v54 = vld [vmem:[%s8289_s7 + $0x54c] ss:$16 sps:$4 sm:$0xff]   ;;  %v6307_v6 = vld [vmem:[%s8289_s7 + $0x548] ss:$16 sps:$4 sm:$0xff]  }
 0x3ff   :  { %4706 = vmatpush1.bf16.msra.mxu0 %v6238_v9  ;;  %v4455_v46 = vpop.f32.mrf.mxu1  ;;  %v4496_v11 = vpop.f32.mrf.mxu0  ;;  %4666 = vmatprep.subr.bf16.mxu1 %v6243_v8  ;;  %v6312_v4 = vld [vmem:[%s8289_s7 + $0x74c] ss:$16 sps:$4 sm:$0xff]   ;;  %v6310_v7 = vld [vmem:[%s8289_s7 + $0x748] ss:$16 sps:$4 sm:$0xff]  }
 0x400   :  { %4707 = vmatprep.subr.bf16.mxu0 %v6246_v12  ;;  %v6315_v32 = vld [vmem:[%s8289_s7 + $0x52c] ss:$16 sps:$4 sm:$0xff]   ;;  %v6313_v8 = vld [vmem:[%s8289_s7 + $0x528] ss:$16 sps:$4 sm:$0xff]  }
 0x401   :  { %v6318_v9 = vld [vmem:[%s8289_s7 + $0x72c] ss:$16 sps:$4 sm:$0xff]   ;;  %v6316_v10 = vld [vmem:[%s8289_s7 + $0x728] ss:$16 sps:$4 sm:$0xff]  }
 0x402   :  { %4667 = vmatpush1.bf16.msra.mxu1 %v6241_v5  ;;  %v6321_v12 = vld [vmem:[%s8289_s7 + $0x50c] ss:$16 sps:$4 sm:$0xff]   ;;  %v6319_v16 = vld [vmem:[%s8289_s7 + $0x508] ss:$16 sps:$4 sm:$0xff]  }
 0x403   :  { %4708 = vmatpush1.bf16.msra.mxu0 %v6244_v36  ;;  %4668 = vmatprep.subr.bf16.mxu1 %v6249_v18  ;;  %v6324_v41 = vld [vmem:[%s8289_s7 + $0x70c] ss:$16 sps:$4 sm:$0xff]   ;;  %v6322_v5 = vld [vmem:[%s8289_s7 + $0x708] ss:$16 sps:$4 sm:$0xff]  }
 0x404   :  { %4709 = vmatprep.subr.bf16.mxu0 %v6252_v13  ;;  %v6327_v46 = vld [vmem:[%s8291_s9 + $0x74] ss:$8 sps:$4 sm:$0xff]   ;;  %v6325_v11 = vld [vmem:[%s8291_s9 + $0x70] ss:$8 sps:$4 sm:$0xff]   ;;  %v6330_v36 = vld [vmem:[%s8291_s9 + $0x64] ss:$8 sps:$4 sm:$0xff]  }
 0x405   :  { %v6328_v18 = vld [vmem:[%s8291_s9 + $0x60] ss:$8 sps:$4 sm:$0xff]   ;;  %v6333_v13 = vld [vmem:[%s8291_s9 + $0x54] ss:$8 sps:$4 sm:$0xff]  }
 0x406   :  { %4669 = vmatpush1.bf16.msra.mxu1 %v6247_v14  ;;  %v6331_v14 = vld [vmem:[%s8291_s9 + $0x50] ss:$8 sps:$4 sm:$0xff]  }
 0x407   :  { %4710 = vmatpush1.bf16.msra.mxu0 %v6250_v0  ;;  %4670 = vmatprep.subr.bf16.mxu1 %v6255_v19  ;;  %v6375_v0 = vld [vmem:[%s8291_s9 + $0x174] ss:$8 sps:$4 sm:$0xff]   ;;  %v6378_v19 = vld [vmem:[%s8291_s9 + $0x164] ss:$8 sps:$4 sm:$0xff]  }
 0x408   :  { %4711 = vmatprep.subr.bf16.mxu0 %v6258_v37  ;;  %v6334_v37 = vld [vmem:[%s8291_s9 + $0x40] ss:$8 sps:$4 sm:$0xff]  }
 0x40a   :  { %4671 = vmatpush1.bf16.msra.mxu1 %v6253_v26  ;;  %v6376_v26 = vld [vmem:[%s8291_s9 + $0x160] ss:$8 sps:$4 sm:$0xff]  }
 0x40b   :  { %4712 = vmatpush1.bf16.msra.mxu0 %v6256_v17  ;;  %4672 = vmatprep.subr.bf16.mxu1 %v6261_v31  ;;  %v6339_v17 = vld [vmem:[%s8291_s9 + $0x34] ss:$8 sps:$4 sm:$0xff]  }
 0x40c   :  { %4713 = vmatprep.subr.bf16.mxu0 %v6264_v22  ;;  %v6381_v31 = vld [vmem:[%s8291_s9 + $0x154] ss:$8 sps:$4 sm:$0xff]   ;;  %v6337_v22 = vld [vmem:[%s8291_s9 + $0x30] ss:$8 sps:$4 sm:$0xff]  }
 0x40e   :  { %4673 = vmatpush1.bf16.msra.mxu1 %v6259_v24  ;;  %v6379_v24 = vld [vmem:[%s8291_s9 + $0x150] ss:$8 sps:$4 sm:$0xff]  }
 0x40f   :  { %4714 = vmatpush1.bf16.msra.mxu0 %v6262_v57  ;;  %4674 = vmatprep.subr.bf16.mxu1 %v6267_v35  ;;  %v6342_v57 = vld [vmem:[%s8291_s9 + $0x24] ss:$8 sps:$4 sm:$0xff]  }
 0x410   :  { %4715 = vmatprep.subr.bf16.mxu0 %v6270_v34  ;;  %v6384_v35 = vld [vmem:[%s8291_s9 + $0x144] ss:$8 sps:$4 sm:$0xff]   ;;  %v6340_v34 = vld [vmem:[%s8291_s9 + $0x20] ss:$8 sps:$4 sm:$0xff]  }
 0x412   :  { %4675 = vmatpush1.bf16.msra.mxu1 %v6265_v27  ;;  %v6382_v27 = vld [vmem:[%s8291_s9 + $0x140] ss:$8 sps:$4 sm:$0xff]  }
 0x413   :  { %4716 = vmatpush1.bf16.msra.mxu0 %v6268_v51  ;;  %4676 = vmatprep.subr.bf16.mxu1 %v6273_v56  ;;  %v6345_v51 = vld [vmem:[%s8291_s9 + $0x14] ss:$8 sps:$4 sm:$0xff]  }
 0x414   :  { %4717 = vmatprep.subr.bf16.mxu0 %v6276_v30  ;;  %v6387_v56 = vld [vmem:[%s8291_s9 + $0x134] ss:$8 sps:$4 sm:$0xff]   ;;  %v6343_v30 = vld [vmem:[%s8291_s9 + $0x10] ss:$8 sps:$4 sm:$0xff]  }
 0x416   :  { %4677 = vmatpush1.bf16.msra.mxu1 %v6271_v43  ;;  %v6385_v43 = vld [vmem:[%s8291_s9 + $0x130] ss:$8 sps:$4 sm:$0xff]  }
 0x417   :  { %4718 = vmatpush1.bf16.msra.mxu0 %v6274_v29  ;;  %4678 = vmatprep.subr.bf16.mxu1 %v6279_v39  ;;  %v6348_v29 = vld [vmem:[%s8291_s9 + $0x4] ss:$8 sps:$4 sm:$0xff]  }
 0x418   :  { %4719 = vmatprep.subr.bf16.mxu0 %v6282_v38  ;;  %v6390_v39 = vld [vmem:[%s8291_s9 + $0x124] ss:$8 sps:$4 sm:$0xff]   ;;  %v6346_v38 = vld [vmem:[%s8291_s9] ss:$8 sps:$4 sm:$0xff]  }
 0x41a   :  { %4679 = vmatpush2.bf16.msra.mxu1 %v6277_v20  ;;  %v6388_v20 = vld [vmem:[%s8291_s9 + $0x120] ss:$8 sps:$4 sm:$0xff]  }
 0x41b   :  { %4720 = vmatpush2.bf16.msra.mxu0 %v6280_v52  ;;  %4680 = vmatprep.subr.bf16.mxu1 %v6285_v53  ;;  %v6351_v52 = vld [vmem:[%s8291_s9 + $0xf4] ss:$8 sps:$4 sm:$0xff]  }
 0x41c   :  { %4721 = vmatprep.subr.bf16.mxu0 %v6288_v23  ;;  %v6393_v53 = vld [vmem:[%s8291_s9 + $0x114] ss:$8 sps:$4 sm:$0xff]   ;;  %v6349_v23 = vld [vmem:[%s8291_s9 + $0xf0] ss:$8 sps:$4 sm:$0xff]  }
 0x41e   :  { %4681 = vmatpush2.bf16.msra.mxu1 %v6283_v47  ;;  %v6391_v47 = vld [vmem:[%s8291_s9 + $0x110] ss:$8 sps:$4 sm:$0xff]  }
 0x41f   :  { %4722 = vmatpush2.bf16.msra.mxu0 %v6286_v59  ;;  %4682 = vmatprep.subr.bf16.mxu1 %v6291_v61  ;;  %v6354_v59 = vld [vmem:[%s8291_s9 + $0xe4] ss:$8 sps:$4 sm:$0xff]  }
 0x420   :  { %4723 = vmatprep.subr.bf16.mxu0 %v6294_v25  ;;  %v6396_v61 = vld [vmem:[%s8291_s9 + $0x104] ss:$8 sps:$4 sm:$0xff]   ;;  %v6352_v25 = vld [vmem:[%s8291_s9 + $0xe0] ss:$8 sps:$4 sm:$0xff]  }
 0x422   :  { %4683 = vmatpush2.bf16.msra.mxu1 %v6289_v49  ;;  %v6394_v49 = vld [vmem:[%s8291_s9 + $0x100] ss:$8 sps:$4 sm:$0xff]  }
 0x423   :  { %4724 = vmatpush2.bf16.msra.mxu0 %v6292_v42  ;;  %4684 = vmatprep.subr.bf16.mxu1 %v6297_v15  ;;  %v6357_v42 = vld [vmem:[%s8291_s9 + $0xd4] ss:$8 sps:$4 sm:$0xff]  }
 0x424   :  { %4725 = vmatprep.subr.bf16.mxu0 %v6300_v63  ;;  %v6399_v15 = vld [vmem:[%s8291_s9 + $0x1f4] ss:$8 sps:$4 sm:$0xff]   ;;  %v6355_v63 = vld [vmem:[%s8291_s9 + $0xd0] ss:$8 sps:$4 sm:$0xff]  }
 0x426   :  { %4685 = vmatpush2.bf16.msra.mxu1 %v6295_v28  ;;  %v6397_v28 = vld [vmem:[%s8291_s9 + $0x1f0] ss:$8 sps:$4 sm:$0xff]  }
 0x427   :  { %4726 = vmatpush2.bf16.msra.mxu0 %v6298_v1  ;;  %4686 = vmatprep.subr.bf16.mxu1 %v6303_v55  ;;  %v6360_v1 = vld [vmem:[%s8291_s9 + $0xc4] ss:$8 sps:$4 sm:$0xff]  }
 0x428   :  { %4727 = vmatprep.subr.bf16.mxu0 %v6306_v60  ;;  %v6402_v55 = vld [vmem:[%s8291_s9 + $0x1e4] ss:$8 sps:$4 sm:$0xff]   ;;  %v6358_v60 = vld [vmem:[%s8291_s9 + $0xc0] ss:$8 sps:$4 sm:$0xff]  }
 0x42a   :  { %4687 = vmatpush2.bf16.msra.mxu1 %v6301_v44  ;;  %v6400_v44 = vld [vmem:[%s8291_s9 + $0x1e0] ss:$8 sps:$4 sm:$0xff]  }
 0x42b   :  { %4728 = vmatpush2.bf16.msra.mxu0 %v6304_v3  ;;  %4688 = vmatprep.subr.bf16.mxu1 %v6309_v54  ;;  %v6363_v3 = vld [vmem:[%s8291_s9 + $0xb4] ss:$8 sps:$4 sm:$0xff]  }
 0x42c   :  { %4729 = vmatprep.subr.bf16.mxu0 %v6312_v4  ;;  %v6405_v54 = vld [vmem:[%s8291_s9 + $0x1d4] ss:$8 sps:$4 sm:$0xff]   ;;  %v6361_v4 = vld [vmem:[%s8291_s9 + $0xb0] ss:$8 sps:$4 sm:$0xff]  }
 0x42e   :  { %4689 = vmatpush2.bf16.msra.mxu1 %v6307_v6  ;;  %v6403_v6 = vld [vmem:[%s8291_s9 + $0x1d0] ss:$8 sps:$4 sm:$0xff]  }
 0x42f   :  { %4730 = vmatpush2.bf16.msra.mxu0 %v6310_v7  ;;  %4690 = vmatprep.subr.bf16.mxu1 %v6315_v32  ;;  %v6366_v7 = vld [vmem:[%s8291_s9 + $0xa4] ss:$8 sps:$4 sm:$0xff]  }
 0x430   :  { %4731 = vmatprep.subr.bf16.mxu0 %v6318_v9  ;;  %v6408_v32 = vld [vmem:[%s8291_s9 + $0x1c4] ss:$8 sps:$4 sm:$0xff]   ;;  %v6364_v9 = vld [vmem:[%s8291_s9 + $0xa0] ss:$8 sps:$4 sm:$0xff]  }
 0x432   :  { %4691 = vmatpush2.bf16.msra.mxu1 %v6313_v8  ;;  %v6406_v8 = vld [vmem:[%s8291_s9 + $0x1c0] ss:$8 sps:$4 sm:$0xff]  }
 0x433   :  { %4732 = vmatpush2.bf16.msra.mxu0 %v6316_v10  ;;  %4692 = vmatprep.subr.bf16.mxu1 %v6321_v12  ;;  %v6369_v10 = vld [vmem:[%s8291_s9 + $0x94] ss:$8 sps:$4 sm:$0xff]  }
 0x434   :  { %4733 = vmatprep.subr.bf16.mxu0 %v6324_v41  ;;  %v6411_v12 = vld [vmem:[%s8291_s9 + $0x1b4] ss:$8 sps:$4 sm:$0xff]   ;;  %v6367_v41 = vld [vmem:[%s8291_s9 + $0x90] ss:$8 sps:$4 sm:$0xff]  }
 0x436   :  { %4693 = vmatpush2.bf16.msra.mxu1 %v6319_v16  ;;  %v6409_v16 = vld [vmem:[%s8291_s9 + $0x1b0] ss:$8 sps:$4 sm:$0xff]  }
 0x437   :  { %4734 = vmatpush2.bf16.msra.mxu0 %v6322_v5  ;;  %5148 = vmatprep.subr.bf16.mxu1 %v6327_v46  ;;  %v6372_v5 = vld [vmem:[%s8291_s9 + $0x84] ss:$8 sps:$4 sm:$0xff]   ;;  %v6370_v46 = vld [vmem:[%s8291_s9 + $0x80] ss:$8 sps:$4 sm:$0xff]  }
 0x438   :  { %5189 = vmatprep.subr.bf16.mxu0 %v6375_v0 }
 0x439   :  { %4695 = vmatmul.mubr.bf16.vlgmr.msra.gmra.mxu1 %v7625_v21  ;;  %v6336_v21 = vld [vmem:[%s8291_s9 + $0x44] ss:$8 sps:$4 sm:$0xff]  }
 0x43a   :  { %4736 = vmatmul.mubr.bf16.vlgmr.msra.gmra.mxu0 %v7627_v33  ;;  %5149 = vmatpush1.bf16.msra.mxu1 %v6325_v11  ;;  %v6373_v33 = vld [vmem:[%s8291_s9 + $0x170] ss:$8 sps:$4 sm:$0xff]   ;;  %v6414_v11 = vld [vmem:[%s8291_s9 + $0x1a4] ss:$8 sps:$4 sm:$0xff]  }
 0x43b   :  { %5150 = vmatprep.subr.bf16.mxu1 %v6330_v36  ;;  %5190 = vmatpush1.bf16.msra.mxu0 %v6373_v33 }
 0x43c   :  { %5191 = vmatprep.subr.bf16.mxu0 %v6378_v19 }
 0x43e   :  { %5151 = vmatpush1.bf16.msra.mxu1 %v6328_v18 }
 0x43f   :  { %5152 = vmatprep.subr.bf16.mxu1 %v6333_v13  ;;  %5192 = vmatpush1.bf16.msra.mxu0 %v6376_v26  ;;  %v6412_v13 = vld [vmem:[%s8291_s9 + $0x1a0] ss:$8 sps:$4 sm:$0xff]  }
 0x440   :  { %5193 = vmatprep.subr.bf16.mxu0 %v6381_v31  ;;  %v6415_v31 = vld [vmem:[%s8291_s9 + $0x190] ss:$8 sps:$4 sm:$0xff]  }
 0x442   :  { %5153 = vmatpush1.bf16.msra.mxu1 %v6331_v14 }
 0x443   :  { %5154 = vmatprep.subr.bf16.mxu1 %v6336_v21  ;;  %5194 = vmatpush1.bf16.msra.mxu0 %v6379_v24 }
 0x444   :  { %5195 = vmatprep.subr.bf16.mxu0 %v6384_v35 }
 0x446   :  { %5155 = vmatpush1.bf16.msra.mxu1 %v6334_v37  ;;  %v6417_v37 = vld [vmem:[%s8291_s9 + $0x194] ss:$8 sps:$4 sm:$0xff]  }
 0x447   :  { %5156 = vmatprep.subr.bf16.mxu1 %v6339_v17  ;;  %5196 = vmatpush1.bf16.msra.mxu0 %v6382_v27 }
 0x448   :  { %5197 = vmatprep.subr.bf16.mxu0 %v6387_v56 }
 0x44a   :  { %5157 = vmatpush1.bf16.msra.mxu1 %v6337_v22 }
 0x44b   :  { %5158 = vmatprep.subr.bf16.mxu1 %v6342_v57  ;;  %5198 = vmatpush1.bf16.msra.mxu0 %v6385_v43 }
 0x44c   :  { %5199 = vmatprep.subr.bf16.mxu0 %v6390_v39 }
 0x44e   :  { %5159 = vmatpush1.bf16.msra.mxu1 %v6340_v34  ;;  %v6418_v34 = vld [vmem:[%s8291_s9 + $0x180] ss:$8 sps:$4 sm:$0xff]  }
 0x44f   :  { %5160 = vmatprep.subr.bf16.mxu1 %v6345_v51  ;;  %5200 = vmatpush1.bf16.msra.mxu0 %v6388_v20 }
 0x450   :  { %5201 = vmatprep.subr.bf16.mxu0 %v6393_v53  ;;  %v6421_v53 = vld [vmem:[%s8293_s11 + $0x78] sm:$0xff]  }
 0x452   :  { %5161 = vmatpush1.bf16.msra.mxu1 %v6343_v30 }
 0x453   :  { %5162 = vmatprep.subr.bf16.mxu1 %v6348_v29  ;;  %5202 = vmatpush1.bf16.msra.mxu0 %v6391_v47  ;;  %v6423_v47 = vld [vmem:[%s8293_s11 + $0x70] sm:$0xff]  }
 0x454   :  { %5203 = vmatprep.subr.bf16.mxu0 %v6396_v61  ;;  %v6425_v61 = vld [vmem:[%s8293_s11 + $0x68] sm:$0xff]  }
 0x456   :  { %5163 = vmatpush1.bf16.msra.mxu1 %v6346_v38 }
 0x457   :  { %5164 = vmatprep.subr.bf16.mxu1 %v6351_v52  ;;  %5204 = vmatpush1.bf16.msra.mxu0 %v6394_v49  ;;  %v6427_v49 = vld [vmem:[%s8293_s11 + $0x60] sm:$0xff]  }
 0x458   :  { %5205 = vmatprep.subr.bf16.mxu0 %v6399_v15  ;;  %v6429_v15 = vld [vmem:[%s8293_s11 + $0x58] sm:$0xff]  }
 0x45a   :  { %5165 = vmatpush2.bf16.msra.mxu1 %v6349_v23  ;;  %v6422_v23 = vld [vmem:[%s8293_s11 + $0x38] sm:$0xff]  }
 0x45b   :  { %5166 = vmatprep.subr.bf16.mxu1 %v6354_v59  ;;  %5206 = vmatpush2.bf16.msra.mxu0 %v6397_v28  ;;  %v6424_v59 = vld [vmem:[%s8293_s11 + $0x30] sm:$0xff]  }
 0x45c   :  { %5207 = vmatprep.subr.bf16.mxu0 %v6402_v55  ;;  %v6431_v28 = vld [vmem:[%s8293_s11 + $0x50] sm:$0xff]   ;;  %v3130_v55 = vsub.s32 3, %v6594_v40 }
 0x45e   :  { %5167 = vmatpush2.bf16.msra.mxu1 %v6352_v25  ;;  %v6426_v25 = vld [vmem:[%s8293_s11 + $0x28] sm:$0xff]  }
 0x45f   :  { %5168 = vmatprep.subr.bf16.mxu1 %v6357_v42  ;;  %5208 = vmatpush2.bf16.msra.mxu0 %v6400_v44  ;;  %v6428_v42 = vld [vmem:[%s8293_s11 + $0x20] sm:$0xff]   ;;  %v3131_v44 = vrot.slane %v7824_v62, %v3130_v55 }
 0x460   :  { %5209 = vmatprep.subr.bf16.mxu0 %v6405_v54 }
 0x462   :  { %5169 = vmatpush2.bf16.msra.mxu1 %v6355_v63  ;;  %v6430_v63 = vld [vmem:[%s8293_s11 + $0x18] sm:$0xff]  }
 0x463   :  { %5170 = vmatprep.subr.bf16.mxu1 %v6360_v1  ;;  %5210 = vmatpush2.bf16.msra.mxu0 %v6403_v6  ;;  %v6432_v1 = vld [vmem:[%s8293_s11 + $0x10] sm:$0xff]  }
 0x464   :  { %5211 = vmatprep.subr.bf16.mxu0 %v6408_v32 }
 0x466   :  { %5171 = vmatpush2.bf16.msra.mxu1 %v6358_v60  ;;  %v3127_v60 = vrot.slane %v7824_v62, %v6614_v50 }
 0x467   :  { %5172 = vmatprep.subr.bf16.mxu1 %v6363_v3  ;;  %5212 = vmatpush2.bf16.msra.mxu0 %v6406_v8 }
 0x468   :  { %5213 = vmatprep.subr.bf16.mxu0 %v6411_v12 }
 0x46a   :  { %5173 = vmatpush2.bf16.msra.mxu1 %v6361_v4 }
 0x46b   :  { %5174 = vmatprep.subr.bf16.mxu1 %v6366_v7  ;;  %5214 = vmatpush2.bf16.msra.mxu0 %v6409_v16 }
 0x46c   :  { %5215 = vmatprep.subr.bf16.mxu0 %v6414_v11 }
 0x46e   :  { %5175 = vmatpush2.bf16.msra.mxu1 %v6364_v9 }
 0x46f   :  { %5176 = vmatprep.subr.bf16.mxu1 %v6369_v10  ;;  %5216 = vmatpush2.bf16.msra.mxu0 %v6412_v13 }
 0x470   :  { %5217 = vmatprep.subr.bf16.mxu0 %v6417_v37 }
 0x472   :  { %5177 = vmatpush2.bf16.msra.mxu1 %v6367_v41 }
 0x473   :  { %5178 = vmatprep.subr.bf16.mxu1 %v6372_v5  ;;  %5218 = vmatpush2.bf16.msra.mxu0 %v6415_v31 }
 0x476   :  { %5179 = vmatpush2.bf16.msra.mxu1 %v6370_v46 }
 0x477   :  { %5856 = vmatprep.subr.bf16.mxu1 %v6421_v53 }
 0x479   :  { %v4532_v36 = vpop.f32.mrf.mxu1  ;;  %v4573_v18 = vpop.f32.mrf.mxu0 }
 0x47a   :  { %v4533_v14 = vadd.f32 %v4532_v36, %v7855_v58 }
 0x47b   :  { %v4534_v21 = vpop.f32.mrf.mxu1  ;;  %v4575_v33 = vpop.f32.mrf.mxu0 }
 0x47c   :  { %v4574_v0 = vadd.f32 %v4573_v18, %v4533_v14  ;;  %v4535_v19 = vadd.f32 %v4534_v21, %v7860_v2  ;;  %v6420_v2 = vld [vmem:[%s8291_s9 + $0x184] ss:$8 sps:$4 sm:$0xff]  }
 0x47d   :  { %v4536_v26 = vpop.f32.mrf.mxu1  ;;  %v4577_v17 = vpop.f32.mrf.mxu0  ;;  %5219 = vmatprep.subr.bf16.mxu0 %v6420_v2  ;;  %v6433_v14 = vld [vmem:[%s8293_s11 + $0x48] sm:$0xff]  }
 0x47e   :  { %v4576_v22 = vadd.f32 %v4575_v33, %v4535_v19  ;;  %v4744_v58 = vmax.f32 %v4574_v0, 0.0  ;;  %5220 = vmatpush2.bf16.msra.mxu0 %v6418_v34  ;;  %v6434_v33 = vld [vmem:[%s8293_s11 + $0x8] sm:$0xff]   ;;  %v6435_v19 = vld [vmem:[%s8293_s11 + $0x40] sm:$0xff]  }
 0x47f   :  { %v4537_v24 = vpop.f32.mrf.mxu1  ;;  %v4578_v57 = vpop.f32.mrf.mxu0  ;;  %v6436_v26 = vld [vmem:[%s8293_s11] sm:$0xff]  }
 0x480   :  { %v4745_v35 = vmax.f32 %v4576_v22, 0.0  ;;  %v4748_v51 = vpack.c.bf16 %v4744_v58, %v4744_v58  ;;  %v4816_v17 = vld [vmem:[%s8294_s10] sm:$0x3] }
 0x481   :  { %v4821_v31 = vrot.slane %v4816_v17, %v6608_v48  ;;  %v4825_v22 = vrot.slane %v4816_v17, %v6605_v45  ;;  %v5819_v48 = vld [vmem:[%s8295_s12] ss:$0 sm:$0xff] }
 0x482   :  { %v4749_v27 = vpack.c.bf16 %v4745_v35, %v4745_v35 }
 0x484   :  { %5180 = vmatprep.mubr.bf16.mxu1 %v4749_v27 }
 0x485   :  { %5181 = vmatmul.mubr.bf16.vlgmr.msra.gmra.mxu1 %v4748_v51 }
 0x486   :  { %5857 = vmatpush3.bf16.msra.mxu1 %v6422_v23 }
 0x487   :  { %5858 = vmatprep.subr.bf16.mxu1 %v6423_v47 }
 0x48a   :  { %5859 = vmatpush3.bf16.msra.mxu1 %v6424_v59 }
 0x48b   :  { %5860 = vmatprep.subr.bf16.mxu1 %v6425_v61 }
 0x48e   :  { %5861 = vmatpush3.bf16.msra.mxu1 %v6426_v25 }
 0x48f   :  { %5862 = vmatprep.subr.bf16.mxu1 %v6427_v49 }
 0x492   :  { %5863 = vmatpush3.bf16.msra.mxu1 %v6428_v42 }
 0x493   :  { %5864 = vmatprep.subr.bf16.mxu1 %v6429_v15 }
 0x496   :  { %5865 = vmatpush3.bf16.msra.mxu1 %v6430_v63 }
 0x497   :  { %5866 = vmatprep.subr.bf16.mxu1 %v6431_v28 }
 0x49a   :  { %5867 = vmatpush3.bf16.msra.mxu1 %v6432_v1 }
 0x49b   :  { %5868 = vmatprep.subr.bf16.mxu1 %v6433_v14 }
 0x49e   :  { %5869 = vmatpush3.bf16.msra.mxu1 %v6434_v33 }
 0x49f   :  { %5870 = vmatprep.subr.bf16.mxu1 %v6435_v19 }
 0x4a2   :  { %5871 = vmatpush3.bf16.msra.mxu1 %v6436_v26 }
 0x4b9   :  { %v4614_v56 = vpop.f32.mrf.mxu1  ;;  %v4655_v30 = vpop.f32.mrf.mxu0 }
 0x4ba   :  { %v4615_v3 = vadd.f32 %v4614_v56, %v3127_v60 }
 0x4bb   :  { %v4616_v43 = vpop.f32.mrf.mxu1  ;;  %v4657_v29 = vpop.f32.mrf.mxu0 }
 0x4bc   :  { %v4617_v54 = vadd.f32 %v4616_v43, %v3131_v44  ;;  %v4656_v4 = vadd.f32 %v4655_v30, %v4615_v3 }
 0x4bd   :  { %v4618_v39 = vpop.f32.mrf.mxu1  ;;  %v4659_v38 = vpop.f32.mrf.mxu0 }
 0x4be   :  { %v4658_v7 = vadd.f32 %v4657_v29, %v4617_v54 }
 0x4bf   :  { %v4619_v20 = vpop.f32.mrf.mxu1  ;;  %v4660_v52 = vpop.f32.mrf.mxu0 }
 0x4f9   :  { %v4696_v6 = vpop.f32.mrf.mxu1 }
 0x4fa   :  { %v4697_v32 = vadd.f32 %v4696_v6, %v4656_v4  ;;  %v4737_v9 = vpop.f32.mrf.mxu0 }
 0x4fb   :  { %v4698_v8 = vpop.f32.mrf.mxu1 }
 0x4fc   :  { %v4738_v10 = vadd.f32 %v4737_v9, %v4697_v32  ;;  %v4699_v12 = vadd.f32 %v4698_v8, %v4658_v7  ;;  %v4739_v41 = vpop.f32.mrf.mxu0 }
 0x4fd   :  { %v4700_v16 = vpop.f32.mrf.mxu1 }
 0x4fe   :  { %v4740_v5 = vadd.f32 %v4739_v41, %v4699_v12  ;;  %v4741_v46 = vpop.f32.mrf.mxu0  ;;  %v4746_v40 = vmax.f32 %v4738_v10, 0.0 }
 0x4ff   :  { %v4701_v11 = vpop.f32.mrf.mxu1 }
 0x500   :  { %v4747_v36 = vmax.f32 %v4740_v5, 0.0  ;;  %v4742_v50 = vpop.f32.mrf.mxu0  ;;  %v4750_v62 = vpack.c.bf16 %v4746_v40, %v4746_v40 }
 0x502   :  { %v4751_v18 = vpack.c.bf16 %v4747_v36, %v4747_v36 }
 0x504   :  { %5221 = vmatprep.mubr.bf16.mxu0 %v4751_v18 }
 0x505   :  { %5222 = vmatmul.mubr.bf16.vlgmr.msra.gmra.mxu0 %v4750_v62 }
 0x545   :  { %v5182_v13 = vpop.f32.mrf.mxu1 }
 0x546   :  { %v5183_v58 = vadd.f32 %v5182_v13, %v4821_v31 }
 0x547   :  { %v5184_v21 = vpop.f32.mrf.mxu1 }
 0x548   :  { %v5185_v57 = vadd.f32 %v5184_v21, %v4825_v22 }
 0x549   :  { %v5186_v0 = vpop.f32.mrf.mxu1 }
 0x54b   :  { %v5187_v37 = vpop.f32.mrf.mxu1 }
 0x5c5   :  { %v5223_v24 = vpop.f32.mrf.mxu0 }
 0x5c6   :  { %v5224_v35 = vadd.f32 %v5223_v24, %v5183_v58 }
 0x5c7   :  { %v5225_v2 = vpop.f32.mrf.mxu0 }
 0x5c8   :  { %v5226_v34 = vadd.f32 %v5225_v2, %v5185_v57  ;;  %v5230_v27 = vmax.f32 %v5224_v35, 0.0 }
 0x5c9   :  { %v5227_v51 = vpop.f32.mrf.mxu0 }
 0x5ca   :  { %v5231_v56 = vmax.f32 %v5226_v34, 0.0  ;;  %v5232_v29 = vpack.c.bf16 %v5230_v27, %v5230_v27 }
 0x5cb   :  { %v5228_v30 = vpop.f32.mrf.mxu0 }
 0x5cc   :  { %v5233_v43 = vpack.c.bf16 %v5231_v56, %v5231_v56 }
 0x5ce   :  { %5401 = vmatprep.mubr.bf16.mxu1 %v5233_v43 }
 0x5cf   :  { %5402 = vmatmul.mubr.bf16.vlgmr.msra.gmra.mxu1 %v5232_v29 }
 0x68f   :  { %v5872_v39 = vpop.f32.mrf.mxu1 }
 0x691   :  { %v5873_v45 = vpop.f32.mrf.mxu1 }
 0x692   :  { %v5874_v38 = vadd.f32 %v5873_v45, %v5872_v39 }
 0x693   :  { %v5875_v20 = vpop.f32.mrf.mxu1 }
 0x694   :  { %v5404_v52 = vadd.f32 %v5874_v38, %v5819_v48 }
 0x695   :  { %v5876_v53 = vpop.f32.mrf.mxu1 }
 0x696   :  { %5409 = vst [vmem:[%s8296_s13] sm:$0x3] %v5404_v52 }

</bundles_post_ra>
